<compile_context>
chip_gen: v5e
topology: v5e:2x2
jax: 0.10.0
libtpu: 0.0.40
codegen_flags: <defaults>
</compile_context>

<pallas_src>
import functools

import jax
import jax.numpy as jnp
from jax import lax
from jax.experimental import pallas as pl
from jax.experimental.pallas import tpu as pltpu

MIN_NORM = 1e-15
MIN_NORM_SQ = MIN_NORM * MIN_NORM
BALL_EPS = 4e-3  # float32 projection epsilon (HGCN convention)


# ----------------------------- in-kernel math helpers -----------------------------
def _artanh(z):
    # log1p-based form: far better relative accuracy near z == 0 than log((1+z)/(1-z)).
    z = jnp.clip(z, -1.0 + 1e-5, 1.0 - 1e-5)
    return 0.5 * (jnp.log1p(z) - jnp.log1p(-z))


def _sq(v):
    """||v||^2 over the feature (sublane, second-to-last) axis, keepdims."""
    return jnp.sum(v * v, axis=-2, keepdims=True)


def _inv_and_norm(v2):
    """(1/||v||, ||v||) from ||v||^2 via one rsqrt; ||v|| is clamped at MIN_NORM."""
    n2 = jnp.maximum(v2, MIN_NORM_SQ)
    inv_n = lax.rsqrt(n2)
    return inv_n, n2 * inv_n


def _mobius_add_cols(x, y, c, x2=None):
    """Mobius addition in batch-in-lanes layout [D, Tb]; optional precomputed ||x||^2."""
    if x2 is None:
        x2 = _sq(x)
    y2 = _sq(y)
    xy = jnp.sum(x * y, axis=-2, keepdims=True)
    num = (1.0 + 2.0 * c * xy + c * y2) * x + (1.0 - c * x2) * y
    den = jnp.maximum(1.0 + 2.0 * c * xy + (c * c) * x2 * y2, MIN_NORM)
    return num * pl.reciprocal(den, approx=True)


def _proj_cols(v, c):
    maxnorm = (1.0 - BALL_EPS) / (c ** 0.5)
    inv_n, n = _inv_and_norm(_sq(v))
    return jnp.where(n > maxnorm, v * (inv_n * maxnorm), v)


# ---------------------------------- Pallas kernel ----------------------------------
def _user_agg_kernel(x_ref, ngh_ref, w_ui_ref, lin_w_ref, hb_ref, out_ref, *, c):
    f32 = jnp.float32
    x = x_ref[...].astype(f32)          # [D, Tb]      points on the ball (columns)
    ngh = ngh_ref[...].astype(f32)      # [S, D, Tb]
    w_ui = w_ui_ref[...].astype(f32)    # [D, D]       used directly (no transpose)
    lin_w = lin_w_ref[...].astype(f32)  # [D, D]       used directly (no transpose)
    hb = hb_ref[...].astype(f32)        # [D, 1]       proj(expmap0(bias)), precomputed

    D = x.shape[0]
    sqrt_c = c ** 0.5
    inv_sqrt_c = 1.0 / sqrt_c
    c2 = c * c
    inv_D = 1.0 / D
    maxnorm = (1.0 - BALL_EPS) * inv_sqrt_c

    # ---- per-user (per lane column) quantities, computed once: [1, Tb] ----
    x2 = _sq(x)
    inv_xn, x_norm = _inv_and_norm(x2)
    omx = jnp.maximum(1.0 - c * x2, MIN_NORM)            # clamped 1 - c||x||^2 (= 2/lambda_x)
    lam_x = 2.0 * pl.reciprocal(omx, approx=True)        # lambda_x (only needed for expmap)
    u0 = (_artanh(sqrt_c * x_norm) * inv_xn * inv_sqrt_c) * x        # logmap0(x)

    # ---- per-neighbor quantities (lane-dense [S, 1, Tb] scalar chains) ----
    y2 = jnp.sum(ngh * ngh, axis=1, keepdims=True)                   # [S, 1, Tb]
    xy = jnp.sum(x[None, :, :] * ngh, axis=1, keepdims=True)         # [S, 1, Tb]
    inv_yn, y_norm = _inv_and_norm(y2)
    scale_y0 = _artanh(sqrt_c * y_norm) * inv_yn * inv_sqrt_c        # logmap0(ngh) scale

    # ------------------------------ compute_att ------------------------------
    uw = jnp.dot(w_ui, u0, preferred_element_type=f32)               # [D, Tb] = W_ui @ u0
    # mean(uw * logmap0(ngh), dim=-1) == (uw . ngh) * scale_y0 / D
    att = (jnp.sum(uw[None, :, :] * ngh, axis=1, keepdims=True)
           * scale_y0) * inv_D                                       # [S, 1, Tb]
    att = att - jnp.max(att, axis=0, keepdims=True)
    p = jnp.exp(att)
    att_w = p * pl.reciprocal(jnp.sum(p, axis=0, keepdims=True), approx=True)  # softmax

    # --------------------------- aggregate_item_ngh ---------------------------
    # sub = mobius_add(-x, ngh): coefficients AND ||sub||^2 in closed form from
    # (x2, y2, xy) -- no [S, D, Tb] materialization of sub / logmap at all.
    x2b = x2[None]                                                   # [1, 1, Tb]
    omxb = omx[None]                                                 # [1, 1, Tb]
    coef_x = -(1.0 - 2.0 * c * xy + c * y2)                          # [S, 1, Tb]
    coef_y = 1.0 - c * x2b                                           # [1, 1, Tb]
    inv_den = pl.reciprocal(
        jnp.maximum(1.0 - 2.0 * c * xy + c2 * x2b * y2, MIN_NORM), approx=True)
    num2 = ((coef_x * coef_x) * x2b + (2.0 * coef_x * coef_y) * xy
            + (coef_y * coef_y) * y2)                                # ||num||^2, closed form
    inv_sn, sub_norm = _inv_and_norm(num2 * inv_den * inv_den)       # (1/||sub||, ||sub||)
    # logmap_x(ngh) scale = 2/(sqrt_c*lambda_x) * artanh(sqrt_c*||sub||)/||sub||
    log_scale = (inv_sqrt_c * omxb) * _artanh(sqrt_c * sub_norm) * inv_sn
    # u = sum_s att_w*log_scale*sub, with sub folded into the sum:
    #   u = (sum_s w*coef_x) * x + coef_y * (sum_s w*ngh),  w = att_w*log_scale*inv_den
    w = att_w * log_scale * inv_den                                  # [S, 1, Tb]
    u = (jnp.sum(w * coef_x, axis=0) * x
         + coef_y[0] * jnp.sum(w * ngh, axis=0))                     # [D, Tb] tangent @ x

    # expmap_x(u), then back onto the ball
    inv_un, u_norm = _inv_and_norm(_sq(u))
    second = (jnp.tanh(0.5 * sqrt_c * lam_x * u_norm) * inv_sqrt_c * inv_un) * u
    ngh_agg = _mobius_add_cols(x, second, c, x2=x2)

    # ------------------------ forward (agg_type == 'sum') ----------------------
    out = _mobius_add_cols(x, ngh_agg, c, x2=x2)                     # [D, Tb]

    # -------------------------------- Hyp_Linear -------------------------------
    # TODO(synk): dropout on the Hyp_Linear weight is a no-op here (inference path).
    inv_on, out_norm = _inv_and_norm(_sq(out))
    mx = jnp.dot(lin_w, out, preferred_element_type=f32)             # mobius_matvec matmul
    inv_mn, mx_norm = _inv_and_norm(_sq(mx))
    mv_scale = (jnp.tanh(mx_norm * inv_on * _artanh(sqrt_c * out_norm))
                * inv_mn * inv_sqrt_c)
    mv = jnp.where(mx_norm <= MIN_NORM, 0.0, mv_scale * mx)          # zero guard
    # proj(mv): ||mv|| == mv_scale * mx_norm (mv_scale >= 0) -> reuse, no extra reduce
    mv_n = jnp.maximum(mv_scale * mx_norm, MIN_NORM)
    mv = jnp.where(mv_n > maxnorm,
                   mv * (maxnorm * pl.reciprocal(mv_n, approx=True)), mv)

    out = _proj_cols(_mobius_add_cols(mv, hb, c), c)                 # + proj(expmap0(b))

    # ------------------ tangent-space activation (act_f == ReLU) ----------------
    inv_on, o_norm = _inv_and_norm(_sq(out))
    t = jnp.maximum((_artanh(sqrt_c * o_norm) * inv_on * inv_sqrt_c) * out, 0.0)
    inv_tn, t_norm = _inv_and_norm(_sq(t))
    out = (jnp.tanh(sqrt_c * t_norm) * inv_tn * inv_sqrt_c) * t      # expmap0

    out_ref[...] = out.astype(out_ref.dtype)                         # lane-dense store


# ---------------------------------- wrapper ----------------------------------
def user_aggregator_forward(self_vectors, item_ngh_vectors, w_ui, lin_w, lin_b,
                            *, c=1.0, tile_b=2048):
    B, D = self_vectors.shape
    S = item_ngh_vectors.shape[1]
    c = float(c)
    sqrt_c = c ** 0.5

    # Batch-in-lanes layout: self/out as [D, B], neighbors as [S, D, B] so the batch sits
    # in the 128-wide lane axis (D=32 in lanes would leave every vreg <=25% occupied and
    # the per-neighbor scalar chains <7% occupied).
    # TODO(synk): a producer-side column layout would remove this extra HBM pass over ngh.
    x_cols = jnp.asarray(self_vectors, jnp.float32).T                          # [D, B]
    ngh_cols = jnp.transpose(jnp.asarray(item_ngh_vectors, jnp.float32),
                             (1, 2, 0))                                        # [S, D, B]
    w_ui = jnp.asarray(w_ui, jnp.float32).reshape(D, D)
    lin_w = jnp.asarray(lin_w, jnp.float32).reshape(D, D)
    lin_b = jnp.asarray(lin_b, jnp.float32).reshape(1, D)

    # Grid-invariant Hyp_Linear bias branch hoisted out of the kernel:
    # hb = proj(expmap0(bias)), stored as a [D, 1] column.
    b_norm = jnp.maximum(jnp.sqrt(jnp.sum(lin_b * lin_b)), MIN_NORM)
    hb = jnp.tanh(sqrt_c * b_norm) * lin_b / (sqrt_c * b_norm)
    maxnorm = (1.0 - BALL_EPS) / sqrt_c
    hb_n = jnp.maximum(jnp.tanh(sqrt_c * b_norm) / sqrt_c, MIN_NORM)
    hb = jnp.where(hb_n > maxnorm, hb / hb_n * maxnorm, hb)
    hb_col = hb.reshape(D, 1)

    # Batch tiling over the lane axis: tiles are the full batch or a multiple of 128.
    # No jnp.pad of the dominant [B,S,D] tensor -- a partial last block is fine because
    # every computation is lane-local and out-of-range output lanes are never written.
    if B <= tile_b:
        tb, n_tiles = B, 1
    else:
        tb = max(128, (min(tile_b, B) // 128) * 128)
        n_tiles = pl.cdiv(B, tb)
        if n_tiles > 1 and n_tiles % 2 == 1:
            # v7x megacore: prefer an even tile count on the single "parallel" axis.
            alt = ((pl.cdiv(B, n_tiles + 1) + 127) // 128) * 128
            if alt >= 128 and pl.cdiv(B, alt) % 2 == 0:
                tb, n_tiles = alt, pl.cdiv(B, alt)

    kernel = functools.partial(_user_agg_kernel, c=c)
    out_cols = pl.pallas_call(
        kernel,
        out_shape=jax.ShapeDtypeStruct((D, B), jnp.float32),
        grid=(n_tiles,),
        in_specs=[
            pl.BlockSpec((D, tb), lambda i: (0, i)),
            pl.BlockSpec((S, D, tb), lambda i: (0, 0, i)),
            pl.BlockSpec((D, D), lambda i: (0, 0)),
            pl.BlockSpec((D, D), lambda i: (0, 0)),
            pl.BlockSpec((D, 1), lambda i: (0, 0)),
        ],
        out_specs=pl.BlockSpec((D, tb), lambda i: (0, i)),
        compiler_params=pltpu.CompilerParams(
            dimension_semantics=("parallel",),          # megacore-shard batch tiles (v7x)
            vmem_limit_bytes=48 * 1024 * 1024),         # < v7x 64 MiB phys, > v5e default
    )(x_cols, ngh_cols, w_ui, lin_w, hb_col)
    return out_cols.T                                   # back to the module's [B, D]


if __name__ == "__main__":
    # Small shapes consistent with the module: batch=8, sample_size=8, dim=32.
    B, S, D = 8, 8, 32
    c = 1.0

    key = jax.random.PRNGKey(0)
    k1, k2, k3, k4, k5 = jax.random.split(key, 5)

    # Inputs must be points on the Poincare ball -> map small tangent vectors in.
    self_tan = 0.1 * jax.random.normal(k1, (B, D), jnp.float32)
    ngh_tan = 0.1 * jax.random.normal(k2, (B, S, D), jnp.float32)

    def expmap0_host(u):  # host-side glue to put inputs on the manifold
        n = jnp.maximum(jnp.linalg.norm(u, axis=-1, keepdims=True), MIN_NORM)
        return jnp.tanh(n) * u / n

    self_vectors = expmap0_host(self_tan)
    item_ngh_vectors = expmap0_host(ngh_tan)

    # Deterministic parameters (attention bilinear form + Hyp_Linear weight/bias).
    w_ui = jax.random.normal(k3, (D, D), jnp.float32) / jnp.sqrt(D)
    lin_w = jax.random.normal(k4, (D, D), jnp.float32) / jnp.sqrt(D)
    lin_b = 0.01 * jax.random.normal(k5, (1, D), jnp.float32)

    out = user_aggregator_forward(self_vectors, item_ngh_vectors, w_ui, lin_w, lin_b, c=c)
    out = jax.block_until_ready(out)
    assert out.shape == (B, D) and bool(jnp.all(jnp.isfinite(out)))
    # TODO(synk): act_f is user-supplied in the reference module; fixed to ReLU here.
    print("KERNEL_OK")
</pallas_src>

<mosaic_0001>
module attributes {stable_mosaic.version = 11 : i64} {
  func.func @_user_agg_kernel(%arg0: i32, %arg1: memref<32x8xf32, #tpu.memory_space<vmem>>, %arg2: memref<8x32x8xf32, #tpu.memory_space<vmem>>, %arg3: memref<32x32xf32, #tpu.memory_space<vmem>>, %arg4: memref<32x32xf32, #tpu.memory_space<vmem>>, %arg5: memref<32x1xf32, #tpu.memory_space<vmem>>, %arg6: memref<32x8xf32, #tpu.memory_space<vmem>>) attributes {dimension_semantics = [#tpu.dimension_semantics<parallel>], iteration_bounds = array<i64: 1>, scalar_prefetch = 0 : i64, scratch_operands = 0 : i64, tpu.core_type = #tpu.core_type<tc>, window_params = [{transform_indices = @transform_0, window_bounds = array<i64: 32, 8>}, {transform_indices = @transform_1, window_bounds = array<i64: 8, 32, 8>}, {pipeline_mode = #tpu.pipeline_mode<synchronous>, transform_indices = @transform_2, window_bounds = array<i64: 32, 32>}, {pipeline_mode = #tpu.pipeline_mode<synchronous>, transform_indices = @transform_3, window_bounds = array<i64: 32, 32>}, {pipeline_mode = #tpu.pipeline_mode<synchronous>, transform_indices = @transform_4, window_bounds = array<i64: 32, 1>}, {transform_indices = @transform_5, window_bounds = array<i64: 32, 8>}]} {
    %c0 = arith.constant 0 : index
    %c0_0 = arith.constant 0 : index
    %0 = vector.load %arg1[%c0, %c0_0] : memref<32x8xf32, #tpu.memory_space<vmem>>, vector<32x8xf32>
    %c0_1 = arith.constant 0 : index
    %c0_2 = arith.constant 0 : index
    %c0_3 = arith.constant 0 : index
    %1 = vector.load %arg2[%c0_1, %c0_2, %c0_3] : memref<8x32x8xf32, #tpu.memory_space<vmem>>, vector<8x32x8xf32>
    %c0_4 = arith.constant 0 : index
    %c0_5 = arith.constant 0 : index
    %2 = vector.load %arg3[%c0_4, %c0_5] : memref<32x32xf32, #tpu.memory_space<vmem>>, vector<32x32xf32>
    %c0_6 = arith.constant 0 : index
    %c0_7 = arith.constant 0 : index
    %3 = vector.load %arg4[%c0_6, %c0_7] : memref<32x32xf32, #tpu.memory_space<vmem>>, vector<32x32xf32>
    %c0_8 = arith.constant 0 : index
    %c0_9 = arith.constant 0 : index
    %4 = vector.load %arg5[%c0_8, %c0_9] : memref<32x1xf32, #tpu.memory_space<vmem>>, vector<32x1xf32>
    %5 = arith.mulf %0, %0 : vector<32x8xf32>
    %cst = arith.constant dense<0.000000e+00> : vector<8xf32>
    %6 = vector.multi_reduction <add>, %5, %cst [0] : vector<32x8xf32> to vector<8xf32>
    %7 = vector.shape_cast %6 : vector<8xf32> to vector<1x8xf32>
    %cst_10 = arith.constant 1.000000e-30 : f32
    %8 = vector.broadcast %cst_10 : f32 to vector<1x8xf32>
    %9 = arith.maximumf %7, %8 : vector<1x8xf32>
    %10 = math.rsqrt %9 : vector<1x8xf32>
    %11 = arith.mulf %9, %10 : vector<1x8xf32>
    %cst_11 = arith.constant 1.000000e+00 : f32
    %12 = vector.broadcast %cst_11 : f32 to vector<1x8xf32>
    %13 = arith.mulf %12, %7 : vector<1x8xf32>
    %cst_12 = arith.constant 1.000000e+00 : f32
    %14 = vector.broadcast %cst_12 : f32 to vector<1x8xf32>
    %15 = arith.subf %14, %13 : vector<1x8xf32>
    %cst_13 = arith.constant 1.000000e-15 : f32
    %16 = vector.broadcast %cst_13 : f32 to vector<1x8xf32>
    %17 = arith.maximumf %15, %16 : vector<1x8xf32>
    %18 = tpu.reciprocal %17 {approx = true} : vector<1x8xf32> -> vector<1x8xf32>
    %cst_14 = arith.constant 2.000000e+00 : f32
    %19 = vector.broadcast %cst_14 : f32 to vector<1x8xf32>
    %20 = arith.mulf %19, %18 : vector<1x8xf32>
    %cst_15 = arith.constant 1.000000e+00 : f32
    %21 = vector.broadcast %cst_15 : f32 to vector<1x8xf32>
    %22 = arith.mulf %21, %11 : vector<1x8xf32>
    %cst_16 = arith.constant -0.999989986 : f32
    %cst_17 = arith.constant 0.999989986 : f32
    %23 = vector.broadcast %cst_16 : f32 to vector<1x8xf32>
    %24 = arith.maximumf %23, %22 : vector<1x8xf32>
    %25 = vector.broadcast %cst_17 : f32 to vector<1x8xf32>
    %26 = arith.minimumf %25, %24 : vector<1x8xf32>
    %27 = math.log1p %26 : vector<1x8xf32>
    %cst_18 = arith.constant 0.000000e+00 : f32
    %28 = vector.broadcast %cst_18 : f32 to vector<1x8xf32>
    %29 = arith.subf %28, %26 : vector<1x8xf32>
    %30 = math.log1p %29 : vector<1x8xf32>
    %31 = arith.subf %27, %30 : vector<1x8xf32>
    %cst_19 = arith.constant 5.000000e-01 : f32
    %32 = vector.broadcast %cst_19 : f32 to vector<1x8xf32>
    %33 = arith.mulf %32, %31 : vector<1x8xf32>
    %34 = arith.mulf %33, %10 : vector<1x8xf32>
    %cst_20 = arith.constant 1.000000e+00 : f32
    %35 = vector.broadcast %cst_20 : f32 to vector<1x8xf32>
    %36 = arith.mulf %34, %35 : vector<1x8xf32>
    %37 = vector.broadcast %36 : vector<1x8xf32> to vector<32x8xf32>
    %38 = arith.mulf %37, %0 : vector<32x8xf32>
    %39 = arith.mulf %1, %1 : vector<8x32x8xf32>
    %cst_21 = arith.constant dense<0.000000e+00> : vector<8x8xf32>
    %40 = vector.multi_reduction <add>, %39, %cst_21 [1] : vector<8x32x8xf32> to vector<8x8xf32>
    %41 = vector.shape_cast %40 : vector<8x8xf32> to vector<8x1x8xf32>
    %42 = vector.shape_cast %0 : vector<32x8xf32> to vector<1x32x8xf32>
    %43 = vector.broadcast %42 : vector<1x32x8xf32> to vector<8x32x8xf32>
    %44 = arith.mulf %43, %1 : vector<8x32x8xf32>
    %cst_22 = arith.constant dense<0.000000e+00> : vector<8x8xf32>
    %45 = vector.multi_reduction <add>, %44, %cst_22 [1] : vector<8x32x8xf32> to vector<8x8xf32>
    %46 = vector.shape_cast %45 : vector<8x8xf32> to vector<8x1x8xf32>
    %cst_23 = arith.constant 1.000000e-30 : f32
    %47 = vector.broadcast %cst_23 : f32 to vector<8x1x8xf32>
    %48 = arith.maximumf %41, %47 : vector<8x1x8xf32>
    %49 = math.rsqrt %48 : vector<8x1x8xf32>
    %50 = arith.mulf %48, %49 : vector<8x1x8xf32>
    %cst_24 = arith.constant 1.000000e+00 : f32
    %51 = vector.broadcast %cst_24 : f32 to vector<8x1x8xf32>
    %52 = arith.mulf %51, %50 : vector<8x1x8xf32>
    %cst_25 = arith.constant -0.999989986 : f32
    %cst_26 = arith.constant 0.999989986 : f32
    %53 = vector.broadcast %cst_25 : f32 to vector<8x1x8xf32>
    %54 = arith.maximumf %53, %52 : vector<8x1x8xf32>
    %55 = vector.broadcast %cst_26 : f32 to vector<8x1x8xf32>
    %56 = arith.minimumf %55, %54 : vector<8x1x8xf32>
    %57 = math.log1p %56 : vector<8x1x8xf32>
    %cst_27 = arith.constant 0.000000e+00 : f32
    %58 = vector.broadcast %cst_27 : f32 to vector<8x1x8xf32>
    %59 = arith.subf %58, %56 : vector<8x1x8xf32>
    %60 = math.log1p %59 : vector<8x1x8xf32>
    %61 = arith.subf %57, %60 : vector<8x1x8xf32>
    %cst_28 = arith.constant 5.000000e-01 : f32
    %62 = vector.broadcast %cst_28 : f32 to vector<8x1x8xf32>
    %63 = arith.mulf %62, %61 : vector<8x1x8xf32>
    %64 = arith.mulf %63, %49 : vector<8x1x8xf32>
    %cst_29 = arith.constant 1.000000e+00 : f32
    %65 = vector.broadcast %cst_29 : f32 to vector<8x1x8xf32>
    %66 = arith.mulf %64, %65 : vector<8x1x8xf32>
    %cst_30 = arith.constant dense<0.000000e+00> : vector<32x8xf32>
    %67 = tpu.matmul %2, %38, %cst_30 {dimension_numbers = #tpu.dot_dimension_numbers<[1], [0], [0], [1], [0, 0, 1, 1], [], []>} : vector<32x32xf32>, vector<32x8xf32>, vector<32x8xf32> -> vector<32x8xf32>
    %68 = vector.shape_cast %67 : vector<32x8xf32> to vector<1x32x8xf32>
    %69 = vector.broadcast %68 : vector<1x32x8xf32> to vector<8x32x8xf32>
    %70 = arith.mulf %69, %1 : vector<8x32x8xf32>
    %cst_31 = arith.constant dense<0.000000e+00> : vector<8x8xf32>
    %71 = vector.multi_reduction <add>, %70, %cst_31 [1] : vector<8x32x8xf32> to vector<8x8xf32>
    %72 = vector.shape_cast %71 : vector<8x8xf32> to vector<8x1x8xf32>
    %73 = arith.mulf %72, %66 : vector<8x1x8xf32>
    %cst_32 = arith.constant 3.125000e-02 : f32
    %74 = vector.broadcast %cst_32 : f32 to vector<8x1x8xf32>
    %75 = arith.mulf %73, %74 : vector<8x1x8xf32>
    %cst_33 = arith.constant dense<0xFF800000> : vector<1x8xf32>
    %76 = vector.multi_reduction <maximumf>, %75, %cst_33 [0] : vector<8x1x8xf32> to vector<1x8xf32>
    %77 = vector.shape_cast %76 : vector<1x8xf32> to vector<1x1x8xf32>
    %78 = vector.broadcast %77 : vector<1x1x8xf32> to vector<8x1x8xf32>
    %79 = arith.subf %75, %78 : vector<8x1x8xf32>
    %80 = math.exp %79 : vector<8x1x8xf32>
    %cst_34 = arith.constant dense<0.000000e+00> : vector<1x8xf32>
    %81 = vector.multi_reduction <add>, %80, %cst_34 [0] : vector<8x1x8xf32> to vector<1x8xf32>
    %82 = vector.shape_cast %81 : vector<1x8xf32> to vector<1x1x8xf32>
    %83 = tpu.reciprocal %82 {approx = true} : vector<1x1x8xf32> -> vector<1x1x8xf32>
    %84 = vector.broadcast %83 : vector<1x1x8xf32> to vector<8x1x8xf32>
    %85 = arith.mulf %80, %84 : vector<8x1x8xf32>
    %86 = vector.shape_cast %7 : vector<1x8xf32> to vector<1x1x8xf32>
    %87 = vector.shape_cast %17 : vector<1x8xf32> to vector<1x1x8xf32>
    %cst_35 = arith.constant 2.000000e+00 : f32
    %88 = vector.broadcast %cst_35 : f32 to vector<8x1x8xf32>
    %89 = arith.mulf %88, %46 : vector<8x1x8xf32>
    %cst_36 = arith.constant 1.000000e+00 : f32
    %90 = vector.broadcast %cst_36 : f32 to vector<8x1x8xf32>
    %91 = arith.subf %90, %89 : vector<8x1x8xf32>
    %cst_37 = arith.constant 1.000000e+00 : f32
    %92 = vector.broadcast %cst_37 : f32 to vector<8x1x8xf32>
    %93 = arith.mulf %92, %41 : vector<8x1x8xf32>
    %94 = arith.addf %91, %93 : vector<8x1x8xf32>
    %cst_38 = arith.constant 0.000000e+00 : f32
    %95 = vector.broadcast %cst_38 : f32 to vector<8x1x8xf32>
    %96 = arith.subf %95, %94 : vector<8x1x8xf32>
    %cst_39 = arith.constant 1.000000e+00 : f32
    %97 = vector.broadcast %cst_39 : f32 to vector<1x1x8xf32>
    %98 = arith.mulf %97, %86 : vector<1x1x8xf32>
    %cst_40 = arith.constant 1.000000e+00 : f32
    %99 = vector.broadcast %cst_40 : f32 to vector<1x1x8xf32>
    %100 = arith.subf %99, %98 : vector<1x1x8xf32>
    %cst_41 = arith.constant 2.000000e+00 : f32
    %101 = vector.broadcast %cst_41 : f32 to vector<8x1x8xf32>
    %102 = arith.mulf %101, %46 : vector<8x1x8xf32>
    %cst_42 = arith.constant 1.000000e+00 : f32
    %103 = vector.broadcast %cst_42 : f32 to vector<8x1x8xf32>
    %104 = arith.subf %103, %102 : vector<8x1x8xf32>
    %cst_43 = arith.constant 1.000000e+00 : f32
    %105 = vector.broadcast %cst_43 : f32 to vector<1x1x8xf32>
    %106 = arith.mulf %105, %86 : vector<1x1x8xf32>
    %107 = vector.broadcast %106 : vector<1x1x8xf32> to vector<8x1x8xf32>
    %108 = arith.mulf %107, %41 : vector<8x1x8xf32>
    %109 = arith.addf %104, %108 : vector<8x1x8xf32>
    %cst_44 = arith.constant 1.000000e-15 : f32
    %110 = vector.broadcast %cst_44 : f32 to vector<8x1x8xf32>
    %111 = arith.maximumf %109, %110 : vector<8x1x8xf32>
    %112 = tpu.reciprocal %111 {approx = true} : vector<8x1x8xf32> -> vector<8x1x8xf32>
    %113 = arith.mulf %96, %96 : vector<8x1x8xf32>
    %114 = vector.broadcast %86 : vector<1x1x8xf32> to vector<8x1x8xf32>
    %115 = arith.mulf %113, %114 : vector<8x1x8xf32>
    %cst_45 = arith.constant 2.000000e+00 : f32
    %116 = vector.broadcast %cst_45 : f32 to vector<8x1x8xf32>
    %117 = arith.mulf %116, %96 : vector<8x1x8xf32>
    %118 = vector.broadcast %100 : vector<1x1x8xf32> to vector<8x1x8xf32>
    %119 = arith.mulf %117, %118 : vector<8x1x8xf32>
    %120 = arith.mulf %119, %46 : vector<8x1x8xf32>
    %121 = arith.addf %115, %120 : vector<8x1x8xf32>
    %122 = arith.mulf %100, %100 : vector<1x1x8xf32>
    %123 = vector.broadcast %122 : vector<1x1x8xf32> to vector<8x1x8xf32>
    %124 = arith.mulf %123, %41 : vector<8x1x8xf32>
    %125 = arith.addf %121, %124 : vector<8x1x8xf32>
    %126 = arith.mulf %125, %112 : vector<8x1x8xf32>
    %127 = arith.mulf %126, %112 : vector<8x1x8xf32>
    %cst_46 = arith.constant 1.000000e-30 : f32
    %128 = vector.broadcast %cst_46 : f32 to vector<8x1x8xf32>
    %129 = arith.maximumf %127, %128 : vector<8x1x8xf32>
    %130 = math.rsqrt %129 : vector<8x1x8xf32>
    %131 = arith.mulf %129, %130 : vector<8x1x8xf32>
    %cst_47 = arith.constant 1.000000e+00 : f32
    %132 = vector.broadcast %cst_47 : f32 to vector<1x1x8xf32>
    %133 = arith.mulf %132, %87 : vector<1x1x8xf32>
    %cst_48 = arith.constant 1.000000e+00 : f32
    %134 = vector.broadcast %cst_48 : f32 to vector<8x1x8xf32>
    %135 = arith.mulf %134, %131 : vector<8x1x8xf32>
    %cst_49 = arith.constant -0.999989986 : f32
    %cst_50 = arith.constant 0.999989986 : f32
    %136 = vector.broadcast %cst_49 : f32 to vector<8x1x8xf32>
    %137 = arith.maximumf %136, %135 : vector<8x1x8xf32>
    %138 = vector.broadcast %cst_50 : f32 to vector<8x1x8xf32>
    %139 = arith.minimumf %138, %137 : vector<8x1x8xf32>
    %140 = math.log1p %139 : vector<8x1x8xf32>
    %cst_51 = arith.constant 0.000000e+00 : f32
    %141 = vector.broadcast %cst_51 : f32 to vector<8x1x8xf32>
    %142 = arith.subf %141, %139 : vector<8x1x8xf32>
    %143 = math.log1p %142 : vector<8x1x8xf32>
    %144 = arith.subf %140, %143 : vector<8x1x8xf32>
    %cst_52 = arith.constant 5.000000e-01 : f32
    %145 = vector.broadcast %cst_52 : f32 to vector<8x1x8xf32>
    %146 = arith.mulf %145, %144 : vector<8x1x8xf32>
    %147 = vector.broadcast %133 : vector<1x1x8xf32> to vector<8x1x8xf32>
    %148 = arith.mulf %147, %146 : vector<8x1x8xf32>
    %149 = arith.mulf %148, %130 : vector<8x1x8xf32>
    %150 = arith.mulf %85, %149 : vector<8x1x8xf32>
    %151 = arith.mulf %150, %112 : vector<8x1x8xf32>
    %152 = arith.mulf %151, %96 : vector<8x1x8xf32>
    %cst_53 = arith.constant dense<0.000000e+00> : vector<1x8xf32>
    %153 = vector.multi_reduction <add>, %152, %cst_53 [0] : vector<8x1x8xf32> to vector<1x8xf32>
    %154 = vector.broadcast %153 : vector<1x8xf32> to vector<32x8xf32>
    %155 = arith.mulf %154, %0 : vector<32x8xf32>
    %156 = vector.shape_cast %100 : vector<1x1x8xf32> to vector<1x8xf32>
    %157 = vector.broadcast %151 : vector<8x1x8xf32> to vector<8x32x8xf32>
    %158 = arith.mulf %157, %1 : vector<8x32x8xf32>
    %cst_54 = arith.constant dense<0.000000e+00> : vector<32x8xf32>
    %159 = vector.multi_reduction <add>, %158, %cst_54 [0] : vector<8x32x8xf32> to vector<32x8xf32>
    %160 = vector.broadcast %156 : vector<1x8xf32> to vector<32x8xf32>
    %161 = arith.mulf %160, %159 : vector<32x8xf32>
    %162 = arith.addf %155, %161 : vector<32x8xf32>
    %163 = arith.mulf %162, %162 : vector<32x8xf32>
    %cst_55 = arith.constant dense<0.000000e+00> : vector<8xf32>
    %164 = vector.multi_reduction <add>, %163, %cst_55 [0] : vector<32x8xf32> to vector<8xf32>
    %165 = vector.shape_cast %164 : vector<8xf32> to vector<1x8xf32>
    %cst_56 = arith.constant 1.000000e-30 : f32
    %166 = vector.broadcast %cst_56 : f32 to vector<1x8xf32>
    %167 = arith.maximumf %165, %166 : vector<1x8xf32>
    %168 = math.rsqrt %167 : vector<1x8xf32>
    %169 = arith.mulf %167, %168 : vector<1x8xf32>
    %cst_57 = arith.constant 5.000000e-01 : f32
    %170 = vector.broadcast %cst_57 : f32 to vector<1x8xf32>
    %171 = arith.mulf %170, %20 : vector<1x8xf32>
    %172 = arith.mulf %171, %169 : vector<1x8xf32>
    %173 = math.tanh %172 : vector<1x8xf32>
    %cst_58 = arith.constant 1.000000e+00 : f32
    %174 = vector.broadcast %cst_58 : f32 to vector<1x8xf32>
    %175 = arith.mulf %173, %174 : vector<1x8xf32>
    %176 = arith.mulf %175, %168 : vector<1x8xf32>
    %177 = vector.broadcast %176 : vector<1x8xf32> to vector<32x8xf32>
    %178 = arith.mulf %177, %162 : vector<32x8xf32>
    %179 = arith.mulf %178, %178 : vector<32x8xf32>
    %cst_59 = arith.constant dense<0.000000e+00> : vector<8xf32>
    %180 = vector.multi_reduction <add>, %179, %cst_59 [0] : vector<32x8xf32> to vector<8xf32>
    %181 = vector.shape_cast %180 : vector<8xf32> to vector<1x8xf32>
    %182 = arith.mulf %0, %178 : vector<32x8xf32>
    %cst_60 = arith.constant dense<0.000000e+00> : vector<8xf32>
    %183 = vector.multi_reduction <add>, %182, %cst_60 [0] : vector<32x8xf32> to vector<8xf32>
    %184 = vector.shape_cast %183 : vector<8xf32> to vector<1x8xf32>
    %cst_61 = arith.constant 2.000000e+00 : f32
    %185 = vector.broadcast %cst_61 : f32 to vector<1x8xf32>
    %186 = arith.mulf %185, %184 : vector<1x8xf32>
    %cst_62 = arith.constant 1.000000e+00 : f32
    %187 = vector.broadcast %cst_62 : f32 to vector<1x8xf32>
    %188 = arith.addf %187, %186 : vector<1x8xf32>
    %cst_63 = arith.constant 1.000000e+00 : f32
    %189 = vector.broadcast %cst_63 : f32 to vector<1x8xf32>
    %190 = arith.mulf %189, %181 : vector<1x8xf32>
    %191 = arith.addf %188, %190 : vector<1x8xf32>
    %192 = vector.broadcast %191 : vector<1x8xf32> to vector<32x8xf32>
    %193 = arith.mulf %192, %0 : vector<32x8xf32>
    %cst_64 = arith.constant 1.000000e+00 : f32
    %194 = vector.broadcast %cst_64 : f32 to vector<1x8xf32>
    %195 = arith.mulf %194, %7 : vector<1x8xf32>
    %cst_65 = arith.constant 1.000000e+00 : f32
    %196 = vector.broadcast %cst_65 : f32 to vector<1x8xf32>
    %197 = arith.subf %196, %195 : vector<1x8xf32>
    %198 = vector.broadcast %197 : vector<1x8xf32> to vector<32x8xf32>
    %199 = arith.mulf %198, %178 : vector<32x8xf32>
    %200 = arith.addf %193, %199 : vector<32x8xf32>
    %cst_66 = arith.constant 2.000000e+00 : f32
    %201 = vector.broadcast %cst_66 : f32 to vector<1x8xf32>
    %202 = arith.mulf %201, %184 : vector<1x8xf32>
    %cst_67 = arith.constant 1.000000e+00 : f32
    %203 = vector.broadcast %cst_67 : f32 to vector<1x8xf32>
    %204 = arith.addf %203, %202 : vector<1x8xf32>
    %cst_68 = arith.constant 1.000000e+00 : f32
    %205 = vector.broadcast %cst_68 : f32 to vector<1x8xf32>
    %206 = arith.mulf %205, %7 : vector<1x8xf32>
    %207 = arith.mulf %206, %181 : vector<1x8xf32>
    %208 = arith.addf %204, %207 : vector<1x8xf32>
    %cst_69 = arith.constant 1.000000e-15 : f32
    %209 = vector.broadcast %cst_69 : f32 to vector<1x8xf32>
    %210 = arith.maximumf %208, %209 : vector<1x8xf32>
    %211 = tpu.reciprocal %210 {approx = true} : vector<1x8xf32> -> vector<1x8xf32>
    %212 = vector.broadcast %211 : vector<1x8xf32> to vector<32x8xf32>
    %213 = arith.mulf %200, %212 : vector<32x8xf32>
    %214 = arith.mulf %213, %213 : vector<32x8xf32>
    %cst_70 = arith.constant dense<0.000000e+00> : vector<8xf32>
    %215 = vector.multi_reduction <add>, %214, %cst_70 [0] : vector<32x8xf32> to vector<8xf32>
    %216 = vector.shape_cast %215 : vector<8xf32> to vector<1x8xf32>
    %217 = arith.mulf %0, %213 : vector<32x8xf32>
    %cst_71 = arith.constant dense<0.000000e+00> : vector<8xf32>
    %218 = vector.multi_reduction <add>, %217, %cst_71 [0] : vector<32x8xf32> to vector<8xf32>
    %219 = vector.shape_cast %218 : vector<8xf32> to vector<1x8xf32>
    %cst_72 = arith.constant 2.000000e+00 : f32
    %220 = vector.broadcast %cst_72 : f32 to vector<1x8xf32>
    %221 = arith.mulf %220, %219 : vector<1x8xf32>
    %cst_73 = arith.constant 1.000000e+00 : f32
    %222 = vector.broadcast %cst_73 : f32 to vector<1x8xf32>
    %223 = arith.addf %222, %221 : vector<1x8xf32>
    %cst_74 = arith.constant 1.000000e+00 : f32
    %224 = vector.broadcast %cst_74 : f32 to vector<1x8xf32>
    %225 = arith.mulf %224, %216 : vector<1x8xf32>
    %226 = arith.addf %223, %225 : vector<1x8xf32>
    %227 = vector.broadcast %226 : vector<1x8xf32> to vector<32x8xf32>
    %228 = arith.mulf %227, %0 : vector<32x8xf32>
    %cst_75 = arith.constant 1.000000e+00 : f32
    %229 = vector.broadcast %cst_75 : f32 to vector<1x8xf32>
    %230 = arith.mulf %229, %7 : vector<1x8xf32>
    %cst_76 = arith.constant 1.000000e+00 : f32
    %231 = vector.broadcast %cst_76 : f32 to vector<1x8xf32>
    %232 = arith.subf %231, %230 : vector<1x8xf32>
    %233 = vector.broadcast %232 : vector<1x8xf32> to vector<32x8xf32>
    %234 = arith.mulf %233, %213 : vector<32x8xf32>
    %235 = arith.addf %228, %234 : vector<32x8xf32>
    %cst_77 = arith.constant 2.000000e+00 : f32
    %236 = vector.broadcast %cst_77 : f32 to vector<1x8xf32>
    %237 = arith.mulf %236, %219 : vector<1x8xf32>
    %cst_78 = arith.constant 1.000000e+00 : f32
    %238 = vector.broadcast %cst_78 : f32 to vector<1x8xf32>
    %239 = arith.addf %238, %237 : vector<1x8xf32>
    %cst_79 = arith.constant 1.000000e+00 : f32
    %240 = vector.broadcast %cst_79 : f32 to vector<1x8xf32>
    %241 = arith.mulf %240, %7 : vector<1x8xf32>
    %242 = arith.mulf %241, %216 : vector<1x8xf32>
    %243 = arith.addf %239, %242 : vector<1x8xf32>
    %cst_80 = arith.constant 1.000000e-15 : f32
    %244 = vector.broadcast %cst_80 : f32 to vector<1x8xf32>
    %245 = arith.maximumf %243, %244 : vector<1x8xf32>
    %246 = tpu.reciprocal %245 {approx = true} : vector<1x8xf32> -> vector<1x8xf32>
    %247 = vector.broadcast %246 : vector<1x8xf32> to vector<32x8xf32>
    %248 = arith.mulf %235, %247 : vector<32x8xf32>
    %249 = arith.mulf %248, %248 : vector<32x8xf32>
    %cst_81 = arith.constant dense<0.000000e+00> : vector<8xf32>
    %250 = vector.multi_reduction <add>, %249, %cst_81 [0] : vector<32x8xf32> to vector<8xf32>
    %251 = vector.shape_cast %250 : vector<8xf32> to vector<1x8xf32>
    %cst_82 = arith.constant 1.000000e-30 : f32
    %252 = vector.broadcast %cst_82 : f32 to vector<1x8xf32>
    %253 = arith.maximumf %251, %252 : vector<1x8xf32>
    %254 = math.rsqrt %253 : vector<1x8xf32>
    %255 = arith.mulf %253, %254 : vector<1x8xf32>
    %cst_83 = arith.constant dense<0.000000e+00> : vector<32x8xf32>
    %256 = tpu.matmul %3, %248, %cst_83 {dimension_numbers = #tpu.dot_dimension_numbers<[1], [0], [0], [1], [0, 0, 1, 1], [], []>} : vector<32x32xf32>, vector<32x8xf32>, vector<32x8xf32> -> vector<32x8xf32>
    %257 = arith.mulf %256, %256 : vector<32x8xf32>
    %cst_84 = arith.constant dense<0.000000e+00> : vector<8xf32>
    %258 = vector.multi_reduction <add>, %257, %cst_84 [0] : vector<32x8xf32> to vector<8xf32>
    %259 = vector.shape_cast %258 : vector<8xf32> to vector<1x8xf32>
    %cst_85 = arith.constant 1.000000e-30 : f32
    %260 = vector.broadcast %cst_85 : f32 to vector<1x8xf32>
    %261 = arith.maximumf %259, %260 : vector<1x8xf32>
    %262 = math.rsqrt %261 : vector<1x8xf32>
    %263 = arith.mulf %261, %262 : vector<1x8xf32>
    %264 = arith.mulf %263, %254 : vector<1x8xf32>
    %cst_86 = arith.constant 1.000000e+00 : f32
    %265 = vector.broadcast %cst_86 : f32 to vector<1x8xf32>
    %266 = arith.mulf %265, %255 : vector<1x8xf32>
    %cst_87 = arith.constant -0.999989986 : f32
    %cst_88 = arith.constant 0.999989986 : f32
    %267 = vector.broadcast %cst_87 : f32 to vector<1x8xf32>
    %268 = arith.maximumf %267, %266 : vector<1x8xf32>
    %269 = vector.broadcast %cst_88 : f32 to vector<1x8xf32>
    %270 = arith.minimumf %269, %268 : vector<1x8xf32>
    %271 = math.log1p %270 : vector<1x8xf32>
    %cst_89 = arith.constant 0.000000e+00 : f32
    %272 = vector.broadcast %cst_89 : f32 to vector<1x8xf32>
    %273 = arith.subf %272, %270 : vector<1x8xf32>
    %274 = math.log1p %273 : vector<1x8xf32>
    %275 = arith.subf %271, %274 : vector<1x8xf32>
    %cst_90 = arith.constant 5.000000e-01 : f32
    %276 = vector.broadcast %cst_90 : f32 to vector<1x8xf32>
    %277 = arith.mulf %276, %275 : vector<1x8xf32>
    %278 = arith.mulf %264, %277 : vector<1x8xf32>
    %279 = math.tanh %278 : vector<1x8xf32>
    %280 = arith.mulf %279, %262 : vector<1x8xf32>
    %cst_91 = arith.constant 1.000000e+00 : f32
    %281 = vector.broadcast %cst_91 : f32 to vector<1x8xf32>
    %282 = arith.mulf %280, %281 : vector<1x8xf32>
    %cst_92 = arith.constant 1.000000e-15 : f32
    %283 = vector.broadcast %cst_92 : f32 to vector<1x8xf32>
    %284 = arith.cmpf ole, %263, %283 : vector<1x8xf32>
    %285 = vector.broadcast %282 : vector<1x8xf32> to vector<32x8xf32>
    %286 = arith.mulf %285, %256 : vector<32x8xf32>
    %cst_93 = arith.constant 0.000000e+00 : f32
    %287 = vector.shape_cast %284 : vector<1x8xi1> to vector<1x8xi1>
    %288 = vector.broadcast %287 : vector<1x8xi1> to vector<32x8xi1>
    %289 = vector.broadcast %cst_93 : f32 to vector<32x8xf32>
    %290 = arith.select %288, %289, %286 : vector<32x8xi1>, vector<32x8xf32>
    %291 = arith.mulf %282, %263 : vector<1x8xf32>
    %cst_94 = arith.constant 1.000000e-15 : f32
    %292 = vector.broadcast %cst_94 : f32 to vector<1x8xf32>
    %293 = arith.maximumf %291, %292 : vector<1x8xf32>
    %cst_95 = arith.constant 0.995999991 : f32
    %294 = vector.broadcast %cst_95 : f32 to vector<1x8xf32>
    %295 = arith.cmpf ogt, %293, %294 : vector<1x8xf32>
    %296 = tpu.reciprocal %293 {approx = true} : vector<1x8xf32> -> vector<1x8xf32>
    %cst_96 = arith.constant 0.995999991 : f32
    %297 = vector.broadcast %cst_96 : f32 to vector<1x8xf32>
    %298 = arith.mulf %297, %296 : vector<1x8xf32>
    %299 = vector.broadcast %298 : vector<1x8xf32> to vector<32x8xf32>
    %300 = arith.mulf %290, %299 : vector<32x8xf32>
    %301 = vector.shape_cast %295 : vector<1x8xi1> to vector<1x8xi1>
    %302 = vector.broadcast %301 : vector<1x8xi1> to vector<32x8xi1>
    %303 = arith.select %302, %300, %290 : vector<32x8xi1>, vector<32x8xf32>
    %304 = arith.mulf %303, %303 : vector<32x8xf32>
    %cst_97 = arith.constant dense<0.000000e+00> : vector<8xf32>
    %305 = vector.multi_reduction <add>, %304, %cst_97 [0] : vector<32x8xf32> to vector<8xf32>
    %306 = vector.shape_cast %305 : vector<8xf32> to vector<1x8xf32>
    %307 = arith.mulf %4, %4 : vector<32x1xf32>
    %cst_98 = arith.constant dense<0.000000e+00> : vector<1xf32>
    %308 = vector.multi_reduction <add>, %307, %cst_98 [0] : vector<32x1xf32> to vector<1xf32>
    %309 = vector.shape_cast %308 : vector<1xf32> to vector<1x1xf32>
    %310 = vector.broadcast %4 : vector<32x1xf32> to vector<32x8xf32>
    %311 = arith.mulf %303, %310 : vector<32x8xf32>
    %cst_99 = arith.constant dense<0.000000e+00> : vector<8xf32>
    %312 = vector.multi_reduction <add>, %311, %cst_99 [0] : vector<32x8xf32> to vector<8xf32>
    %313 = vector.shape_cast %312 : vector<8xf32> to vector<1x8xf32>
    %cst_100 = arith.constant 2.000000e+00 : f32
    %314 = vector.broadcast %cst_100 : f32 to vector<1x8xf32>
    %315 = arith.mulf %314, %313 : vector<1x8xf32>
    %cst_101 = arith.constant 1.000000e+00 : f32
    %316 = vector.broadcast %cst_101 : f32 to vector<1x8xf32>
    %317 = arith.addf %316, %315 : vector<1x8xf32>
    %cst_102 = arith.constant 1.000000e+00 : f32
    %318 = vector.broadcast %cst_102 : f32 to vector<1x1xf32>
    %319 = arith.mulf %318, %309 : vector<1x1xf32>
    %320 = vector.broadcast %319 : vector<1x1xf32> to vector<1x8xf32>
    %321 = arith.addf %317, %320 : vector<1x8xf32>
    %322 = vector.broadcast %321 : vector<1x8xf32> to vector<32x8xf32>
    %323 = arith.mulf %322, %303 : vector<32x8xf32>
    %cst_103 = arith.constant 1.000000e+00 : f32
    %324 = vector.broadcast %cst_103 : f32 to vector<1x8xf32>
    %325 = arith.mulf %324, %306 : vector<1x8xf32>
    %cst_104 = arith.constant 1.000000e+00 : f32
    %326 = vector.broadcast %cst_104 : f32 to vector<1x8xf32>
    %327 = arith.subf %326, %325 : vector<1x8xf32>
    %328 = vector.broadcast %327 : vector<1x8xf32> to vector<32x8xf32>
    %329 = vector.broadcast %4 : vector<32x1xf32> to vector<32x8xf32>
    %330 = arith.mulf %328, %329 : vector<32x8xf32>
    %331 = arith.addf %323, %330 : vector<32x8xf32>
    %cst_105 = arith.constant 2.000000e+00 : f32
    %332 = vector.broadcast %cst_105 : f32 to vector<1x8xf32>
    %333 = arith.mulf %332, %313 : vector<1x8xf32>
    %cst_106 = arith.constant 1.000000e+00 : f32
    %334 = vector.broadcast %cst_106 : f32 to vector<1x8xf32>
    %335 = arith.addf %334, %333 : vector<1x8xf32>
    %cst_107 = arith.constant 1.000000e+00 : f32
    %336 = vector.broadcast %cst_107 : f32 to vector<1x8xf32>
    %337 = arith.mulf %336, %306 : vector<1x8xf32>
    %338 = vector.broadcast %309 : vector<1x1xf32> to vector<1x8xf32>
    %339 = arith.mulf %337, %338 : vector<1x8xf32>
    %340 = arith.addf %335, %339 : vector<1x8xf32>
    %cst_108 = arith.constant 1.000000e-15 : f32
    %341 = vector.broadcast %cst_108 : f32 to vector<1x8xf32>
    %342 = arith.maximumf %340, %341 : vector<1x8xf32>
    %343 = tpu.reciprocal %342 {approx = true} : vector<1x8xf32> -> vector<1x8xf32>
    %344 = vector.broadcast %343 : vector<1x8xf32> to vector<32x8xf32>
    %345 = arith.mulf %331, %344 : vector<32x8xf32>
    %346 = arith.mulf %345, %345 : vector<32x8xf32>
    %cst_109 = arith.constant dense<0.000000e+00> : vector<8xf32>
    %347 = vector.multi_reduction <add>, %346, %cst_109 [0] : vector<32x8xf32> to vector<8xf32>
    %348 = vector.shape_cast %347 : vector<8xf32> to vector<1x8xf32>
    %cst_110 = arith.constant 1.000000e-30 : f32
    %349 = vector.broadcast %cst_110 : f32 to vector<1x8xf32>
    %350 = arith.maximumf %348, %349 : vector<1x8xf32>
    %351 = math.rsqrt %350 : vector<1x8xf32>
    %352 = arith.mulf %350, %351 : vector<1x8xf32>
    %cst_111 = arith.constant 0.995999991 : f32
    %353 = vector.broadcast %cst_111 : f32 to vector<1x8xf32>
    %354 = arith.cmpf ogt, %352, %353 : vector<1x8xf32>
    %cst_112 = arith.constant 0.995999991 : f32
    %355 = vector.broadcast %cst_112 : f32 to vector<1x8xf32>
    %356 = arith.mulf %351, %355 : vector<1x8xf32>
    %357 = vector.broadcast %356 : vector<1x8xf32> to vector<32x8xf32>
    %358 = arith.mulf %345, %357 : vector<32x8xf32>
    %359 = vector.shape_cast %354 : vector<1x8xi1> to vector<1x8xi1>
    %360 = vector.broadcast %359 : vector<1x8xi1> to vector<32x8xi1>
    %361 = arith.select %360, %358, %345 : vector<32x8xi1>, vector<32x8xf32>
    %362 = arith.mulf %361, %361 : vector<32x8xf32>
    %cst_113 = arith.constant dense<0.000000e+00> : vector<8xf32>
    %363 = vector.multi_reduction <add>, %362, %cst_113 [0] : vector<32x8xf32> to vector<8xf32>
    %364 = vector.shape_cast %363 : vector<8xf32> to vector<1x8xf32>
    %cst_114 = arith.constant 1.000000e-30 : f32
    %365 = vector.broadcast %cst_114 : f32 to vector<1x8xf32>
    %366 = arith.maximumf %364, %365 : vector<1x8xf32>
    %367 = math.rsqrt %366 : vector<1x8xf32>
    %368 = arith.mulf %366, %367 : vector<1x8xf32>
    %cst_115 = arith.constant 1.000000e+00 : f32
    %369 = vector.broadcast %cst_115 : f32 to vector<1x8xf32>
    %370 = arith.mulf %369, %368 : vector<1x8xf32>
    %cst_116 = arith.constant -0.999989986 : f32
    %cst_117 = arith.constant 0.999989986 : f32
    %371 = vector.broadcast %cst_116 : f32 to vector<1x8xf32>
    %372 = arith.maximumf %371, %370 : vector<1x8xf32>
    %373 = vector.broadcast %cst_117 : f32 to vector<1x8xf32>
    %374 = arith.minimumf %373, %372 : vector<1x8xf32>
    %375 = math.log1p %374 : vector<1x8xf32>
    %cst_118 = arith.constant 0.000000e+00 : f32
    %376 = vector.broadcast %cst_118 : f32 to vector<1x8xf32>
    %377 = arith.subf %376, %374 : vector<1x8xf32>
    %378 = math.log1p %377 : vector<1x8xf32>
    %379 = arith.subf %375, %378 : vector<1x8xf32>
    %cst_119 = arith.constant 5.000000e-01 : f32
    %380 = vector.broadcast %cst_119 : f32 to vector<1x8xf32>
    %381 = arith.mulf %380, %379 : vector<1x8xf32>
    %382 = arith.mulf %381, %367 : vector<1x8xf32>
    %cst_120 = arith.constant 1.000000e+00 : f32
    %383 = vector.broadcast %cst_120 : f32 to vector<1x8xf32>
    %384 = arith.mulf %382, %383 : vector<1x8xf32>
    %385 = vector.broadcast %384 : vector<1x8xf32> to vector<32x8xf32>
    %386 = arith.mulf %385, %361 : vector<32x8xf32>
    %cst_121 = arith.constant 0.000000e+00 : f32
    %387 = vector.broadcast %cst_121 : f32 to vector<32x8xf32>
    %388 = arith.maximumf %386, %387 : vector<32x8xf32>
    %389 = arith.mulf %388, %388 : vector<32x8xf32>
    %cst_122 = arith.constant dense<0.000000e+00> : vector<8xf32>
    %390 = vector.multi_reduction <add>, %389, %cst_122 [0] : vector<32x8xf32> to vector<8xf32>
    %391 = vector.shape_cast %390 : vector<8xf32> to vector<1x8xf32>
    %cst_123 = arith.constant 1.000000e-30 : f32
    %392 = vector.broadcast %cst_123 : f32 to vector<1x8xf32>
    %393 = arith.maximumf %391, %392 : vector<1x8xf32>
    %394 = math.rsqrt %393 : vector<1x8xf32>
    %395 = arith.mulf %393, %394 : vector<1x8xf32>
    %cst_124 = arith.constant 1.000000e+00 : f32
    %396 = vector.broadcast %cst_124 : f32 to vector<1x8xf32>
    %397 = arith.mulf %396, %395 : vector<1x8xf32>
    %398 = math.tanh %397 : vector<1x8xf32>
    %399 = arith.mulf %398, %394 : vector<1x8xf32>
    %cst_125 = arith.constant 1.000000e+00 : f32
    %400 = vector.broadcast %cst_125 : f32 to vector<1x8xf32>
    %401 = arith.mulf %399, %400 : vector<1x8xf32>
    %402 = vector.broadcast %401 : vector<1x8xf32> to vector<32x8xf32>
    %403 = arith.mulf %402, %388 : vector<32x8xf32>
    %c0_126 = arith.constant 0 : index
    %c0_127 = arith.constant 0 : index
    %404 = vector.load %arg6[%c0_126, %c0_127] : memref<32x8xf32, #tpu.memory_space<vmem>>, vector<32x8xf32>
    tpu.vector_store %arg6[%c0_126, %c0_127], %403 {strides = array<i32>} : memref<32x8xf32, #tpu.memory_space<vmem>>, vector<32x8xf32>,
    return
  }
  func.func @transform_0(%arg0: i32) -> (i32, i32) {
    %c0_i32 = arith.constant 0 : i32
    %c0_i32_0 = arith.constant 0 : i32
    return %c0_i32, %arg0 : i32, i32
  }
  func.func @transform_1(%arg0: i32) -> (i32, i32, i32) {
    %c0_i32 = arith.constant 0 : i32
    %c0_i32_0 = arith.constant 0 : i32
    %c0_i32_1 = arith.constant 0 : i32
    return %c0_i32, %c0_i32_0, %arg0 : i32, i32, i32
  }
  func.func @transform_2(%arg0: i32) -> (i32, i32) {
    %c0_i32 = arith.constant 0 : i32
    %c0_i32_0 = arith.constant 0 : i32
    %c0_i32_1 = arith.constant 0 : i32
    return %c0_i32, %c0_i32_0 : i32, i32
  }
  func.func @transform_3(%arg0: i32) -> (i32, i32) {
    %c0_i32 = arith.constant 0 : i32
    %c0_i32_0 = arith.constant 0 : i32
    %c0_i32_1 = arith.constant 0 : i32
    return %c0_i32, %c0_i32_0 : i32, i32
  }
  func.func @transform_4(%arg0: i32) -> (i32, i32) {
    %c0_i32 = arith.constant 0 : i32
    %c0_i32_0 = arith.constant 0 : i32
    %c0_i32_1 = arith.constant 0 : i32
    return %c0_i32, %c0_i32_0 : i32, i32
  }
  func.func @transform_5(%arg0: i32) -> (i32, i32) {
    %c0_i32 = arith.constant 0 : i32
    %c0_i32_0 = arith.constant 0 : i32
    return %c0_i32, %arg0 : i32, i32
  }
}

</mosaic_0001>

<bundles_post_ra>
// kernel: tpu_custom_call.1
= control target key start
LH: loop header
LB: loop body
LE: loop exit
PB: predicated region body
PF: predicated region fallthrough
CT: control target
= control target key end

     0   :  { %vm4505_vm0 = vcmask 64512   ;;  %vm4504_vm6 = vcmask 261120   ;;  %s4475_s0 = inlined_call_operand.vmem [shape: f32[32,8], index: 0, kind: input, shape index: {}]   ;;  %s4476_s2 = inlined_call_operand.vmem [shape: f32[32,32], index: 2, kind: input, shape index: {}]   ;;  %s4477_s1 = inlined_call_operand.vmem [shape: f32[8,32,8], index: 1, kind: input, shape index: {}]   ;;  %s4478_s4 = inlined_call_operand.vmem [shape: f32[32,1], index: 4, kind: input, shape index: {}]   ;;  %s4479_s3 = inlined_call_operand.vmem [shape: f32[32,32], index: 3, kind: input, shape index: {}]   ;;  %s4480_s5 = inlined_call_operand.vmem [shape: f32[32,8], index: 5, kind: output, shape index: {}]  }
   0x1   :  { %v2368_v0 = vld [vmem:[%s4475_s0] sm:$0xff]  ;;  %v2373_v1 = vld [vmem:[%s4475_s0 + $0x8] sm:$0xff]  ;;  %v2378_v2 = vld [vmem:[%s4475_s0 + $0x10] sm:$0xff] }
   0x2   :  { %v2383_v3 = vld [vmem:[%s4475_s0 + $0x18] sm:$0xff]  ;;  %v68_v4 = vmul.f32 %v2368_v0, %v2368_v0  ;;  %v69_v5 = vmul.f32 %v2373_v1, %v2373_v1  ;;  %v70_v6 = vmul.f32 %v2378_v2, %v2378_v2  ;;  %v56_v55 = vld [vmem:[%s4476_s2] sm:$0xff]  ;;  %v58_v56 = vld [vmem:[%s4476_s2 + $0x10] sm:$0xff] }
   0x3   :  { %v71_v7 = vmul.f32 %v2383_v3, %v2383_v3  ;;  %v57_v57 = vld [vmem:[%s4476_s2 + $0x8] sm:$0xff]  ;;  %v59_v58 = vld [vmem:[%s4476_s2 + $0x18] sm:$0xff]  ;;  %v2423_v59 = vld [vmem:[%s4477_s1] sm:$0xff] }
   0x4   :  { %v73_v8 = vsel %vm4505_vm0, %v68_v4, 0.0  ;;  %v74_v9 = vsel %vm4505_vm0, %v69_v5, 0.0  ;;  %v76_v10 = vsel %vm4505_vm0, %v70_v6, 0.0  ;;  %4557 = vst [vmem:[#allocation3_spill] sm:$0xff] %v2423_v59  ;;  %v2428_v60 = vld [vmem:[%s4477_s1 + $0x20] sm:$0xff]  ;;  %v2458_v6 = vld [vmem:[%s4477_s1 + $0x8] sm:$0xff] }
   0x5   :  { %v75_v11 = vadd.f32 %v74_v9, %v73_v8  ;;  %v78_v12 = vsel %vm4505_vm0, %v71_v7, 0.0  ;;  %4558 = vst [vmem:[#allocation4_spill] sm:$0xff] %v2428_v60  ;;  %v2433_v61 = vld [vmem:[%s4477_s1 + $0x40] sm:$0xff]  ;;  %v2463_v7 = vld [vmem:[%s4477_s1 + $0x28] sm:$0xff]  ;;  %v130_v9 = vmul.f32 %v2423_v59, %v2423_v59 }
   0x6   :  { %4559 = vst [vmem:[#allocation5_spill] sm:$0xff] %v2433_v61  ;;  %v2438_v62 = vld [vmem:[%s4477_s1 + $0x60] sm:$0xff] }
   0x7   :  { %v77_v13 = vadd.f32 %v76_v10, %v75_v11  ;;  %4560 = vst [vmem:[#allocation6_spill] sm:$0xff] %v2438_v62  ;;  %v2443_v63 = vld [vmem:[%s4477_s1 + $0x80] sm:$0xff]  ;;  %v134_v10 = vmul.f32 %v2428_v60, %v2428_v60  ;;  %v2477_v11 = vld [vmem:[%s4477_s1 + $0x48] sm:$0xff] }
   0x8   :  { %4561 = vst [vmem:[#allocation7_spill] sm:$0xff] %v2443_v63  ;;  %v2448_v4 = vld [vmem:[%s4477_s1 + $0xa0] sm:$0xff] }
   0x9   :  { %v79_v14 = vadd.f32 %v78_v12, %v77_v13  ;;  %4562 = vst [vmem:[#allocation8_spill] sm:$0xff] %v2448_v4  ;;  %v2453_v5 = vld [vmem:[%s4477_s1 + $0xc0] sm:$0xff]  ;;  %v138_v12 = vmul.f32 %v2433_v61, %v2433_v61  ;;  %v142_v13 = vmul.f32 %v2438_v62, %v2438_v62 }
   0xa   :  { %4563 = vst [vmem:[#allocation9_spill] sm:$0xff] %v2453_v5  ;;  %v2468_v8 = vld [vmem:[%s4477_s1 + $0xe0] sm:$0xff] }
   0xb   :  { %v80_v15 = vrot.slane %v79_v14, 4 }
   0xd   :  { %v81_v16 = vadd.f32 %v80_v15, %v79_v14  ;;  %v146_v14 = vmul.f32 %v2443_v63, %v2443_v63  ;;  %v2487_v15 = vmul.f32 %v2423_v59, %v2368_v0 }
   0xf   :  { %v82_v17 = vrot.slane %v81_v16, 2 }
  0x11   :  { %v83_v18 = vadd.f32 %v82_v17, %v81_v16  ;;  %v2492_v16 = vld [vmem:[%s4477_s1 + $0x10] sm:$0xff] }
  0x12   :  { %v2497_v17 = vld [vmem:[%s4477_s1 + $0x30] sm:$0xff] }
  0x13   :  { %v84_v19 = vrot.slane %v83_v18, 1 }
  0x15   :  { %v2397_v20 = vadd.f32 %v84_v19, %v83_v18  ;;  %v150_v18 = vmul.f32 %v2448_v4, %v2448_v4  ;;  %v2503_v19 = vmul.f32 %v2453_v5, %v2453_v5 }
  0x17   :  { %4556 = vst [vmem:[#allocation2_spill] sm:$0xff] %v2397_v20  ;;  %v86_v21 = vmax.f32 %v2397_v20, 1e-30  ;;  %v227_v20 = vsel %vm4505_vm0, %v150_v18, 0.0 }
  0x19   :  { %2119 = vrsqrt.f32 %v86_v21  ;;  %vm93_vm1 = vweird.f32 %v86_v21 }
  0x1f   :  { %v2120_v22 = vpop.eup %2119 }
  0x20   :  { %v88_v23 = vmul.f32 %v2120_v22, %v86_v21  ;;  %vm94_vm2 = vweird.f32 %v2120_v22 }
  0x21   :  { %vm95_vm3 = vmor %vm93_vm1, %vm94_vm2 }
  0x22   :  { %v89_v24 = vmul.f32 %v2120_v22, %v88_v23  ;;  %v2518_v23 = vld [vmem:[%s4477_s1 + $0x68] sm:$0xff] }
  0x23   :  { %4566 = vst [vmem:[#allocation12_spill] sm:$0xff] %v2518_v23 }
  0x24   :  { %v90_v25 = vmul.f32 0.5, %v89_v24  ;;  %v131_v24 = vmul.f32 %v2458_v6, %v2458_v6 }
  0x26   :  { %v91_v26 = vsub.f32 1.5, %v90_v25  ;;  %v135_v25 = vmul.f32 %v2463_v7, %v2463_v7 }
  0x28   :  { %v92_v27 = vmul.f32 %v2120_v22, %v91_v26  ;;  %v2526_v26 = vmul.f32 %v2468_v8, %v2468_v8 }
  0x2a   :  { %v96_v28 = vsel %vm95_vm3, %v2120_v22, %v92_v27  ;;  %v2513_v22 = vld [vmem:[%s4477_s1 + $0x70] sm:$0xff]  ;;  %v2530_v27 = vmul.f32 %v2428_v60, %v2368_v0 }
  0x2b   :  { %v97_v29 = vmul.f32 %v96_v28, %v86_v21  ;;  %v2508_v21 = vld [vmem:[%s4477_s1 + $0x50] sm:$0xff]  ;;  %4565 = vst [vmem:[#allocation11_spill] sm:$0xff] %v2513_v22 }
  0x2c   :  { %4564 = vst [vmem:[#allocation10_spill] sm:$0xff] %v2508_v21 }
  0x2d   :  { %v2080_v30 = vclamps-f32 %v97_v29, 0.99999  ;;  %v139_v29 = vmul.f32 %v2477_v11, %v2477_v11 }
  0x2f   :  { %v104_v31 = vadd.f32 1.0, %v2080_v30  ;;  %v107_v32 = vmul.f32 -0.5, %v2080_v30  ;;  %v113_v33 = vsub.f32 0.0, %v2080_v30  ;;  %v110_v37 = vand.u32 2147483647, %v2080_v30 }
  0x31   :  { %2121 = vlog2.f32 %v104_v31  ;;  %v114_v34 = vadd.f32 1.0, %v113_v33  ;;  %v108_v35 = vadd.f32 1.0, %v107_v32  ;;  %v117_v36 = vmul.f32 -0.5, %v113_v33 }
  0x32   :  { %v120_v39 = vand.u32 2147483647, %v113_v33  ;;  %vm111_vm4 = vcmp.lt.f32.partialorder %v110_v37, 0.0004427343  ;;  %v2543_v31 = vmul.f32 %v2433_v61, %v2368_v0  ;;  %v2547_v32 = vmul.f32 %v2438_v62, %v2368_v0 }
  0x33   :  { %2123 = vlog2.f32 %v114_v34  ;;  %v118_v38 = vadd.f32 1.0, %v117_v36  ;;  %v109_v40 = vmul.f32 %v2080_v30, %v108_v35  ;;  %v143_v30 = vmul.f32 %v2518_v23, %v2518_v23  ;;  %v2558_v35 = vld [vmem:[%s4477_s1 + $0x90] sm:$0xff] }
  0x34   :  { %vm121_vm5 = vcmp.lt.f32.partialorder %v120_v39, 0.0004427343  ;;  %4568 = vst [vmem:[#allocation14_spill] sm:$0xff] %v2558_v35  ;;  %v132_v36 = vmul.f32 %v2492_v16, %v2492_v16  ;;  %v136_v37 = vmul.f32 %v2497_v17, %v2497_v17  ;;  %v144_v39 = vmul.f32 %v2513_v22, %v2513_v22 }
  0x35   :  { %v119_v43 = vmul.f32 %v118_v38, %v113_v33  ;;  %v2551_v33 = vmul.f32 %v2443_v63, %v2368_v0  ;;  %v140_v38 = vmul.f32 %v2508_v21, %v2508_v21 }
  0x37   :  { %v2122_v41 = vpop.eup %2121 }
  0x38   :  { %v106_v42 = vmul.f32 0.6931472, %v2122_v41  ;;  %v2576_v41 = vld [vmem:[%s4477_s1 + $0xb0] sm:$0xff] }
  0x39   :  { %v2124_v44 = vpop.eup %2123  ;;  %4570 = vst [vmem:[#allocation16_spill] sm:$0xff] %v2576_v41 }
  0x3a   :  { %v112_v45 = vsel %vm111_vm4, %v109_v40, %v106_v42  ;;  %v116_v46 = vmul.f32 0.6931472, %v2124_v44  ;;  %v2571_v40 = vld [vmem:[%s4477_s1 + $0xa8] sm:$0xff]  ;;  %v163_v44 = vsel %vm4505_vm0, %v131_v24, 0.0 }
  0x3b   :  { %4569 = vst [vmem:[#allocation15_spill] sm:$0xff] %v2571_v40  ;;  %v2581_v42 = vld [vmem:[%s4477_s1 + $0xc8] sm:$0xff] }
  0x3c   :  { %v122_v47 = vsel %vm121_vm5, %v119_v43, %v116_v46  ;;  %4571 = vst [vmem:[#allocation17_spill] sm:$0xff] %v2581_v42  ;;  %v162_v43 = vsel %vm4505_vm0, %v130_v9, 0.0  ;;  %v176_v46 = vsel %vm4505_vm0, %v135_v25, 0.0  ;;  %v152_v9 = vmul.f32 %v2576_v41, %v2576_v41 }
  0x3d   :  { %v123_v48 = vsub.f32 %v112_v45, %v122_v47  ;;  %v175_v45 = vsel %vm4505_vm0, %v134_v10, 0.0  ;;  %v188_v47 = vsel %vm4505_vm0, %v138_v12, 0.0  ;;  %v155_v10 = vmul.f32 %v2581_v42, %v2581_v42 }
  0x3e   :  { %v164_v12 = vadd.f32 %v163_v44, %v162_v43 }
  0x3f   :  { %v124_v49 = vmul.f32 0.5, %v123_v48  ;;  %v189_v48 = vsel %vm4505_vm0, %v139_v29, 0.0 }
  0x40   :  { %v190_v24 = vadd.f32 %v189_v48, %v188_v47  ;;  %v165_v47 = vsel %vm4505_vm0, %v132_v36, 0.0  ;;  %v204_v36 = vsel %vm4505_vm0, %v144_v39, 0.0 }
  0x41   :  { %v125_v50 = vmul.f32 %v124_v49, %v96_v28  ;;  %v2535_v28 = vld [vmem:[%s4477_s1 + $0x88] sm:$0xff]  ;;  %v201_v49 = vsel %vm4505_vm0, %v142_v13, 0.0  ;;  %v177_v13 = vadd.f32 %v176_v46, %v175_v45  ;;  %v166_v18 = vadd.f32 %v165_v47, %v164_v12 }
  0x42   :  { %4567 = vst [vmem:[#allocation13_spill] sm:$0xff] %v2535_v28  ;;  %v147_v34 = vmul.f32 %v2535_v28, %v2535_v28 }
  0x43   :  { %v129_v51 = vmul.f32 %v125_v50, %v2383_v3  ;;  %v128_v52 = vmul.f32 %v125_v50, %v2378_v2  ;;  %v127_v53 = vmul.f32 %v125_v50, %v2373_v1  ;;  %v126_v54 = vmul.f32 %v125_v50, %v2368_v0 }
  0x44   :  { %v202_v50 = vsel %vm4505_vm0, %v143_v30, 0.0 }
  0x45   :  { %715 = vmatpush.msra.mxu0 %v129_v51  ;;  %2107 = vmatpush.msra.mxu2 %v129_v51  ;;  %v2594_v51 = vld [vmem:[%s4477_s1 + $0x18] sm:$0xff]  ;;  %v203_v25 = vadd.f32 %v202_v50, %v201_v49  ;;  %v2643_v49 = vld [vmem:[%s4477_s1 + $0xe8] sm:$0xff]  ;;  %v178_v50 = vsel %vm4505_vm0, %v136_v37, 0.0 }
  0x46   :  { %v133_v29 = vmul.f32 %v2594_v51, %v2594_v51  ;;  %4572 = vst [vmem:[#allocation18_spill] sm:$0xff] %v2643_v49  ;;  %v159_v39 = vmul.f32 %v2643_v49, %v2643_v49 }
  0x47   :  { %716 = vmatpush.msra.mxu0 %v128_v52  ;;  %2108 = vmatpush.msra.mxu2 %v128_v52  ;;  %v2599_v52 = vld [vmem:[%s4477_s1 + $0x38] sm:$0xff]  ;;  %v205_v60 = vadd.f32 %v204_v36, %v203_v25 }
  0x48   :  { %v137_v30 = vmul.f32 %v2599_v52, %v2599_v52  ;;  %v167_v48 = vsel %vm4505_vm0, %v133_v29, 0.0  ;;  %v2653_v29 = vld [vmem:[%s4477_s1 + $0xb8] sm:$0xff] }
  0x49   :  { %717 = vmatpush.msra.mxu0 %v127_v53  ;;  %2109 = vmatpush.msra.mxu2 %v127_v53  ;;  %v148_v53 = vmul.f32 %v2558_v35, %v2558_v35  ;;  %v168_v61 = vadd.f32 %v167_v48, %v166_v18  ;;  %v2675_v48 = vmul.f32 %v2453_v5, %v2368_v0 }
  0x4a   :  { %v153_v18 = vmul.f32 %v2653_v29, %v2653_v29 }
  0x4b   :  { %718 = vmatpush.msra.mxu0 %v126_v54  ;;  %2110 = vmatpush.msra.mxu2 %v126_v54  ;;  %v151_v54 = vmul.f32 %v2571_v40, %v2571_v40  ;;  %v217_v37 = vsel %vm4505_vm0, %v148_v53, 0.0 }
  0x4c   :  { %2089 = vmatmul.msk.f32.vlgmr.msra.gmra.mxu0 %vm4504_vm6, %v56_v55  ;;  %2091 = vmatmul.msk.f32.vlgmr.msra.gmra.mxu2 %vm4504_vm6, %v58_v56  ;;  %v214_v55 = vsel %vm4505_vm0, %v146_v14, 0.0  ;;  %v215_v56 = vsel %vm4505_vm0, %v147_v34, 0.0  ;;  %v2624_v14 = vld [vmem:[%s4477_s1 + $0x98] sm:$0xff] }
  0x4d   :  { %v216_v34 = vadd.f32 %v215_v56, %v214_v55  ;;  %v228_v45 = vsel %vm4505_vm0, %v151_v54, 0.0  ;;  %v149_v46 = vmul.f32 %v2624_v14, %v2624_v14  ;;  %v180_v55 = vsel %vm4505_vm0, %v137_v30, 0.0 }
  0x4e   :  { %v191_v56 = vsel %vm4505_vm0, %v140_v38, 0.0  ;;  %v179_v54 = vadd.f32 %v178_v50, %v177_v13  ;;  %v2659_v38 = vmul.f32 %v2448_v4, %v2368_v0  ;;  %v2664_v13 = vld [vmem:[%s4477_s1 + $0xd0] sm:$0xff]  ;;  %v229_v53 = vadd.f32 %v228_v45, %v227_v20  ;;  %v2699_v45 = vld [vmem:[%s4477_s1 + $0xf8] sm:$0xff] }
  0x4f   :  { %v192_v63 = vadd.f32 %v191_v56, %v190_v24  ;;  %4573 = vst [vmem:[#allocation19_spill] sm:$0xff] %v2664_v13  ;;  %v2671_v24 = vld [vmem:[%s4477_s1 + $0xd8] sm:$0xff]  ;;  %v218_v47 = vadd.f32 %v217_v37, %v216_v34  ;;  %v219_v50 = vsel %vm4505_vm0, %v149_v46, 0.0  ;;  %v230_v56 = vsel %vm4505_vm0, %v152_v9, 0.0 }
  0x50   :  { %4574 = vst [vmem:[#allocation20_spill] sm:$0xff] %v2671_v24  ;;  %v181_v25 = vadd.f32 %v180_v55, %v179_v54  ;;  %v2684_v55 = vld [vmem:[%s4477_s1 + $0xf0] sm:$0xff]  ;;  %v156_v20 = vmul.f32 %v2664_v13, %v2664_v13  ;;  %v253_v34 = vsel %vm4505_vm0, %v2526_v26, 0.0  ;;  %v254_v9 = vsel %vm4505_vm0, %v159_v39, 0.0 }
  0x51   :  { %4575 = vst [vmem:[#allocation21_spill] sm:$0xff] %v2684_v55  ;;  %v231_v37 = vadd.f32 %v230_v56, %v229_v53  ;;  %v160_v5 = vmul.f32 %v2684_v55, %v2684_v55  ;;  %v232_v39 = vsel %vm4505_vm0, %v153_v18, 0.0  ;;  %v255_v4 = vadd.f32 %v254_v9, %v253_v34 }
  0x52   :  { %v182_v46 = vrot.slane %v181_v25, 4  ;;  %v161_v59 = vmul.f32 %v2699_v45, %v2699_v45  ;;  %v267_v53 = vmul.f32 %v2458_v6, %v2373_v1  ;;  %v2723_v9 = vmul.f32 %v2492_v16, %v2378_v2 }
  0x53   :  { %v256_v34 = vsel %vm4505_vm0, %v160_v5, 0.0 }
  0x54   :  { %2090 = vmatmul.msk.f32.gmra.mxu0 %vm4504_vm6, %v57_v57  ;;  %2092 = vmatmul.msk.f32.gmra.mxu2 %vm4504_vm6, %v59_v58  ;;  %v2610_v57 = vld [vmem:[%s4477_s1 + $0x58] sm:$0xff]  ;;  %v299_v5 = vsel %vm4505_vm0, %v267_v53, 0.0  ;;  %v291_v53 = vmul.f32 %v2581_v42, %v2373_v1 }
  0x55   :  { %v2615_v58 = vld [vmem:[%s4477_s1 + $0x78] sm:$0xff]  ;;  %v141_v43 = vmul.f32 %v2610_v57, %v2610_v57 }
  0x56   :  { %v145_v44 = vmul.f32 %v2615_v58, %v2615_v58 }
  0x57   :  { %v193_v62 = vsel %vm4505_vm0, %v141_v43, 0.0  ;;  %v169_v43 = vrot.slane %v168_v61, 4 }
  0x58   :  { %v206_v12 = vsel %vm4505_vm0, %v145_v44, 0.0  ;;  %v194_v30 = vadd.f32 %v193_v62, %v192_v63  ;;  %v241_v62 = vsel %vm4505_vm0, %v155_v10, 0.0  ;;  %v157_v63 = vmul.f32 %v2671_v24, %v2671_v24 }
  0x59   :  { %v207_v44 = vadd.f32 %v206_v12, %v205_v60  ;;  %v240_v60 = vsel %vm4505_vm0, %v2503_v19, 0.0  ;;  %v170_v36 = vadd.f32 %v169_v43, %v168_v61  ;;  %v220_v19 = vadd.f32 %v219_v50, %v218_v47 }
  0x5a   :  { %v195_v54 = vrot.slane %v194_v30, 4  ;;  %v294_v10 = vmul.f32 %v2468_v8, %v2368_v0  ;;  %v242_v26 = vadd.f32 %v241_v62, %v240_v60  ;;  %v243_v24 = vsel %vm4505_vm0, %v156_v20, 0.0 }
  0x5b   :  { %v208_v12 = vrot.slane %v207_v44, 4  ;;  %v245_v61 = vsel %vm4505_vm0, %v157_v63, 0.0  ;;  %v271_v0 = vmul.f32 %v2463_v7, %v2373_v1  ;;  %v183_v43 = vadd.f32 %v182_v46, %v181_v25 }
  0x5c   :  { %v196_v47 = vadd.f32 %v195_v54, %v194_v30  ;;  %v171_v50 = vrot.slane %v170_v36, 2  ;;  %v221_v18 = vrot.slane %v220_v19, 4  ;;  %v233_v60 = vadd.f32 %v232_v39, %v231_v37 }
  0x5d   :  { %v2714_v56 = vadd.f32 %v208_v12, %v207_v44  ;;  %v275_v62 = vmul.f32 %v2477_v11, %v2373_v1  ;;  %v279_v20 = vmul.f32 %v2518_v23, %v2373_v1  ;;  %v244_v63 = vadd.f32 %v243_v24, %v242_v26 }
  0x5e   :  { %v2727_v25 = vmul.f32 %v2497_v17, %v2378_v2  ;;  %v2731_v30 = vmul.f32 %v2508_v21, %v2378_v2  ;;  %v283_v44 = vmul.f32 %v2535_v28, %v2373_v1  ;;  %v298_v24 = vsel %vm4505_vm0, %v2487_v15, 0.0 }
  0x5f   :  { %v311_v46 = vsel %vm4505_vm0, %v2530_v27, 0.0  ;;  %v312_v54 = vsel %vm4505_vm0, %v271_v0, 0.0  ;;  %v2743_v12 = vmul.f32 %v2513_v22, %v2378_v2  ;;  %v2747_v37 = vmul.f32 %v2558_v35, %v2378_v2 }
  0x60   :  { %v2751_v26 = vmul.f32 %v2576_v41, %v2378_v2  ;;  %v2755_v15 = vmul.f32 %v2664_v13, %v2378_v2  ;;  %v2759_v27 = vmul.f32 %v2684_v55, %v2378_v2  ;;  %v287_v39 = vmul.f32 %v2571_v40, %v2373_v1 }
  0x61   :  { %v295_v0 = vmul.f32 %v2643_v49, %v2373_v1  ;;  %v300_v35 = vadd.f32 %v299_v5, %v298_v24  ;;  %v313_v41 = vadd.f32 %v312_v54, %v311_v46  ;;  %v324_v28 = vsel %vm4505_vm0, %v2543_v31, 0.0 }
  0x62   :  { %v325_v13 = vsel %vm4505_vm0, %v275_v62, 0.0  ;;  %v337_v2 = vsel %vm4505_vm0, %v2547_v32, 0.0  ;;  %v338_v55 = vsel %vm4505_vm0, %v279_v20, 0.0  ;;  %v350_v40 = vsel %vm4505_vm0, %v2551_v33, 0.0 }
  0x63   :  { %v351_v42 = vsel %vm4505_vm0, %v283_v44, 0.0  ;;  %v172_v22 = vadd.f32 %v171_v50, %v170_v36  ;;  %v184_v21 = vrot.slane %v183_v43, 2  ;;  %v234_v1 = vrot.slane %v233_v60, 4 }
  0x64   :  { %v246_v24 = vadd.f32 %v245_v61, %v244_v63  ;;  %v363_v5 = vsel %vm4505_vm0, %v2659_v38, 0.0  ;;  %v364_v31 = vsel %vm4505_vm0, %v287_v39, 0.0  ;;  %v197_v62 = vrot.slane %v196_v47, 2 }
  0x65   :  { %v257_v46 = vadd.f32 %v256_v34, %v255_v4  ;;  %v376_v32 = vsel %vm4505_vm0, %v2675_v48, 0.0  ;;  %v222_v20 = vadd.f32 %v221_v18, %v220_v19  ;;  %v235_v54 = vadd.f32 %v234_v1, %v233_v60 }
  0x66   :  { %v247_v49 = vrot.slane %v246_v24, 4  ;;  %v377_v33 = vsel %vm4505_vm0, %v291_v53, 0.0  ;;  %v389_v36 = vsel %vm4505_vm0, %v294_v10, 0.0  ;;  %v390_v50 = vsel %vm4505_vm0, %v295_v0, 0.0 }
  0x67   :  { %v258_v61 = vsel %vm4505_vm0, %v161_v59, 0.0  ;;  %v173_v63 = vrot.slane %v172_v22, 1  ;;  %v2785_v38 = vadd.f32 %v184_v21, %v183_v43  ;;  %v210_v44 = vrot.slane %v2714_v56, 2 }
  0x68   :  { %v259_v4 = vadd.f32 %v258_v61, %v257_v46  ;;  %v326_v34 = vadd.f32 %v325_v13, %v324_v28  ;;  %v339_v39 = vadd.f32 %v338_v55, %v337_v2  ;;  %v2788_v48 = vadd.f32 %v197_v62, %v196_v47 }
  0x69   :  { %v248_v19 = vadd.f32 %v247_v49, %v246_v24  ;;  %v352_v18 = vadd.f32 %v351_v42, %v350_v40  ;;  %v365_v60 = vadd.f32 %v364_v31, %v363_v5  ;;  %v223_v53 = vrot.slane %v222_v20, 2 }
  0x6a   :  { %v236_v1 = vrot.slane %v235_v54, 2  ;;  %v378_v10 = vadd.f32 %v377_v33, %v376_v32  ;;  %v2790_v23 = vadd.f32 %v390_v50, %v389_v36  ;;  %v269_v59 = vmul.f32 %v2594_v51, %v2383_v3  ;;  %v4577_v36 = vld [vmem:[#allocation20_spill] sm:$0xff] }
  0x6b   :  { %v273_v21 = vmul.f32 %v2599_v52, %v2383_v3  ;;  %v2796_v43 = vadd.f32 %v173_v63, %v172_v22  ;;  %v186_v28 = vrot.slane %v2785_v38, 1  ;;  %v2800_v13 = vadd.f32 %v210_v44, %v2714_v56 }
  0x6c   :  { %v260_v40 = vrot.slane %v259_v4, 4  ;;  %v199_v42 = vrot.slane %v2788_v48, 1  ;;  %v249_v49 = vrot.slane %v248_v19, 2  ;;  %v277_v55 = vmul.f32 %v2610_v57, %v2383_v3 }
  0x6d   :  { %4576 = vst [vmem:[#allocation22_spill] sm:$0xff] %v2796_v43  ;;  %v301_v47 = vsel %vm4505_vm0, %v2723_v9, 0.0  ;;  %v2807_v0 = vadd.f32 %v223_v53, %v222_v20  ;;  %v2809_v52 = vadd.f32 %v236_v1, %v235_v54  ;;  %v281_v22 = vmul.f32 %v2615_v58, %v2383_v3 }
  0x6e   :  { %v302_v2 = vadd.f32 %v301_v47, %v300_v35  ;;  %v303_v56 = vsel %vm4505_vm0, %v269_v59, 0.0  ;;  %v314_v24 = vsel %vm4505_vm0, %v2727_v25, 0.0  ;;  %v316_v5 = vsel %vm4505_vm0, %v273_v21, 0.0 }
  0x6f   :  { %v327_v57 = vsel %vm4505_vm0, %v2731_v30, 0.0  ;;  %v261_v31 = vadd.f32 %v260_v40, %v259_v4  ;;  %v285_v9 = vmul.f32 %v2624_v14, %v2383_v3  ;;  %v315_v46 = vadd.f32 %v314_v24, %v313_v41 }
  0x70   :  { %v304_v62 = vadd.f32 %v303_v56, %v302_v2  ;;  %v2821_v32 = vadd.f32 %v249_v49, %v248_v19  ;;  %v328_v58 = vadd.f32 %v327_v57, %v326_v34  ;;  %v329_v35 = vsel %vm4505_vm0, %v277_v55, 0.0 }
  0x71   :  { %v340_v20 = vsel %vm4505_vm0, %v2743_v12, 0.0  ;;  %v289_v25 = vmul.f32 %v2653_v29, %v2383_v3  ;;  %v317_v33 = vadd.f32 %v316_v5, %v315_v46  ;;  %v293_v50 = vmul.f32 %v4577_v36, %v2383_v3 }
  0x72   :  { %v305_v54 = vrot.slane %v304_v62, 4  ;;  %v341_v30 = vadd.f32 %v340_v20, %v339_v39  ;;  %v330_v14 = vadd.f32 %v329_v35, %v328_v58  ;;  %v342_v41 = vsel %vm4505_vm0, %v281_v22, 0.0 }
  0x73   :  { %v353_v61 = vsel %vm4505_vm0, %v2747_v37, 0.0  ;;  %v262_v63 = vrot.slane %v261_v31, 2  ;;  %v318_v4 = vrot.slane %v317_v33, 4  ;;  %v355_v29 = vsel %vm4505_vm0, %v285_v9, 0.0 }
  0x74   :  { %v306_v44 = vadd.f32 %v305_v54, %v304_v62  ;;  %v343_v34 = vadd.f32 %v342_v41, %v341_v30  ;;  %v331_v12 = vrot.slane %v330_v14, 4  ;;  %v354_v19 = vadd.f32 %v353_v61, %v352_v18 }
  0x75   :  { %v366_v39 = vsel %vm4505_vm0, %v2751_v26, 0.0  ;;  %v319_v1 = vadd.f32 %v318_v4, %v317_v33  ;;  %v368_v55 = vsel %vm4505_vm0, %v289_v25, 0.0  ;;  %v379_v37 = vsel %vm4505_vm0, %v2755_v15, 0.0 }
  0x76   :  { %v307_v53 = vrot.slane %v306_v44, 2  ;;  %v344_v59 = vrot.slane %v343_v34, 4  ;;  %v367_v21 = vadd.f32 %v366_v39, %v365_v60  ;;  %v332_v40 = vadd.f32 %v331_v12, %v330_v14 }
  0x77   :  { %v356_v49 = vadd.f32 %v355_v29, %v354_v19  ;;  %v297_v47 = vmul.f32 %v2699_v45, %v2383_v3  ;;  %v320_v18 = vrot.slane %v319_v1, 2  ;;  %v380_v26 = vadd.f32 %v379_v37, %v378_v10 }
  0x78   :  { %v345_v22 = vadd.f32 %v344_v59, %v343_v34  ;;  %v369_v2 = vadd.f32 %v368_v55, %v367_v21  ;;  %v333_v56 = vrot.slane %v332_v40, 2  ;;  %v381_v5 = vsel %vm4505_vm0, %v293_v50, 0.0 }
  0x79   :  { %v357_v24 = vrot.slane %v356_v49, 4  ;;  %v263_v57 = vadd.f32 %v262_v63, %v261_v31  ;;  %v308_v60 = vadd.f32 %v307_v53, %v306_v44  ;;  %v321_v46 = vadd.f32 %v320_v18, %v319_v1 }
  0x7a   :  { %v346_v9 = vrot.slane %v345_v22, 2  ;;  %v370_v62 = vrot.slane %v369_v2, 4  ;;  %v382_v35 = vadd.f32 %v381_v5, %v380_v26  ;;  %v392_v15 = vsel %vm4505_vm0, %v2759_v27, 0.0  ;;  %v4593_v26 = vld [vmem:[#allocation7_spill] sm:$0xff] }
  0x7b   :  { %v358_v58 = vadd.f32 %v357_v24, %v356_v49  ;;  %v212_v3 = vrot.slane %v2800_v13, 1  ;;  %v334_v45 = vadd.f32 %v333_v56, %v332_v40  ;;  %v225_v54 = vrot.slane %v2807_v0, 1  ;;  %v4592_v56 = vld [vmem:[#allocation6_spill] sm:$0xff] }
  0x7c   :  { %v347_v20 = vadd.f32 %v346_v9, %v345_v22  ;;  %v371_v25 = vadd.f32 %v370_v62, %v369_v2  ;;  %v383_v33 = vrot.slane %v382_v35, 4  ;;  %v393_v31 = vadd.f32 %v392_v15, %v2790_v23  ;;  %v4591_v22 = vld [vmem:[#allocation5_spill] sm:$0xff] }
  0x7d   :  { %v359_v10 = vrot.slane %v358_v58, 2  ;;  %v238_v30 = vrot.slane %v2809_v52, 1  ;;  %v251_v36 = vrot.slane %v2821_v32, 1  ;;  %v264_v50 = vrot.slane %v263_v57, 1  ;;  %v4595_v9 = vld [vmem:[#allocation9_spill] sm:$0xff] }
  0x7e   :  { %v394_v14 = vsel %vm4505_vm0, %v297_v47, 0.0  ;;  %v309_v41 = vrot.slane %v308_v60, 1  ;;  %v322_v27 = vrot.slane %v321_v46, 1  ;;  %v372_v61 = vrot.slane %v371_v25, 2 }
  0x7f   :  { %v384_v63 = vadd.f32 %v383_v33, %v382_v35  ;;  %v335_v44 = vrot.slane %v334_v45, 1  ;;  %v348_v4 = vrot.slane %v347_v20, 1  ;;  %v395_v34 = vadd.f32 %v394_v14, %v393_v31 }
  0x80   :  { %v2851_v12 = vmax.f32 %v2796_v43, 1e-30  ;;  %v2856_v23 = vadd.f32 %v186_v28, %v2785_v38  ;;  %v2861_v19 = vadd.f32 %v199_v42, %v2788_v48  ;;  %v2864_v29 = vadd.f32 %v212_v3, %v2800_v13 }
  0x81   :  { %v360_v39 = vadd.f32 %v359_v10, %v358_v58  ;;  %v2867_v53 = vadd.f32 %v225_v54, %v2807_v0  ;;  %v2870_v1 = vadd.f32 %v238_v30, %v2809_v52  ;;  %v2873_v59 = vadd.f32 %v251_v36, %v2821_v32  ;;  %v4589_v52 = vld [vmem:[#allocation3_spill] sm:$0xff]  ;;  %v4590_v32 = vld [vmem:[#allocation4_spill] sm:$0xff] }
  0x82   :  { %4578 = vst [vmem:[#allocation20_spill] sm:$0xff] %v2856_v23  ;;  %v2875_v38 = vadd.f32 %v264_v50, %v263_v57  ;;  %v2877_v21 = vadd.f32 %v309_v41, %v308_v60  ;;  %v2879_v48 = vadd.f32 %v322_v27, %v321_v46  ;;  %v373_v42 = vadd.f32 %v372_v61, %v371_v25  ;;  %v4594_v57 = vld [vmem:[#allocation8_spill] sm:$0xff] }
  0x83   :  { %4579 = vst [vmem:[#allocation23_spill] sm:$0xff] %v2861_v19  ;;  %v385_v13 = vrot.slane %v384_v63, 2  ;;  %v2881_v40 = vadd.f32 %v335_v44, %v334_v45  ;;  %v2883_v49 = vadd.f32 %v348_v4, %v347_v20  ;;  %v396_v0 = vrot.slane %v395_v34, 4 }
  0x84   :  { %4580 = vst [vmem:[#allocation24_spill] sm:$0xff] %v2864_v29  ;;  %2125 = vrsqrt.f32 %v2851_v12  ;;  %v361_v47 = vrot.slane %v360_v39, 1  ;;  %v2889_v18 = vmax.f32 %v2856_v23, 1e-30  ;;  %v374_v58 = vrot.slane %v373_v42, 1 }
  0x85   :  { %4581 = vst [vmem:[#allocation25_spill] sm:$0xff] %v2867_v53  ;;  %v2897_v35 = vadd.f32 %v385_v13, %v384_v63  ;;  %v397_v15 = vadd.f32 %v396_v0, %v395_v34  ;;  %v2900_v3 = vmax.f32 %v2861_v19, 1e-30  ;;  %v2903_v45 = vmax.f32 %v2864_v29, 1e-30 }
  0x86   :  { %4582 = vst [vmem:[#allocation26_spill] sm:$0xff] %v2870_v1  ;;  %v2906_v20 = vmax.f32 %v2867_v53, 1e-30  ;;  %v2910_v10 = vadd.f32 %v361_v47, %v360_v39  ;;  %v2923_v63 = vadd.f32 %v374_v58, %v373_v42  ;;  %v2928_v39 = vmax.f32 %v2873_v59, 1e-30  ;;  %v4612_v58 = vld [vmem:[#allocation19_spill] sm:$0xff] }
  0x87   :  { %4583 = vst [vmem:[#allocation27_spill] sm:$0xff] %v2873_v59  ;;  %v398_v34 = vrot.slane %v397_v15, 2  ;;  %vm416_vm7 = vweird.f32 %v2851_v12  ;;  %2127 = vrsqrt.f32 %v2889_v18  ;;  %vm426_vm10 = vweird.f32 %v2889_v18 }
  0x88   :  { %4584 = vst [vmem:[#allocation28_spill] sm:$0xff] %v2875_v38  ;;  %2129 = vrsqrt.f32 %v2900_v3  ;;  %vm436_vm11 = vweird.f32 %v2900_v3  ;;  %vm446_vm12 = vweird.f32 %v2903_v45  ;;  %vm456_vm13 = vweird.f32 %v2906_v20 }
  0x89   :  { %4585 = vst [vmem:[#allocation29_spill] sm:$0xff] %v2877_v21  ;;  %2131 = vrsqrt.f32 %v2903_v45  ;;  %vm476_vm15 = vweird.f32 %v2928_v39 }
  0x8a   :  { %4586 = vst [vmem:[#allocation30_spill] sm:$0xff] %v2879_v48  ;;  %v2915_v33 = vpop.eup %2125  ;;  %2133 = vrsqrt.f32 %v2906_v20 }
  0x8b   :  { %4587 = vst [vmem:[#allocation31_spill] sm:$0xff] %v2881_v40  ;;  %v411_v0 = vmul.f32 %v2915_v33, %v2851_v12  ;;  %vm417_vm8 = vweird.f32 %v2915_v33 }
  0x8c   :  { %4588 = vst [vmem:[#allocation32_spill] sm:$0xff] %v2883_v49  ;;  %vm418_vm9 = vmor %vm416_vm7, %vm417_vm8 }
  0x8d   :  { %4596 = vst [vmem:[#allocation3_spill] sm:$0xff] %v2910_v10 }
  0x8e   :  { %4597 = vst [vmem:[#allocation4_spill] sm:$0xff] %v2923_v63 }
  0xc9   :  { %v720_v28 = vpop.f32.mrf.mxu0 }
  0xca   :  { %v732_v55 = vmul.f32 %v720_v28, %v4589_v52  ;;  %v736_v37 = vmul.f32 %v720_v28, %v4590_v32  ;;  %v740_v2 = vmul.f32 %v720_v28, %v4591_v22  ;;  %v744_v24 = vmul.f32 %v720_v28, %v4592_v56 }
  0xcb   :  { %v748_v5 = vmul.f32 %v720_v28, %v4593_v26  ;;  %v752_v60 = vmul.f32 %v720_v28, %v4594_v57  ;;  %v756_v62 = vmul.f32 %v720_v28, %v4595_v9  ;;  %v760_v46 = vmul.f32 %v720_v28, %v2468_v8  ;;  %v4608_v57 = vld [vmem:[#allocation17_spill] sm:$0xff] }
  0xcc   :  { %v764_v25 = vsel %vm4505_vm0, %v732_v55, 0.0  ;;  %v777_v54 = vsel %vm4505_vm0, %v736_v37, 0.0  ;;  %v2913_v8 = vmax.f32 %v2870_v1, 1e-30  ;;  %v790_v31 = vsel %vm4505_vm0, %v740_v2, 0.0  ;;  %v4599_v55 = vld [vmem:[#allocation12_spill] sm:$0xff] }
  0xcd   :  { %v803_v30 = vsel %vm4505_vm0, %v744_v24, 0.0  ;;  %v816_v36 = vsel %vm4505_vm0, %v748_v5, 0.0  ;;  %v829_v50 = vsel %vm4505_vm0, %v752_v60, 0.0  ;;  %v842_v27 = vsel %vm4505_vm0, %v756_v62, 0.0  ;;  %v4600_v37 = vld [vmem:[#allocation10_spill] sm:$0xff]  ;;  %v4604_v2 = vld [vmem:[#allocation13_spill] sm:$0xff] }
  0xce   :  { %v855_v61 = vsel %vm4505_vm0, %v760_v46, 0.0  ;;  %v2931_v28 = vmax.f32 %v2875_v38, 1e-30  ;;  %v4605_v24 = vld [vmem:[#allocation15_spill] sm:$0xff]  ;;  %v4606_v5 = vld [vmem:[#allocation14_spill] sm:$0xff]  ;;  %v4610_v62 = vld [vmem:[#allocation16_spill] sm:$0xff]  ;;  %2135 = vrsqrt.f32 %v2913_v8  ;;  %vm466_vm14 = vweird.f32 %v2913_v8 }
  0xcf   :  { %v726_v14 = vpop.f32.mrf.mxu2  ;;  %v4609_v60 = vld [vmem:[#allocation18_spill] sm:$0xff]  ;;  %2137 = vrsqrt.f32 %v2928_v39 }
  0xd0   :  { %v2939_v42 = vmul.f32 %v726_v14, %v2492_v16  ;;  %v2947_v47 = vmul.f32 %v726_v14, %v4600_v37  ;;  %v2955_v16 = vmul.f32 %v726_v14, %v4606_v5  ;;  %v2961_v46 = vmul.f32 %v726_v14, %v4610_v62  ;;  %v4614_v37 = vld [vmem:[#allocation21_spill] sm:$0xff] }
  0xd1   :  { %v723_v41 = vpop.f32.mrf.mxu0  ;;  %2139 = vrsqrt.f32 %v2931_v28  ;;  %vm486_vm3 = vweird.f32 %v2931_v28 }
  0xd2   :  { %v733_v4 = vmul.f32 %v723_v41, %v2458_v6  ;;  %v737_v13 = vmul.f32 %v723_v41, %v2463_v7  ;;  %v2942_v6 = vmul.f32 %v726_v14, %v2497_v17  ;;  %v741_v52 = vmul.f32 %v723_v41, %v2477_v11  ;;  %4601 = vst [vmem:[#allocation6_spill] sm:$0xff] %v2947_v47  ;;  %v4602_v7 = vld [vmem:[#allocation11_spill] sm:$0xff] }
  0xd3   :  { %v745_v32 = vmul.f32 %v723_v41, %v4599_v55  ;;  %v2950_v22 = vmul.f32 %v726_v14, %v4602_v7  ;;  %v749_v56 = vmul.f32 %v723_v41, %v4604_v2  ;;  %v753_v26 = vmul.f32 %v723_v41, %v4605_v24  ;;  %4607 = vst [vmem:[#allocation8_spill] sm:$0xff] %v2955_v16 }
  0xd4   :  { %4598 = vst [vmem:[#allocation5_spill] sm:$0xff] %v2942_v6  ;;  %v757_v17 = vmul.f32 %v723_v41, %v4608_v57  ;;  %v761_v9 = vmul.f32 %v723_v41, %v4609_v60  ;;  %v765_v11 = vsel %vm4505_vm0, %v733_v4, 0.0  ;;  %v2964_v55 = vmul.f32 %v726_v14, %v4612_v58 }
  0xd5   :  { %4603 = vst [vmem:[#allocation7_spill] sm:$0xff] %v2950_v22  ;;  %v2967_v7 = vmul.f32 %v726_v14, %v4614_v37  ;;  %v778_v2 = vsel %vm4505_vm0, %v737_v13, 0.0  ;;  %v791_v24 = vsel %vm4505_vm0, %v741_v52, 0.0  ;;  %v804_v5 = vsel %vm4505_vm0, %v745_v32, 0.0 }
  0xd6   :  { %4611 = vst [vmem:[#allocation9_spill] sm:$0xff] %v2961_v46  ;;  %v412_v57 = vmul.f32 %v2915_v33, %v411_v0  ;;  %v2974_v41 = vadd.f32 %v765_v11, %v764_v25  ;;  %v817_v4 = vsel %vm4505_vm0, %v749_v56, 0.0  ;;  %v830_v60 = vsel %vm4505_vm0, %v753_v26, 0.0 }
  0xd7   :  { %4613 = vst [vmem:[#allocation12_spill] sm:$0xff] %v2964_v55  ;;  %v843_v14 = vsel %vm4505_vm0, %v757_v17, 0.0  ;;  %v856_v13 = vsel %vm4505_vm0, %v761_v9, 0.0  ;;  %v2982_v52 = vadd.f32 %v778_v2, %v777_v54  ;;  %v2984_v0 = vadd.f32 %v791_v24, %v790_v31 }
  0xd8   :  { %4615 = vst [vmem:[#allocation10_spill] sm:$0xff] %v2967_v7  ;;  %v413_v62 = vmul.f32 0.5, %v412_v57  ;;  %v2986_v32 = vadd.f32 %v398_v34, %v397_v15  ;;  %v2989_v25 = vadd.f32 %v804_v5, %v803_v30  ;;  %v2991_v56 = vadd.f32 %v817_v4, %v816_v36  ;;  %v2128_v15 = vpop.eup %2127 }
  0xd9   :  { %4616 = vst [vmem:[#allocation11_spill] sm:$0xff] %v2982_v52  ;;  %v2994_v17 = vadd.f32 %v830_v60, %v829_v50  ;;  %v2996_v9 = vadd.f32 %v843_v14, %v842_v27  ;;  %v2998_v11 = vadd.f32 %v856_v13, %v855_v61  ;;  %v2130_v31 = vpop.eup %2129  ;;  %v421_v36 = vmul.f32 %v2128_v15, %v2889_v18 }
  0xda   :  { %4617 = vst [vmem:[#allocation13_spill] sm:$0xff] %v2984_v0  ;;  %v414_v26 = vsub.f32 1.5, %v413_v62  ;;  %v2132_v50 = vpop.eup %2131  ;;  %v431_v61 = vmul.f32 %v2130_v31, %v2900_v3  ;;  %vm427_vm1 = vweird.f32 %v2128_v15  ;;  %vm437_vm2 = vweird.f32 %v2130_v31 }
  0xdb   :  { %4618 = vst [vmem:[#allocation15_spill] sm:$0xff] %v2986_v32  ;;  %v2134_v34 = vpop.eup %2133  ;;  %v422_v58 = vmul.f32 %v2128_v15, %v421_v36  ;;  %v441_v37 = vmul.f32 %v2132_v50, %v2903_v45  ;;  %vm447_vm4 = vweird.f32 %v2132_v50  ;;  %vm428_vm8 = vmor %vm426_vm10, %vm427_vm1 }
  0xdc   :  { %4619 = vst [vmem:[#allocation14_spill] sm:$0xff] %v2989_v25  ;;  %v415_v54 = vmul.f32 %v2915_v33, %v414_v26  ;;  %v2136_v2 = vpop.eup %2135  ;;  %v432_v24 = vmul.f32 %v2130_v31, %v431_v61  ;;  %vm457_vm5 = vweird.f32 %v2134_v34  ;;  %vm438_vm6 = vmor %vm436_vm11, %vm437_vm2 }
  0xdd   :  { %4620 = vst [vmem:[#allocation17_spill] sm:$0xff] %v2991_v56  ;;  %v2138_v57 = vpop.eup %2137  ;;  %v423_v4 = vmul.f32 0.5, %v422_v58  ;;  %v442_v60 = vmul.f32 %v2132_v50, %v441_v37  ;;  %v461_v14 = vmul.f32 %v2136_v2, %v2913_v8  ;;  %vm467_vm7 = vweird.f32 %v2136_v2  ;;  %vm448_vm0 = vmor %vm446_vm12, %vm447_vm4 }
  0xde   :  { %4621 = vst [vmem:[#allocation18_spill] sm:$0xff] %v2994_v17  ;;  %v3014_v27 = vsel %vm418_vm9, %v2915_v33, %v415_v54  ;;  %v451_v33 = vmul.f32 %v2134_v34, %v2906_v20  ;;  %v2140_v13 = vpop.eup %2139  ;;  %v433_v62 = vmul.f32 0.5, %v432_v24  ;;  %v471_v54 = vmul.f32 %v2138_v57, %v2928_v39  ;;  %vm458_vm1 = vmor %vm456_vm13, %vm457_vm5 }
  0xdf   :  { %4622 = vst [vmem:[#allocation16_spill] sm:$0xff] %v2996_v9  ;;  %v490_v5 = vmul.f32 %v3014_v27, %v2851_v12  ;;  %v424_v36 = vsub.f32 1.5, %v423_v4  ;;  %v443_v61 = vmul.f32 0.5, %v442_v60  ;;  %v462_v30 = vmul.f32 %v2136_v2, %v461_v14  ;;  %vm468_vm11 = vmor %vm466_vm14, %vm467_vm7 }
  0xe0   :  { %4623 = vst [vmem:[#allocation19_spill] sm:$0xff] %v2998_v11  ;;  %v452_v26 = vmul.f32 %v2134_v34, %v451_v33  ;;  %v481_v44 = vmul.f32 %v2140_v13, %v2931_v28  ;;  %v434_v12 = vsub.f32 1.5, %v433_v62  ;;  %v472_v37 = vmul.f32 %v2138_v57, %v471_v54 }
  0xe1   :  { %vm477_vm9 = vweird.f32 %v2138_v57  ;;  %v425_v38 = vmul.f32 %v2128_v15, %v424_v36  ;;  %v444_v24 = vsub.f32 1.5, %v443_v61  ;;  %v463_v33 = vmul.f32 0.5, %v462_v30 }
  0xe2   :  { %v453_v58 = vmul.f32 0.5, %v452_v26  ;;  %v482_v4 = vmul.f32 %v2140_v13, %v481_v44  ;;  %v435_v60 = vmul.f32 %v2130_v31, %v434_v12  ;;  %v473_v59 = vmul.f32 0.5, %v472_v37  ;;  %vm478_vm12 = vmor %vm476_vm15, %vm477_vm9 }
  0xe3   :  { %vm487_vm10 = vweird.f32 %v2140_v13  ;;  %v3036_v62 = vsel %vm428_vm8, %v2128_v15, %v425_v38  ;;  %v445_v26 = vmul.f32 %v2132_v50, %v444_v24  ;;  %v464_v54 = vsub.f32 1.5, %v463_v33 }
  0xe4   :  { %v454_v14 = vsub.f32 1.5, %v453_v58  ;;  %v483_v36 = vmul.f32 0.5, %v482_v4  ;;  %v3041_v61 = vsel %vm438_vm6, %v2130_v31, %v435_v60  ;;  %v474_v30 = vsub.f32 1.5, %v473_v59  ;;  %vm488_vm6 = vmor %vm486_vm3, %vm487_vm10 }
  0xe5   :  { %v491_v12 = vmul.f32 %v3036_v62, %v2889_v18  ;;  %v3048_v38 = vsel %vm448_vm0, %v2132_v50, %v445_v26  ;;  %v465_v15 = vmul.f32 %v2136_v2, %v464_v54  ;;  %v492_v31 = vmul.f32 %v3041_v61, %v2900_v3 }
  0xe6   :  { %v455_v44 = vmul.f32 %v2134_v34, %v454_v14  ;;  %v484_v58 = vsub.f32 1.5, %v483_v36  ;;  %v475_v24 = vmul.f32 %v2138_v57, %v474_v30  ;;  %v493_v59 = vmul.f32 %v3048_v38, %v2903_v45 }
  0xe7   :  { %v3062_v18 = vclamps-f32 %v490_v5, 0.99999  ;;  %v3064_v50 = vsel %vm468_vm11, %v2136_v2, %v465_v15  ;;  %v3068_v60 = vclamps-f32 %v491_v12, 0.99999  ;;  %v3074_v14 = vclamps-f32 %v492_v31, 0.99999 }
  0xe8   :  { %v3055_v37 = vsel %vm458_vm1, %v2134_v34, %v455_v44  ;;  %v485_v33 = vmul.f32 %v2140_v13, %v484_v58  ;;  %v3070_v3 = vsel %vm478_vm12, %v2138_v57, %v475_v24  ;;  %v495_v34 = vmul.f32 %v3064_v50, %v2913_v8 }
  0xe9   :  { %v494_v4 = vmul.f32 %v3055_v37, %v2906_v20  ;;  %4624 = vst [vmem:[#allocation21_spill] sm:$0xff] %v3070_v3  ;;  %v514_v26 = vadd.f32 1.0, %v3062_v18  ;;  %v496_v2 = vmul.f32 %v3070_v3, %v2928_v39  ;;  %v3081_v5 = vclamps-f32 %v493_v59, 0.99999  ;;  %v3093_v39 = vpop.f32.mrf.mxu2 }
  0xea   :  { %v3077_v45 = vsel %vm488_vm6, %v2140_v13, %v485_v33  ;;  %v517_v20 = vmul.f32 -0.5, %v3062_v18  ;;  %v520_v8 = vand.u32 2147483647, %v3062_v18  ;;  %v3089_v36 = vclamps-f32 %v495_v34, 0.99999 }
  0xeb   :  { %4625 = vst [vmem:[#allocation33_spill] sm:$0xff] %v3077_v45  ;;  %v497_v57 = vmul.f32 %v3077_v45, %v2931_v28  ;;  %v3086_v54 = vclamps-f32 %v494_v4, 0.99999  ;;  %2141 = vlog2.f32 %v514_v26  ;;  %v523_v13 = vadd.f32 1.0, %v3068_v60 }
  0xec   :  { %v518_v44 = vadd.f32 1.0, %v517_v20  ;;  %v526_v30 = vmul.f32 -0.5, %v3068_v60  ;;  %v4626_v12 = vrot.slane %v2897_v35, 1  ;;  %v3100_v28 = vclamps-f32 %v496_v2, 0.99999 }
  0xed   :  { %v3102_v58 = vclamps-f32 %v497_v57, 0.99999  ;;  %v529_v31 = vand.u32 2147483647, %v3068_v60  ;;  %vm3105_vm0 = vcmp.lt.f32.partialorder %v520_v8, 0.0004427343  ;;  %2143 = vlog2.f32 %v523_v13 }
  0xee   :  { %v3098_v15 = vadd.f32 %v4626_v12, %v2897_v35  ;;  %v527_v59 = vadd.f32 1.0, %v526_v30  ;;  %v532_v33 = vadd.f32 1.0, %v3074_v14  ;;  %v535_v4 = vmul.f32 -0.5, %v3074_v14 }
  0xef   :  { %v538_v34 = vand.u32 2147483647, %v3074_v14  ;;  %v541_v35 = vadd.f32 1.0, %v3081_v5  ;;  %v3115_v26 = vmul.f32 %v3093_v39, %v2594_v51  ;;  %v3118_v2 = vmul.f32 %v3062_v18, %v518_v44 }
  0xf0   :  { %4627 = vst [vmem:[#allocation34_spill] sm:$0xff] %v3098_v15  ;;  %2145 = vlog2.f32 %v532_v33  ;;  %v544_v20 = vmul.f32 -0.5, %v3081_v5  ;;  %v547_v57 = vand.u32 2147483647, %v3081_v5  ;;  %vm3122_vm13 = vcmp.lt.f32.partialorder %v529_v31, 0.0004427343 }
  0xf1   :  { %v2142_v8 = vpop.eup %2141  ;;  %v536_v30 = vadd.f32 1.0, %v535_v4  ;;  %2147 = vlog2.f32 %v541_v35  ;;  %v550_v12 = vadd.f32 1.0, %v3086_v54  ;;  %v3130_v51 = vmul.f32 %v3068_v60, %v527_v59 }
  0xf2   :  { %v3127_v1 = vmul.f32 0.6931472, %v2142_v8  ;;  %v545_v44 = vadd.f32 1.0, %v544_v20  ;;  %v553_v33 = vmul.f32 -0.5, %v3086_v54  ;;  %vm3133_vm14 = vcmp.lt.f32.partialorder %v538_v34, 0.0004427343 }
  0xf3   :  { %2149 = vlog2.f32 %v550_v12  ;;  %v556_v31 = vand.u32 2147483647, %v3086_v54  ;;  %v559_v4 = vadd.f32 1.0, %v3089_v36  ;;  %v2144_v35 = vpop.eup %2143  ;;  %v3140_v29 = vmul.f32 %v3074_v14, %v536_v30 }
  0xf4   :  { %vm3142_vm15 = vcmp.lt.f32.partialorder %v547_v57, 0.0004427343  ;;  %v554_v59 = vadd.f32 1.0, %v553_v33  ;;  %v562_v20 = vmul.f32 -0.5, %v3089_v36  ;;  %v3151_v12 = vmul.f32 0.6931472, %v2144_v35 }
  0xf5   :  { %2151 = vlog2.f32 %v559_v4  ;;  %v565_v19 = vand.u32 2147483647, %v3089_v36  ;;  %v3155_v30 = vmul.f32 %v3081_v5, %v545_v44  ;;  %v568_v43 = vadd.f32 1.0, %v3100_v28 }
  0xf6   :  { %v2146_v23 = vpop.eup %2145  ;;  %v563_v57 = vadd.f32 1.0, %v562_v20  ;;  %v571_v33 = vmul.f32 -0.5, %v3100_v28  ;;  %v3162_v10 = vmul.f32 %v3086_v54, %v554_v59  ;;  %vm3164_vm2 = vcmp.lt.f32.partialorder %v556_v31, 0.0004427343  ;;  %v2291_v31 = vld [vmem:[%s4477_s1 + $0x38] sm:$0xff] }
  0xf7   :  { %v2148_v15 = vpop.eup %2147  ;;  %v3159_v63 = vmul.f32 0.6931472, %v2146_v23  ;;  %v574_v4 = vand.u32 2147483647, %v3100_v28  ;;  %2153 = vlog2.f32 %v568_v43  ;;  %vm3178_vm3 = vcmp.lt.f32.partialorder %v565_v19, 0.0004427343 }
  0xf8   :  { %v3173_v20 = vmul.f32 0.6931472, %v2148_v15  ;;  %v572_v34 = vadd.f32 1.0, %v571_v33  ;;  %v3176_v49 = vmul.f32 %v3089_v36, %v563_v57  ;;  %v577_v59 = vadd.f32 1.0, %v3102_v58 }
  0xf9   :  { %v2150_v23 = vpop.eup %2149  ;;  %v580_v40 = vmul.f32 -0.5, %v3102_v58  ;;  %vm3190_vm4 = vcmp.lt.f32.partialorder %v574_v4, 0.0004427343  ;;  %v583_v19 = vand.u32 2147483647, %v3102_v58  ;;  %v586_v48 = vsub.f32 0.0, %v3062_v18 }
  0xfa   :  { %v3188_v44 = vmul.f32 0.6931472, %v2150_v23  ;;  %2155 = vlog2.f32 %v577_v59  ;;  %v587_v21 = vsub.f32 0.0, %v3068_v60  ;;  %v3204_v4 = vmul.f32 %v3100_v28, %v572_v34 }
  0xfb   :  { %v2152_v57 = vpop.eup %2151  ;;  %v581_v33 = vadd.f32 1.0, %v580_v40  ;;  %v588_v45 = vsub.f32 0.0, %v3074_v14  ;;  %vm3214_vm5 = vcmp.lt.f32.partialorder %v583_v19, 0.0004427343  ;;  %v589_v59 = vsub.f32 0.0, %v3081_v5 }
  0xfc   :  { %v3201_v23 = vmul.f32 0.6931472, %v2152_v57  ;;  %v590_v34 = vsub.f32 0.0, %v3086_v54  ;;  %v3225_v15 = vsub.f32 0.0, %v3089_v36  ;;  %v594_v40 = vadd.f32 1.0, %v586_v48 }
  0xfd   :  { %v3212_v18 = vmul.f32 %v3102_v58, %v581_v33  ;;  %v2154_v57 = vpop.eup %2153  ;;  %v597_v19 = vmul.f32 -0.5, %v586_v48  ;;  %v600_v3 = vand.u32 2147483647, %v586_v48  ;;  %v603_v32 = vadd.f32 1.0, %v587_v21 }
  0xfe   :  { %v3227_v33 = vmul.f32 0.6931472, %v2154_v57  ;;  %2157 = vlog2.f32 %v594_v40  ;;  %v606_v11 = vmul.f32 -0.5, %v587_v21  ;;  %v609_v5 = vand.u32 2147483647, %v587_v21 }
  0xff   :  { %v612_v7 = vadd.f32 1.0, %v588_v45  ;;  %v3230_v55 = vsub.f32 0.0, %v3100_v28  ;;  %v3233_v14 = vsub.f32 0.0, %v3102_v58  ;;  %v598_v54 = vadd.f32 1.0, %v597_v19 }
 0x100   :  { %v2156_v9 = vpop.eup %2155  ;;  %2159 = vlog2.f32 %v603_v32  ;;  %v607_v40 = vadd.f32 1.0, %v606_v11  ;;  %vm3241_vm7 = vcmp.lt.f32.partialorder %v600_v3, 0.0004427343  ;;  %v615_v28 = vmul.f32 -0.5, %v588_v45 }
 0x101   :  { %v3239_v57 = vmul.f32 0.6931472, %v2156_v9  ;;  %2161 = vlog2.f32 %v612_v7  ;;  %v618_v46 = vand.u32 2147483647, %v588_v45  ;;  %v621_v56 = vadd.f32 1.0, %v589_v59 }
 0x102   :  { %v599_v58 = vmul.f32 %v598_v54, %v586_v48  ;;  %vm3245_vm8 = vcmp.lt.f32.partialorder %v609_v5, 0.0004427343  ;;  %v624_v32 = vmul.f32 -0.5, %v589_v59  ;;  %v627_v16 = vand.u32 2147483647, %v589_v59 }
 0x103   :  { %v616_v7 = vadd.f32 1.0, %v615_v28  ;;  %2163 = vlog2.f32 %v621_v56  ;;  %v630_v11 = vadd.f32 1.0, %v590_v34  ;;  %v608_v36 = vmul.f32 %v607_v40, %v587_v21 }
 0x104   :  { %v2158_v3 = vpop.eup %2157  ;;  %v625_v25 = vadd.f32 1.0, %v624_v32  ;;  %v633_v22 = vmul.f32 -0.5, %v590_v34  ;;  %v636_v0 = vand.u32 2147483647, %v590_v34  ;;  %vm3253_vm9 = vcmp.lt.f32.partialorder %v618_v46, 0.0004427343 }
 0x105   :  { %v596_v5 = vmul.f32 0.6931472, %v2158_v3  ;;  %2165 = vlog2.f32 %v630_v11  ;;  %v639_v47 = vadd.f32 1.0, %v3225_v15  ;;  %v617_v9 = vmul.f32 %v616_v7, %v588_v45 }
 0x106   :  { %v2160_v48 = vpop.eup %2159  ;;  %vm3258_vm10 = vcmp.lt.f32.partialorder %v627_v16, 0.0004427343  ;;  %v634_v21 = vadd.f32 1.0, %v633_v22  ;;  %v626_v28 = vmul.f32 %v625_v25, %v589_v59  ;;  %v642_v32 = vmul.f32 -0.5, %v3225_v15 }
 0x107   :  { %v2162_v52 = vpop.eup %2161  ;;  %v605_v6 = vmul.f32 0.6931472, %v2160_v48  ;;  %2167 = vlog2.f32 %v639_v47  ;;  %v602_v46 = vsel %vm3241_vm7, %v599_v58, %v596_v5  ;;  %vm3265_vm1 = vcmp.lt.f32.partialorder %v636_v0, 0.0004427343 }
 0x108   :  { %v614_v40 = vmul.f32 0.6931472, %v2162_v52  ;;  %v645_v3 = vand.u32 2147483647, %v3225_v15  ;;  %v648_v16 = vadd.f32 1.0, %v3230_v55  ;;  %v643_v52 = vadd.f32 1.0, %v642_v32 }
 0x109   :  { %v2164_v45 = vpop.eup %2163  ;;  %v611_v22 = vsel %vm3245_vm8, %v608_v36, %v605_v6  ;;  %v651_v47 = vmul.f32 -0.5, %v3230_v55  ;;  %v654_v25 = vand.u32 2147483647, %v3230_v55  ;;  %v635_v17 = vmul.f32 %v634_v21, %v590_v34 }
 0x10a   :  { %v623_v59 = vmul.f32 0.6931472, %v2164_v45  ;;  %2169 = vlog2.f32 %v648_v16  ;;  %v657_v0 = vadd.f32 1.0, %v3233_v14  ;;  %v620_v7 = vsel %vm3253_vm9, %v617_v9, %v614_v40 }
 0x10b   :  { %v2166_v58 = vpop.eup %2165  ;;  %vm3278_vm11 = vcmp.lt.f32.partialorder %v645_v3, 0.0004427343  ;;  %v652_v19 = vadd.f32 1.0, %v651_v47  ;;  %v660_v6 = vmul.f32 -0.5, %v3233_v14  ;;  %v644_v34 = vmul.f32 %v643_v52, %v3225_v15 }
 0x10c   :  { %v629_v36 = vsel %vm3258_vm10, %v626_v28, %v623_v59  ;;  %v632_v5 = vmul.f32 0.6931472, %v2166_v58  ;;  %2171 = vlog2.f32 %v657_v0  ;;  %vm3286_vm12 = vcmp.lt.f32.partialorder %v654_v25, 0.0004427343  ;;  %v2292_v58 = vld [vmem:[%s4477_s1 + $0x58] sm:$0xff] }
 0x10d   :  { %v2168_v21 = vpop.eup %2167  ;;  %v661_v9 = vadd.f32 1.0, %v660_v6  ;;  %v4658_v54 = vsel %vm3105_vm0, %v3118_v2, %v3127_v1  ;;  %v4659_v56 = vsel %vm3122_vm13, %v3130_v51, %v3151_v12  ;;  %v663_v16 = vand.u32 2147483647, %v3233_v14 }
 0x10e   :  { %v666_v40 = vsub.f32 %v4658_v54, %v602_v46  ;;  %v667_v28 = vsub.f32 %v4659_v56, %v611_v22  ;;  %v638_v15 = vsel %vm3265_vm1, %v635_v17, %v632_v5  ;;  %v641_v3 = vmul.f32 0.6931472, %v2168_v21  ;;  %v2297_v54 = vld [vmem:[%s4477_s1 + $0xf8] sm:$0xff]  ;;  %v4673_v56 = vld [vmem:[#allocation11_spill] sm:$0xff] }
 0x10f   :  { %v4660_v24 = vsel %vm3133_vm14, %v3140_v29, %v3159_v63  ;;  %v653_v1 = vmul.f32 %v652_v19, %v3230_v55  ;;  %v4661_v2 = vsel %vm3142_vm15, %v3155_v30, %v3173_v20  ;;  %v4662_v51 = vsel %vm3164_vm2, %v3162_v10, %v3188_v44  ;;  %v4688_v44 = vld [vmem:[#allocation18_spill] sm:$0xff] }
 0x110   :  { %v668_v45 = vsub.f32 %v4660_v24, %v620_v7  ;;  %v669_v13 = vsub.f32 %v4661_v2, %v629_v36  ;;  %v670_v12 = vsub.f32 %v4662_v51, %v638_v15  ;;  %v674_v46 = vmul.f32 0.5, %v666_v40  ;;  %v2170_v53 = vpop.eup %2169  ;;  %v2296_v36 = vld [vmem:[%s4477_s1 + $0xd8] sm:$0xff]  ;;  %v4678_v24 = vld [vmem:[#allocation7_spill] sm:$0xff] }
 0x111   :  { %v647_v29 = vsel %vm3278_vm11, %v644_v34, %v641_v3  ;;  %v662_v63 = vmul.f32 %v661_v9, %v3233_v14  ;;  %v675_v55 = vmul.f32 0.5, %v667_v28  ;;  %v650_v8 = vmul.f32 0.6931472, %v2170_v53  ;;  %v4674_v28 = vld [vmem:[#allocation6_spill] sm:$0xff]  ;;  %v4682_v53 = vld [vmem:[#allocation8_spill] sm:$0xff] }
 0x112   :  { %v676_v11 = vmul.f32 0.5, %v668_v45  ;;  %v4663_v30 = vsel %vm3178_vm3, %v3176_v49, %v3201_v23  ;;  %v677_v20 = vmul.f32 0.5, %v669_v13  ;;  %v678_v22 = vmul.f32 0.5, %v670_v12  ;;  %v2172_v10 = vpop.eup %2171  ;;  %v4680_v13 = vld [vmem:[#allocation14_spill] sm:$0xff] }
 0x113   :  { %v671_v35 = vsub.f32 %v4663_v30, %v647_v29  ;;  %vm3327_vm6 = vcmp.lt.f32.partialorder %v663_v16, 0.0004427343  ;;  %v3332_v52 = vmul.f32 %v674_v46, %v3014_v27  ;;  %v3335_v14 = vmul.f32 %v675_v55, %v3036_v62 }
 0x114   :  { %v739_v49 = vmul.f32 %v2291_v31, %v3093_v39  ;;  %v656_v23 = vsel %vm3286_vm12, %v653_v1, %v650_v8  ;;  %v659_v47 = vmul.f32 0.6931472, %v2172_v10  ;;  %v3344_v59 = vmul.f32 %v676_v11, %v3041_v61  ;;  %v4685_v8 = vld [vmem:[#allocation17_spill] sm:$0xff] }
 0x115   :  { %v679_v25 = vmul.f32 0.5, %v671_v35  ;;  %v4666_v27 = vsel %vm3190_vm4, %v3204_v4, %v3227_v33  ;;  %v3352_v17 = vmul.f32 %v677_v20, %v3048_v38  ;;  %v3355_v0 = vmul.f32 %v678_v22, %v3055_v37  ;;  %v2293_v38 = vld [vmem:[%s4477_s1 + $0x78] sm:$0xff] }
 0x116   :  { %v672_v62 = vsub.f32 %v4666_v27, %v656_v23  ;;  %v743_v7 = vmul.f32 %v2292_v58, %v3093_v39  ;;  %v665_v61 = vsel %vm3327_vm6, %v662_v63, %v659_v47  ;;  %v747_v4 = vmul.f32 %v2293_v38, %v3093_v39  ;;  %v2294_v37 = vld [vmem:[%s4477_s1 + $0x98] sm:$0xff]  ;;  %v4690_v27 = vld [vmem:[#allocation12_spill] sm:$0xff] }
 0x117   :  { %v3364_v43 = vmul.f32 %v679_v25, %v3064_v50  ;;  %v751_v33 = vmul.f32 %v2294_v37, %v3093_v39  ;;  %v4667_v48 = vsel %vm3214_vm5, %v3212_v18, %v3239_v57  ;;  %v2295_v50 = vld [vmem:[%s4477_s1 + $0xb8] sm:$0xff]  ;;  %v759_v5 = vmul.f32 %v2296_v36, %v3093_v39  ;;  %v4692_v38 = vld [vmem:[#allocation16_spill] sm:$0xff] }
 0x118   :  { %v673_v19 = vsub.f32 %v4667_v48, %v665_v61  ;;  %v755_v6 = vmul.f32 %v2295_v50, %v3093_v39  ;;  %vm4668_vm0 = vcmask 64512   ;;  %v4670_v57 = vld [vmem:[#allocation5_spill] sm:$0xff]  ;;  %v3395_v9 = vmul.f32 0.5, %v672_v62 }
 0x119   :  { %v767_v34 = vsel %vm4668_vm0, %v2939_v42, 0.0  ;;  %vm4669_vm13 = vmmov %vm4668_vm0  ;;  %v763_v40 = vmul.f32 %v2297_v54, %v3093_v39  ;;  %v4686_v35 = vld [vmem:[#allocation9_spill] sm:$0xff] }
 0x11a   :  { %v768_v60 = vadd.f32 %v767_v34, %v2974_v41  ;;  %v769_v18 = vsel %vm4669_vm13, %v3115_v26, 0.0  ;;  %vm4671_vm14 = vmmov %vm4668_vm0  ;;  %v4676_v26 = vld [vmem:[#allocation13_spill] sm:$0xff]  ;;  %v3408_v1 = vmul.f32 0.5, %v673_v19 }
 0x11b   :  { %v780_v21 = vsel %vm4671_vm14, %v4670_v57, 0.0  ;;  %vm4672_vm15 = vmmov %vm4668_vm0 }
 0x11c   :  { %v782_v32 = vsel %vm4672_vm15, %v739_v49, 0.0  ;;  %v781_v42 = vadd.f32 %v780_v21, %v4673_v56  ;;  %vm4675_vm2 = vmmov %vm4668_vm0  ;;  %v770_v15 = vadd.f32 %v769_v18, %v768_v60  ;;  %v4694_v21 = vld [vmem:[#allocation10_spill] sm:$0xff] }
 0x11d   :  { %v793_v41 = vsel %vm4675_vm2, %v4674_v28, 0.0  ;;  %vm4677_vm3 = vmmov %vm4668_vm0 }
 0x11e   :  { %v794_v3 = vadd.f32 %v793_v41, %v4676_v26  ;;  %v795_v16 = vsel %vm4677_vm3, %v743_v7, 0.0  ;;  %vm4679_vm4 = vmmov %vm4668_vm0  ;;  %v783_v2 = vadd.f32 %v782_v32, %v781_v42  ;;  %v771_v12 = vrot.slane %v770_v15, 4 }
 0x11f   :  { %v806_v45 = vsel %vm4679_vm4, %v4678_v24, 0.0  ;;  %vm4681_vm5 = vmmov %vm4668_vm0 }
 0x120   :  { %v807_v51 = vadd.f32 %v806_v45, %v4680_v13  ;;  %v808_v39 = vsel %vm4681_vm5, %v747_v4, 0.0  ;;  %v796_v46 = vadd.f32 %v795_v16, %v794_v3  ;;  %vm4683_vm7 = vmmov %vm4668_vm0  ;;  %v784_v55 = vrot.slane %v783_v2, 4  ;;  %v4696_v3 = vld [vmem:[#allocation19_spill] sm:$0xff] }
 0x121   :  { %v819_v29 = vsel %vm4683_vm7, %v4682_v53, 0.0  ;;  %vm4684_vm8 = vmmov %vm4668_vm0  ;;  %v772_v22 = vadd.f32 %v771_v12, %v770_v15 }
 0x122   :  { %v821_v63 = vsel %vm4684_vm8, %v751_v33, 0.0  ;;  %v809_v11 = vadd.f32 %v808_v39, %v807_v51  ;;  %v820_v30 = vadd.f32 %v819_v29, %v4685_v8  ;;  %vm4687_vm9 = vmmov %vm4668_vm0  ;;  %v797_v10 = vrot.slane %v796_v46, 4 }
 0x123   :  { %v832_v20 = vsel %vm4687_vm9, %v4686_v35, 0.0  ;;  %vm4689_vm10 = vmmov %vm4668_vm0  ;;  %v785_v23 = vadd.f32 %v784_v55, %v783_v2  ;;  %v773_v58 = vrot.slane %v772_v22, 2 }
 0x124   :  { %v833_v31 = vadd.f32 %v832_v20, %v4688_v44  ;;  %v834_v49 = vsel %vm4689_vm10, %v755_v6, 0.0  ;;  %v810_v47 = vrot.slane %v809_v11, 4  ;;  %v822_v25 = vadd.f32 %v821_v63, %v820_v30  ;;  %vm4691_vm1 = vmmov %vm4668_vm0  ;;  %v4698_v44 = vld [vmem:[#allocation15_spill] sm:$0xff] }
 0x125   :  { %v845_v62 = vsel %vm4691_vm1, %v4690_v27, 0.0  ;;  %v798_v7 = vadd.f32 %v797_v10, %v796_v46  ;;  %v786_v37 = vrot.slane %v785_v23, 2  ;;  %vm4693_vm11 = vmmov %vm4668_vm0  ;;  %v774_v50 = vadd.f32 %v773_v58, %v772_v22  ;;  %v4701_v58 = vld [vmem:[#allocation33_spill] sm:$0xff] }
 0x126   :  { %v835_v61 = vadd.f32 %v834_v49, %v833_v31  ;;  %v846_v4 = vadd.f32 %v845_v62, %v4692_v38  ;;  %v811_v33 = vadd.f32 %v810_v47, %v809_v11  ;;  %v823_v48 = vrot.slane %v822_v25, 4  ;;  %vm4695_vm12 = vmmov %vm4668_vm0 }
 0x127   :  { %v847_v19 = vsel %vm4693_vm11, %v759_v5, 0.0  ;;  %v799_v36 = vrot.slane %v798_v7, 2  ;;  %v787_v60 = vadd.f32 %v786_v37, %v785_v23  ;;  %v858_v32 = vsel %vm4695_vm12, %v4694_v21, 0.0  ;;  %vm4697_vm6 = vmmov %vm4668_vm0  ;;  %v4707_v21 = vld [vmem:[#allocation32_spill] sm:$0xff] }
 0x128   :  { %v836_v34 = vrot.slane %v835_v61, 4  ;;  %v848_v6 = vadd.f32 %v847_v19, %v846_v4  ;;  %v812_v18 = vrot.slane %v811_v33, 2  ;;  %v824_v57 = vadd.f32 %v823_v48, %v822_v25  ;;  %v4700_v25 = vld [vmem:[#allocation21_spill] sm:$0xff]  ;;  %vm4705_vm13 = vmmov %vm4668_vm0 }
 0x129   :  { %v775_v54 = vrot.slane %v774_v50, 1  ;;  %v800_v56 = vadd.f32 %v799_v36, %v798_v7  ;;  %v788_v41 = vrot.slane %v787_v60, 1  ;;  %v859_v16 = vadd.f32 %v858_v32, %v4696_v3  ;;  %v4702_v19 = vld [vmem:[#allocation29_spill] sm:$0xff]  ;;  %vm4706_vm14 = vmmov %vm4668_vm0 }
 0x12a   :  { %v837_v42 = vadd.f32 %v836_v34, %v835_v61  ;;  %v849_v28 = vrot.slane %v848_v6, 4  ;;  %v813_v15 = vadd.f32 %v812_v18, %v811_v33  ;;  %v825_v26 = vrot.slane %v824_v57, 2  ;;  %vm4709_vm15 = vmmov %vm4668_vm0 }
 0x12b   :  { %v776_v5 = vadd.f32 %v775_v54, %v774_v50  ;;  %v801_v24 = vrot.slane %v800_v56, 1  ;;  %v789_v13 = vadd.f32 %v788_v41, %v787_v60  ;;  %v860_v12 = vsel %vm4697_vm6, %v763_v40, 0.0  ;;  %v4704_v60 = vld [vmem:[#allocation31_spill] sm:$0xff]  ;;  %vm4711_vm2 = vmmov %vm4668_vm0 }
 0x12c   :  { %v838_v45 = vrot.slane %v837_v42, 2  ;;  %v850_v2 = vadd.f32 %v849_v28, %v848_v6  ;;  %v814_v51 = vrot.slane %v813_v15, 1  ;;  %v826_v39 = vadd.f32 %v825_v26, %v824_v57  ;;  %v4708_v54 = vld [vmem:[#allocation3_spill] sm:$0xff]  ;;  %vm4713_vm3 = vmmov %vm4668_vm0 }
 0x12d   :  { %v802_v46 = vadd.f32 %v801_v24, %v800_v56  ;;  %v861_v63 = vadd.f32 %v860_v12, %v859_v16  ;;  %v868_v8 = vmul.f32 %v776_v5, %v3332_v52  ;;  %v869_v30 = vmul.f32 %v789_v13, %v3335_v14  ;;  %v4712_v16 = vld [vmem:[#allocation34_spill] sm:$0xff]  ;;  %vm4720_vm4 = vmmov %vm4668_vm0 }
 0x12e   :  { %v839_v53 = vadd.f32 %v838_v45, %v837_v42  ;;  %v851_v29 = vrot.slane %v850_v2, 2  ;;  %v815_v55 = vadd.f32 %v814_v51, %v813_v15  ;;  %v827_v11 = vrot.slane %v826_v39, 1  ;;  %v4710_v15 = vld [vmem:[#allocation4_spill] sm:$0xff]  ;;  %vm4724_vm5 = vmmov %vm4668_vm0 }
 0x12f   :  { %v862_v22 = vrot.slane %v861_v63, 4  ;;  %v870_v10 = vmul.f32 %v802_v46, %v3344_v59  ;;  %v4699_v31 = vrot.slane %v4698_v44, 1  ;;  %v3437_v47 = vmul.f32 0.03125, %v868_v8  ;;  %vm4736_vm7 = vmmov %vm4668_vm0 }
 0x130   :  { %v840_v35 = vrot.slane %v839_v53, 1  ;;  %v852_v20 = vadd.f32 %v851_v29, %v850_v2  ;;  %v828_v40 = vadd.f32 %v827_v11, %v826_v39  ;;  %v871_v23 = vmul.f32 %v815_v55, %v3352_v17  ;;  %vm4737_vm8 = vmmov %vm4668_vm0 }
 0x131   :  { %v3434_v49 = vadd.f32 %v4699_v31, %v4698_v44  ;;  %v688_v52 = vmul.f32 %v3395_v9, %v4700_v25  ;;  %v863_v62 = vadd.f32 %v862_v22, %v861_v63  ;;  %v689_v7 = vmul.f32 %v3408_v1, %v4701_v58  ;;  %v4703_v1 = vld [vmem:[#allocation30_spill] sm:$0xff]  ;;  %v4717_v31 = vld [vmem:[#allocation24_spill] sm:$0xff]  ;;  %v4721_v58 = vld [vmem:[#allocation25_spill] sm:$0xff] }
 0x132   :  { %v841_v27 = vadd.f32 %v840_v35, %v839_v53  ;;  %v853_v14 = vrot.slane %v852_v20, 1  ;;  %v872_v59 = vmul.f32 %v828_v40, %v3355_v0  ;;  %v3444_v61 = vmul.f32 0.03125, %v869_v30  ;;  %v4714_v30 = vld [vmem:[#allocation22_spill] sm:$0xff]  ;;  %vm4738_vm9 = vmmov %vm4668_vm0 }
 0x133   :  { %v3446_v38 = vmul.f32 0.03125, %v870_v10  ;;  %v864_v37 = vrot.slane %v863_v62, 2  ;;  %v3449_v33 = vmul.f32 0.03125, %v871_v23  ;;  %v884_v9 = vsel %vm4668_vm0, %v3437_v47, -inf  ;;  %v4716_v10 = vld [vmem:[#allocation23_spill] sm:$0xff]  ;;  %v4718_v23 = vld [vmem:[#allocation2_spill] sm:$0xff]  ;;  %vm4739_vm10 = vmmov %vm4668_vm0 }
 0x134   :  { %v854_v4 = vadd.f32 %v853_v14, %v852_v20  ;;  %v873_v17 = vmul.f32 %v841_v27, %v3364_v43  ;;  %v3451_v48 = vmul.f32 0.03125, %v872_v59  ;;  %v947_v50 = vmul.f32 2.0, %v4702_v19  ;;  %v4715_v20 = vld [vmem:[#allocation20_spill] sm:$0xff]  ;;  %v4722_v59 = vld [vmem:[#allocation26_spill] sm:$0xff]  ;;  %vm4741_vm1 = vmmov %vm4668_vm0 }
 0x135   :  { %v948_v36 = vmul.f32 2.0, %v4703_v1  ;;  %v865_v0 = vadd.f32 %v864_v37, %v863_v62  ;;  %v949_v18 = vmul.f32 2.0, %v4704_v60  ;;  %v885_v43 = vsel %vm4705_vm13, %v3444_v61, -inf  ;;  %v4723_v37 = vld [vmem:[#allocation27_spill] sm:$0xff]  ;;  %vm4743_vm11 = vmmov %vm4668_vm0 }
 0x136   :  { %v874_v34 = vmul.f32 %v854_v4, %v688_v52  ;;  %v3457_v6 = vmul.f32 0.03125, %v873_v17  ;;  %v888_v57 = vsel %vm4706_vm14, %v3451_v48, -inf  ;;  %v950_v32 = vmul.f32 2.0, %v4707_v21  ;;  %vm4747_vm12 = vmmov %vm4668_vm0 }
 0x137   :  { %v951_v56 = vmul.f32 2.0, %v4708_v54  ;;  %v866_v42 = vrot.slane %v865_v0, 1  ;;  %v3471_v26 = vmul.f32 2.0, %v4710_v15  ;;  %v886_v3 = vsel %vm4711_vm2, %v3446_v38, -inf  ;;  %vm4749_vm6 = vmmov %vm4668_vm0 }
 0x138   :  { %v3466_v28 = vmul.f32 0.03125, %v874_v34  ;;  %v890_v41 = vsel %vm4709_vm15, %v3457_v6, -inf  ;;  %v3476_v5 = vmul.f32 2.0, %v4712_v16  ;;  %v3479_v24 = vmul.f32 2.0, %v3434_v49 }
 0x139   :  { %v955_v45 = vsub.f32 1.0, %v947_v50  ;;  %v867_v2 = vadd.f32 %v866_v42, %v865_v0  ;;  %v889_v13 = vmax.f32 %v884_v9, %v888_v57  ;;  %v956_v51 = vsub.f32 1.0, %v948_v36  ;;  %v4725_v50 = vld [vmem:[#allocation28_spill] sm:$0xff] }
 0x13a   :  { %v957_v39 = vsub.f32 1.0, %v949_v18  ;;  %v891_v12 = vmax.f32 %v885_v43, %v890_v41  ;;  %v892_v46 = vsel %vm4713_vm3, %v3466_v28, -inf  ;;  %v958_v53 = vsub.f32 1.0, %v950_v32 }
 0x13b   :  { %v959_v29 = vsub.f32 1.0, %v951_v56  ;;  %v875_v63 = vmul.f32 %v867_v2, %v689_v7  ;;  %v960_v55 = vsub.f32 1.0, %v3471_v26  ;;  %v961_v11 = vsub.f32 1.0, %v3476_v5 }
 0x13c   :  { %v962_v8 = vsub.f32 1.0, %v3479_v24  ;;  %v963_v35 = vadd.f32 %v955_v45, %v4714_v30  ;;  %v964_v22 = vadd.f32 %v956_v51, %v4715_v20  ;;  %v965_v44 = vadd.f32 %v957_v39, %v4716_v10 }
 0x13d   :  { %v966_v40 = vadd.f32 %v958_v53, %v4717_v31  ;;  %v3491_v25 = vsub.f32 1.0, %v4718_v23  ;;  %v883_v52 = vmul.f32 0.03125, %v875_v63  ;;  %v887_v27 = vsel %vm4720_vm4, %v3449_v33, -inf }
 0x13e   :  { %v893_v14 = vmax.f32 %v886_v3, %v892_v46  ;;  %v896_v62 = vmax.f32 %v889_v13, %v891_v12  ;;  %v967_v7 = vadd.f32 %v959_v29, %v4721_v58  ;;  %v968_v4 = vadd.f32 %v960_v55, %v4722_v59 }
 0x13f   :  { %4719 = vst [vmem:[#allocation5_spill] sm:$0xff] %v3491_v25  ;;  %v969_v17 = vadd.f32 %v961_v11, %v4723_v37  ;;  %v894_v9 = vsel %vm4724_vm5, %v883_v52, -inf  ;;  %v970_v36 = vadd.f32 %v962_v8, %v4725_v50  ;;  %v3500_v0 = vsub.f32 0.0, %v963_v35 }
 0x140   :  { %v3502_v34 = vsub.f32 0.0, %v964_v22  ;;  %v895_v18 = vmax.f32 %v887_v27, %v894_v9  ;;  %v3504_v43 = vsub.f32 0.0, %v965_v44  ;;  %v3506_v57 = vsub.f32 0.0, %v966_v40 }
 0x141   :  { %4726 = vst [vmem:[#allocation11_spill] sm:$0xff] %v3500_v0  ;;  %v979_v32 = vmul.f32 %v4714_v30, %v4718_v23  ;;  %v980_v56 = vmul.f32 %v4715_v20, %v4718_v23  ;;  %v981_v42 = vmul.f32 %v4716_v10, %v4718_v23  ;;  %v982_v41 = vmul.f32 %v4717_v31, %v4718_v23 }
 0x142   :  { %4727 = vst [vmem:[#allocation6_spill] sm:$0xff] %v3502_v34  ;;  %v983_v26 = vmul.f32 %v4721_v58, %v4718_v23  ;;  %v897_v3 = vmax.f32 %v893_v14, %v895_v18  ;;  %v3518_v5 = vsub.f32 0.0, %v967_v7  ;;  %v3520_v24 = vsub.f32 0.0, %v968_v4 }
 0x143   :  { %4728 = vst [vmem:[#allocation13_spill] sm:$0xff] %v3504_v43  ;;  %v3522_v2 = vsub.f32 0.0, %v969_v17  ;;  %v3524_v13 = vsub.f32 0.0, %v970_v36  ;;  %v984_v12 = vmul.f32 %v4722_v59, %v4718_v23  ;;  %v987_v46 = vadd.f32 %v979_v32, %v955_v45 }
 0x144   :  { %4729 = vst [vmem:[#allocation7_spill] sm:$0xff] %v3506_v57  ;;  %v988_v63 = vadd.f32 %v980_v56, %v956_v51  ;;  %v898_v35 = vmax.f32 %v896_v62, %v897_v3  ;;  %v985_v22 = vmul.f32 %v4723_v37, %v4718_v23  ;;  %v986_v44 = vmul.f32 %v4725_v50, %v4718_v23 }
 0x145   :  { %4730 = vst [vmem:[#allocation14_spill] sm:$0xff] %v3518_v5  ;;  %v3532_v40 = vadd.f32 %v981_v42, %v957_v39  ;;  %v3534_v27 = vadd.f32 %v982_v41, %v958_v53  ;;  %v3536_v14 = vadd.f32 %v983_v26, %v959_v29  ;;  %v995_v7 = vmax.f32 %v987_v46, 1e-15 }
 0x146   :  { %4731 = vst [vmem:[#allocation8_spill] sm:$0xff] %v3520_v24  ;;  %v996_v4 = vmax.f32 %v988_v63, 1e-15  ;;  %v899_v17 = vsub.f32 %v3437_v47, %v898_v35  ;;  %v900_v45 = vsub.f32 %v3444_v61, %v898_v35  ;;  %v901_v51 = vsub.f32 %v3446_v38, %v898_v35 }
 0x147   :  { %4732 = vst [vmem:[#allocation17_spill] sm:$0xff] %v3522_v2  ;;  %v902_v62 = vsub.f32 %v3449_v33, %v898_v35  ;;  %v903_v9 = vsub.f32 %v3451_v48, %v898_v35  ;;  %v904_v36 = vsub.f32 %v3457_v6, %v898_v35  ;;  %v905_v39 = vsub.f32 %v3466_v28, %v898_v35 }
 0x148   :  { %4733 = vst [vmem:[#allocation9_spill] sm:$0xff] %v3524_v13  ;;  %v906_v53 = vsub.f32 %v883_v52, %v898_v35  ;;  %v907_v18 = vmul.f32 1.442695, %v899_v17  ;;  %v909_v29 = vmul.f32 1.442695, %v900_v45  ;;  %2173 = vrcp.f32 %v995_v7 }
 0x149   :  { %v911_v32 = vmul.f32 1.442695, %v901_v51  ;;  %v913_v56 = vmul.f32 1.442695, %v902_v62  ;;  %v3545_v42 = vadd.f32 %v984_v12, %v960_v55  ;;  %v3547_v47 = vadd.f32 %v985_v22, %v961_v11 }
 0x14a   :  { %2175 = vrcp.f32 %v996_v4  ;;  %v915_v61 = vmul.f32 1.442695, %v903_v9  ;;  %v3549_v38 = vadd.f32 %v986_v44, %v962_v8  ;;  %v997_v33 = vmax.f32 %v3532_v40, 1e-15 }
 0x14b   :  { %2177 = vpow2.f32 %v907_v18  ;;  %v917_v48 = vmul.f32 1.442695, %v904_v36  ;;  %v919_v6 = vmul.f32 1.442695, %v905_v39  ;;  %v921_v28 = vmul.f32 1.442695, %v906_v53 }
 0x14c   :  { %2179 = vpow2.f32 %v909_v29  ;;  %v998_v52 = vmax.f32 %v3534_v27, 1e-15  ;;  %v1011_v55 = vmul.f32 %v3500_v0, %v3500_v0  ;;  %v1012_v11 = vmul.f32 %v3502_v34, %v3502_v34 }
 0x14d   :  { %2181 = vpow2.f32 %v911_v32  ;;  %v1013_v8 = vmul.f32 %v3504_v43, %v3504_v43  ;;  %v1014_v41 = vmul.f32 %v3506_v57, %v3506_v57  ;;  %v1015_v26 = vmul.f32 %v3518_v5, %v3518_v5 }
 0x14e   :  { %2183 = vpow2.f32 %v913_v56  ;;  %v3563_v3 = vpop.eup %2173  ;;  %v999_v12 = vmax.f32 %v3536_v14, 1e-15  ;;  %v1016_v46 = vmul.f32 %v3520_v24, %v3520_v24  ;;  %v1017_v63 = vmul.f32 %v3522_v2, %v3522_v2 }
 0x14f   :  { %4734 = vst [vmem:[#allocation18_spill] sm:$0xff] %v3563_v3  ;;  %2185 = vpow2.f32 %v915_v61  ;;  %v1000_v22 = vmax.f32 %v3545_v42, 1e-15  ;;  %v1001_v44 = vmax.f32 %v3547_v47, 1e-15  ;;  %v1018_v40 = vmul.f32 %v3524_v13, %v3524_v13 }
 0x150   :  { %v3570_v35 = vpop.eup %2175  ;;  %2187 = vpow2.f32 %v917_v48  ;;  %v3580_v7 = vmul.f32 %v1011_v55, %v4718_v23  ;;  %v3583_v4 = vmul.f32 %v1012_v11, %v4718_v23  ;;  %v3586_v17 = vmul.f32 %v1013_v8, %v4718_v23 }
 0x151   :  { %4735 = vst [vmem:[#allocation12_spill] sm:$0xff] %v3570_v35  ;;  %v3576_v27 = vpop.eup %2177  ;;  %2189 = vpow2.f32 %v919_v6  ;;  %v1022_v62 = vmul.f32 %v1014_v41, %v4718_v23  ;;  %v3594_v9 = vmul.f32 %v1015_v26, %v4718_v23  ;;  %v1024_v53 = vmul.f32 %v1016_v46, %v4718_v23 }
 0x152   :  { %v3588_v45 = vpop.eup %2179  ;;  %v923_v51 = vsel %vm4736_vm7, %v3576_v27, 0.0  ;;  %2191 = vpow2.f32 %v921_v28  ;;  %v1025_v18 = vmul.f32 %v1017_v63, %v4718_v23  ;;  %v1026_v56 = vmul.f32 %v1018_v40, %v4718_v23 }
 0x153   :  { %v3596_v36 = vpop.eup %2181  ;;  %v924_v39 = vsel %vm4737_vm8, %v3588_v45, 0.0  ;;  %2193 = vrcp.f32 %v997_v33  ;;  %v1027_v42 = vmul.f32 2.0, %v3500_v0  ;;  %v1028_v48 = vmul.f32 2.0, %v3502_v34 }
 0x154   :  { %v3602_v29 = vpop.eup %2183  ;;  %v925_v32 = vadd.f32 %v924_v39, %v923_v51  ;;  %v926_v61 = vsel %vm4738_vm9, %v3596_v36, 0.0  ;;  %v1029_v6 = vmul.f32 2.0, %v3504_v43  ;;  %v1030_v28 = vmul.f32 2.0, %v3506_v57 }
 0x155   :  { %v3606_v47 = vpop.eup %2185  ;;  %2195 = vrcp.f32 %v998_v52  ;;  %v1031_v33 = vmul.f32 2.0, %v3518_v5  ;;  %v1032_v8 = vmul.f32 2.0, %v3520_v24  ;;  %v928_v41 = vsel %vm4739_vm10, %v3602_v29, 0.0 }
 0x156   :  { %v3613_v55 = vpop.eup %2187  ;;  %v927_v11 = vadd.f32 %v926_v61, %v925_v32  ;;  %2197 = vrcp.f32 %v999_v12  ;;  %v1033_v26 = vmul.f32 2.0, %v3522_v2  ;;  %v1034_v46 = vmul.f32 2.0, %v3524_v13 }
 0x157   :  { %v3621_v63 = vpop.eup %2189  ;;  %v930_v51 = vsel %vm4741_vm1, %v3606_v47, 0.0  ;;  %2199 = vrcp.f32 %v1000_v22  ;;  %v1035_v52 = vmul.f32 %v1027_v42, %v3491_v25  ;;  %v932_v32 = vsel %vm4743_vm11, %v3613_v55, 0.0 }
 0x158   :  { %4740 = vst [vmem:[#allocation16_spill] sm:$0xff] %v3621_v63  ;;  %v929_v40 = vadd.f32 %v928_v41, %v927_v11  ;;  %v3626_v39 = vpop.eup %2191  ;;  %v1036_v12 = vmul.f32 %v1028_v48, %v3491_v25  ;;  %v1037_v61 = vmul.f32 %v1029_v6, %v3491_v25  ;;  %v1038_v14 = vmul.f32 %v1030_v28, %v3491_v25 }
 0x159   :  { %4742 = vst [vmem:[#allocation10_spill] sm:$0xff] %v3626_v39  ;;  %v3633_v23 = vpop.eup %2193  ;;  %v1039_v41 = vmul.f32 %v1031_v33, %v3491_v25  ;;  %v1040_v22 = vmul.f32 %v1032_v8, %v3491_v25  ;;  %v1041_v42 = vmul.f32 %v1033_v26, %v3491_v25  ;;  %v1042_v13 = vmul.f32 %v1034_v46, %v3491_v25 }
 0x15a   :  { %4744 = vst [vmem:[#allocation19_spill] sm:$0xff] %v3633_v23  ;;  %v931_v11 = vadd.f32 %v930_v51, %v929_v40  ;;  %v1043_v2 = vmul.f32 %v1035_v52, %v4702_v19  ;;  %v1044_v24 = vmul.f32 %v1036_v12, %v4703_v1  ;;  %v1045_v48 = vmul.f32 %v1037_v61, %v4704_v60 }
 0x15b   :  { %v3642_v6 = vpop.eup %2195  ;;  %v1046_v5 = vmul.f32 %v1038_v14, %v4707_v21  ;;  %v1047_v40 = vmul.f32 %v1039_v41, %v4708_v54  ;;  %v1048_v33 = vmul.f32 %v1040_v22, %v4710_v15  ;;  %v934_v26 = vsel %vm4747_vm12, %v3621_v63, 0.0 }
 0x15c   :  { %4745 = vst [vmem:[#allocation15_spill] sm:$0xff] %v3642_v6  ;;  %v933_v28 = vadd.f32 %v932_v32, %v931_v11  ;;  %v3647_v8 = vpop.eup %2197  ;;  %2201 = vrcp.f32 %v1001_v44  ;;  %v1049_v19 = vmul.f32 %v1041_v42, %v4712_v16  ;;  %v1050_v1 = vmul.f32 %v1042_v13, %v3434_v49 }
 0x15d   :  { %4746 = vst [vmem:[#allocation21_spill] sm:$0xff] %v3647_v8  ;;  %v3653_v60 = vpop.eup %2199  ;;  %v936_v21 = vsel %vm4749_vm6, %v3626_v39, 0.0  ;;  %v4750_v54 = vmax.f32 %v3549_v38, 1e-15  ;;  %v1051_v15 = vadd.f32 %v1043_v2, %v3580_v7  ;;  %v1052_v14 = vadd.f32 %v1044_v24, %v3583_v4 }
 0x15e   :  { %4748 = vst [vmem:[#allocation33_spill] sm:$0xff] %v3653_v60  ;;  %v935_v46 = vadd.f32 %v934_v26, %v933_v28  ;;  %v1053_v51 = vadd.f32 %v1045_v48, %v3586_v17  ;;  %v1054_v44 = vadd.f32 %v1046_v5, %v1022_v62  ;;  %v1059_v16 = vmul.f32 %v3491_v25, %v3491_v25 }
 0x15f   :  { %2203 = vrcp.f32 %v4750_v54  ;;  %v1055_v49 = vadd.f32 %v1047_v40, %v3594_v9  ;;  %v1056_v13 = vadd.f32 %v1048_v33, %v1024_v53  ;;  %v1057_v52 = vadd.f32 %v1049_v19, %v1025_v18 }
 0x160   :  { %v1058_v32 = vadd.f32 %v1050_v1, %v1026_v56  ;;  %v1060_v12 = vmul.f32 %v1059_v16, %v4714_v30  ;;  %v1061_v38 = vmul.f32 %v1059_v16, %v4715_v20  ;;  %v1062_v61 = vmul.f32 %v1059_v16, %v4716_v10 }
 0x161   :  { %v1063_v2 = vmul.f32 %v1059_v16, %v4717_v31  ;;  %v937_v24 = vadd.f32 %v936_v21, %v935_v46  ;;  %v1064_v7 = vmul.f32 %v1059_v16, %v4721_v58  ;;  %v1065_v5 = vmul.f32 %v1059_v16, %v4722_v59 }
 0x162   :  { %v1066_v4 = vmul.f32 %v1059_v16, %v4723_v37  ;;  %v3672_v17 = vpop.eup %2201  ;;  %v1067_v62 = vmul.f32 %v1059_v16, %v4725_v50  ;;  %v1068_v9 = vadd.f32 %v1060_v12, %v1051_v15  ;;  %v1069_v53 = vadd.f32 %v1061_v38, %v1052_v14 }
 0x163   :  { %4751 = vst [vmem:[#allocation29_spill] sm:$0xff] %v3672_v17  ;;  %v1070_v30 = vadd.f32 %v1062_v61, %v1053_v51  ;;  %v1071_v20 = vadd.f32 %v1063_v2, %v1054_v44  ;;  %v1072_v10 = vadd.f32 %v1064_v7, %v1055_v49  ;;  %v1073_v56 = vadd.f32 %v1065_v5, %v1056_v13 }
 0x164   :  { %v1074_v31 = vadd.f32 %v1066_v4, %v1057_v52  ;;  %v1075_v11 = vadd.f32 %v1067_v62, %v1058_v32  ;;  %v1076_v58 = vmul.f32 %v3563_v3, %v1068_v9  ;;  %v1077_v59 = vmul.f32 %v3570_v35, %v1069_v53 }
 0x165   :  { %v3675_v18 = vpop.eup %2203  ;;  %v1078_v37 = vmul.f32 %v3633_v23, %v1070_v30  ;;  %v1079_v41 = vmul.f32 %v3642_v6, %v1071_v20  ;;  %v1080_v50 = vmul.f32 %v3647_v8, %v1072_v10  ;;  %v1081_v22 = vmul.f32 %v3653_v60, %v1073_v56 }
 0x166   :  { %4752 = vst [vmem:[#allocation30_spill] sm:$0xff] %v3675_v18  ;;  %v1082_v42 = vmul.f32 %v3672_v17, %v1074_v31  ;;  %v1084_v48 = vmul.f32 %v3563_v3, %v1076_v58  ;;  %v1085_v28 = vmul.f32 %v3570_v35, %v1077_v59  ;;  %v1083_v33 = vmul.f32 %v3675_v18, %v1075_v11 }
 0x167   :  { %v1086_v40 = vmul.f32 %v3633_v23, %v1078_v37  ;;  %v1087_v26 = vmul.f32 %v3642_v6, %v1079_v41  ;;  %2205 = vrcp.f32 %v937_v24  ;;  %v1088_v19 = vmul.f32 %v3647_v8, %v1080_v50 }
 0x168   :  { %v1089_v1 = vmul.f32 %v3653_v60, %v1081_v22  ;;  %v1090_v46 = vmul.f32 %v3672_v17, %v1082_v42  ;;  %v3692_v21 = vmax.f32 %v1084_v48, 1e-30  ;;  %v3694_v54 = vmax.f32 %v1085_v28, 1e-30 }
 0x169   :  { %v3696_v15 = vmax.f32 %v1086_v40, 1e-30  ;;  %v1091_v14 = vmul.f32 %v3675_v18, %v1083_v33  ;;  %v3699_v51 = vmax.f32 %v1087_v26, 1e-30  ;;  %v3701_v44 = vmax.f32 %v1088_v19, 1e-30 }
 0x16a   :  { %2207 = vrsqrt.f32 %v3692_v21  ;;  %v3704_v16 = vmax.f32 %v1089_v1, 1e-30  ;;  %v3709_v13 = vmax.f32 %v1090_v46, 1e-30  ;;  %v3717_v32 = vmax.f32 %v3491_v25, 1e-15 }
 0x16b   :  { %2209 = vrsqrt.f32 %v3694_v54  ;;  %v3712_v52 = vmax.f32 %v1091_v14, 1e-30  ;;  %vm1106_vm0 = vweird.f32 %v3692_v21  ;;  %vm1116_vm13 = vweird.f32 %v3694_v54 }
 0x16c   :  { %2211 = vrsqrt.f32 %v3696_v15  ;;  %vm1126_vm14 = vweird.f32 %v3696_v15  ;;  %vm1136_vm15 = vweird.f32 %v3699_v51  ;;  %vm1146_vm2 = vweird.f32 %v3701_v44 }
 0x16d   :  { %v3707_v49 = vpop.eup %2205  ;;  %2213 = vrsqrt.f32 %v3699_v51  ;;  %vm1156_vm3 = vweird.f32 %v3704_v16 }
 0x16e   :  { %2215 = vrsqrt.f32 %v3701_v44  ;;  %v3721_v12 = vmul.f32 %v3707_v49, %v3576_v27  ;;  %v3726_v61 = vmul.f32 %v3707_v49, %v3588_v45  ;;  %v3730_v2 = vmul.f32 %v3707_v49, %v3596_v36 }
 0x16f   :  { %2217 = vrsqrt.f32 %v3704_v16 }
 0x170   :  { %v2208_v38 = vpop.eup %2207  ;;  %4753 = vst [vmem:[#allocation31_spill] sm:$0xff] %v3730_v2  ;;  %2219 = vrsqrt.f32 %v3709_v13 }
 0x171   :  { %v2210_v24 = vpop.eup %2209  ;;  %v1101_v7 = vmul.f32 %v2208_v38, %v3692_v21  ;;  %2221 = vrsqrt.f32 %v3712_v52  ;;  %vm1107_vm4 = vweird.f32 %v2208_v38 }
 0x172   :  { %v2212_v27 = vpop.eup %2211  ;;  %v1111_v45 = vmul.f32 %v2210_v24, %v3694_v54  ;;  %vm1117_vm5 = vweird.f32 %v2210_v24  ;;  %vm1108_vm12 = vmor %vm1106_vm0, %vm1107_vm4  ;;  %vm4754_vm4 = vweird.f32 %v3709_v13 }
 0x173   :  { %v2214_v36 = vpop.eup %2213  ;;  %v1102_v5 = vmul.f32 %v2208_v38, %v1101_v7  ;;  %v1121_v4 = vmul.f32 %v2212_v27, %v3696_v15  ;;  %vm1127_vm8 = vweird.f32 %v2212_v27  ;;  %vm1118_vm7 = vmor %vm1116_vm13, %vm1117_vm5 }
 0x174   :  { %v2216_v62 = vpop.eup %2215  ;;  %v1112_v9 = vmul.f32 %v2210_v24, %v1111_v45  ;;  %v1131_v53 = vmul.f32 %v2214_v36, %v3699_v51  ;;  %vm1137_vm9 = vweird.f32 %v2214_v36  ;;  %vm1128_vm11 = vmor %vm1126_vm14, %vm1127_vm8 }
 0x175   :  { %v2218_v30 = vpop.eup %2217  ;;  %v1103_v20 = vmul.f32 0.5, %v1102_v5  ;;  %v1122_v10 = vmul.f32 %v2212_v27, %v1121_v4  ;;  %v1141_v56 = vmul.f32 %v2216_v62, %v3701_v44  ;;  %vm1147_vm10 = vweird.f32 %v2216_v62  ;;  %vm1138_vm0 = vmor %vm1136_vm15, %vm1137_vm9 }
 0x176   :  { %v2220_v31 = vpop.eup %2219  ;;  %v1113_v11 = vmul.f32 0.5, %v1112_v9  ;;  %v1132_v58 = vmul.f32 %v2214_v36, %v1131_v53  ;;  %v1151_v59 = vmul.f32 %v2218_v30, %v3704_v16  ;;  %vm1157_vm1 = vweird.f32 %v2218_v30  ;;  %vm1148_vm13 = vmor %vm1146_vm2, %vm1147_vm10 }
 0x177   :  { %v2222_v37 = vpop.eup %2221  ;;  %v1104_v41 = vsub.f32 1.5, %v1103_v20  ;;  %v1123_v50 = vmul.f32 0.5, %v1122_v10  ;;  %v1142_v22 = vmul.f32 %v2216_v62, %v1141_v56  ;;  %v1161_v42 = vmul.f32 %v2220_v31, %v3709_v13  ;;  %vm1158_vm14 = vmor %vm1156_vm3, %vm1157_vm1 }
 0x178   :  { %v1114_v48 = vsub.f32 1.5, %v1113_v11  ;;  %v1133_v28 = vmul.f32 0.5, %v1132_v58  ;;  %v1152_v40 = vmul.f32 %v2218_v30, %v1151_v59  ;;  %vm1167_vm6 = vweird.f32 %v2220_v31 }
 0x179   :  { %v1105_v33 = vmul.f32 %v2208_v38, %v1104_v41  ;;  %v1124_v26 = vsub.f32 1.5, %v1123_v50  ;;  %v1143_v19 = vmul.f32 0.5, %v1142_v22  ;;  %v1162_v1 = vmul.f32 %v2220_v31, %v1161_v42  ;;  %vm1168_vm5 = vmor %vm4754_vm4, %vm1167_vm6 }
 0x17a   :  { %v1115_v46 = vmul.f32 %v2210_v24, %v1114_v48  ;;  %v1134_v14 = vsub.f32 1.5, %v1133_v28  ;;  %v1153_v7 = vmul.f32 0.5, %v1152_v40  ;;  %v1171_v45 = vmul.f32 %v2222_v37, %v3712_v52 }
 0x17b   :  { %v3759_v5 = vsel %vm1108_vm12, %v2208_v38, %v1105_v33  ;;  %v1125_v4 = vmul.f32 %v2212_v27, %v1124_v26  ;;  %v1144_v9 = vsub.f32 1.5, %v1143_v19  ;;  %v1163_v53 = vmul.f32 0.5, %v1162_v1 }
 0x17c   :  { %v3764_v20 = vsel %vm1118_vm7, %v2210_v24, %v1115_v46  ;;  %v1135_v10 = vmul.f32 %v2214_v36, %v1134_v14  ;;  %v1154_v56 = vsub.f32 1.5, %v1153_v7  ;;  %v1172_v11 = vmul.f32 %v2222_v37, %v1171_v45 }
 0x17d   :  { %v3769_v58 = vsel %vm1128_vm11, %v2212_v27, %v1125_v4  ;;  %v1145_v38 = vmul.f32 %v2216_v62, %v1144_v9  ;;  %v1164_v59 = vsub.f32 1.5, %v1163_v53  ;;  %vm1177_vm15 = vweird.f32 %v2222_v37 }
 0x17e   :  { %v3774_v41 = vsel %vm1138_vm0, %v2214_v36, %v1135_v10  ;;  %v1155_v24 = vmul.f32 %v2218_v30, %v1154_v56  ;;  %v1173_v50 = vmul.f32 0.5, %v1172_v11  ;;  %v1180_v22 = vmul.f32 %v3759_v5, %v3692_v21 }
 0x17f   :  { %v3781_v27 = vsel %vm1148_vm13, %v2216_v62, %v1145_v38  ;;  %v1165_v42 = vmul.f32 %v2220_v31, %v1164_v59  ;;  %v1181_v48 = vmul.f32 %v3764_v20, %v3694_v54  ;;  %v1182_v28 = vmul.f32 %v3769_v58, %v3696_v15 }
 0x180   :  { %v3787_v36 = vsel %vm1158_vm14, %v2218_v30, %v1155_v24  ;;  %v1174_v40 = vsub.f32 1.5, %v1173_v50  ;;  %v1183_v33 = vmul.f32 %v3774_v41, %v3699_v51  ;;  %v1184_v26 = vmul.f32 %v3781_v27, %v3701_v44 }
 0x181   :  { %4755 = vst [vmem:[#allocation32_spill] sm:$0xff] %v3787_v36  ;;  %v3795_v21 = vmul.f32 %v3707_v49, %v3602_v29  ;;  %v3799_v62 = vmul.f32 %v3707_v49, %v3606_v47  ;;  %v3801_v54 = vsel %vm1168_vm5, %v2220_v31, %v1165_v42  ;;  %vm4759_vm2 = vweird.f32 %v3712_v52 }
 0x182   :  { %4758 = vst [vmem:[#allocation34_spill] sm:$0xff] %v3801_v54  ;;  %vm1178_vm3 = vmor %vm4759_vm2, %vm1177_vm15  ;;  %v3806_v15 = vclamps-f32 %v1180_v22, 0.99999  ;;  %v1175_v51 = vmul.f32 %v2222_v37, %v1174_v40  ;;  %v1185_v44 = vmul.f32 %v3787_v36, %v3704_v16  ;;  %v1186_v29 = vmul.f32 %v3801_v54, %v3709_v13 }
 0x183   :  { %4756 = vst [vmem:[#allocation3_spill] sm:$0xff] %v3795_v21  ;;  %v3812_v30 = vclamps-f32 %v1181_v48, 0.99999  ;;  %v3814_v19 = vclamps-f32 %v1182_v28, 0.99999 }
 0x184   :  { %4757 = vst [vmem:[#allocation4_spill] sm:$0xff] %v3799_v62  ;;  %v3816_v47 = vclamps-f32 %v1183_v33, 0.99999  ;;  %v1204_v31 = vadd.f32 1.0, %v3806_v15  ;;  %v1207_v1 = vmul.f32 -0.5, %v3806_v15  ;;  %v3820_v46 = vsel %vm1178_vm3, %v2222_v37, %v1175_v51 }
 0x185   :  { %4760 = vst [vmem:[#allocation22_spill] sm:$0xff] %v3820_v46  ;;  %v3822_v14 = vclamps-f32 %v1184_v26, 0.99999  ;;  %v1210_v7 = vand.u32 2147483647, %v3806_v15  ;;  %v1213_v16 = vadd.f32 1.0, %v3812_v30  ;;  %v1187_v13 = vmul.f32 %v3820_v46, %v3712_v52 }
 0x186   :  { %2223 = vlog2.f32 %v1204_v31  ;;  %v1208_v45 = vadd.f32 1.0, %v1207_v1  ;;  %v1216_v4 = vmul.f32 -0.5, %v3812_v30  ;;  %v3829_v9 = vclamps-f32 %v1185_v44, 0.99999 }
 0x187   :  { %2225 = vlog2.f32 %v1213_v16  ;;  %v1219_v53 = vand.u32 2147483647, %v3812_v30  ;;  %v1222_v37 = vadd.f32 1.0, %v3814_v19  ;;  %v3833_v10 = vclamps-f32 %v1186_v29, 0.99999 }
 0x188   :  { %vm3835_vm7 = vcmp.lt.f32.partialorder %v1210_v7, 0.0004427343  ;;  %v1217_v11 = vadd.f32 1.0, %v1216_v4  ;;  %v1225_v52 = vmul.f32 -0.5, %v3814_v19  ;;  %v3840_v38 = vclamps-f32 %v1187_v13, 0.99999 }
 0x189   :  { %2227 = vlog2.f32 %v1222_v37  ;;  %v1228_v59 = vand.u32 2147483647, %v3814_v19  ;;  %v1231_v24 = vadd.f32 1.0, %v3816_v47  ;;  %v3845_v50 = vmul.f32 %v3806_v15, %v1208_v45 }
 0x18a   :  { %v1226_v22 = vadd.f32 1.0, %v1225_v52  ;;  %v1234_v42 = vmul.f32 -0.5, %v3816_v47  ;;  %v1237_v48 = vand.u32 2147483647, %v3816_v47  ;;  %vm3849_vm8 = vcmp.lt.f32.partialorder %v1219_v53, 0.0004427343 }
 0x18b   :  { %2229 = vlog2.f32 %v1231_v24  ;;  %v1240_v40 = vadd.f32 1.0, %v3822_v14  ;;  %v1243_v33 = vmul.f32 -0.5, %v3822_v14  ;;  %v3856_v51 = vmul.f32 %v3812_v30, %v1217_v11 }
 0x18c   :  { %v2224_v26 = vpop.eup %2223  ;;  %vm3858_vm9 = vcmp.lt.f32.partialorder %v1228_v59, 0.0004427343  ;;  %v1235_v29 = vadd.f32 1.0, %v1234_v42  ;;  %v1246_v31 = vand.u32 2147483647, %v3822_v14  ;;  %v1249_v13 = vadd.f32 1.0, %v3829_v9 }
 0x18d   :  { %v2226_v1 = vpop.eup %2225  ;;  %v3863_v7 = vmul.f32 0.6931472, %v2224_v26  ;;  %2231 = vlog2.f32 %v1240_v40  ;;  %v1244_v16 = vadd.f32 1.0, %v1243_v33  ;;  %v3869_v4 = vmul.f32 %v3814_v19, %v1226_v22  ;;  %v4816_v53 = vld [vmem:[#allocation22_spill] sm:$0xff] }
 0x18e   :  { %v3866_v45 = vmul.f32 0.6931472, %v2226_v1  ;;  %vm3871_vm10 = vcmp.lt.f32.partialorder %v1237_v48, 0.0004427343  ;;  %v1252_v37 = vmul.f32 -0.5, %v3829_v9  ;;  %v3877_v52 = vmul.f32 %v3816_v47, %v1235_v29 }
 0x18f   :  { %v2228_v11 = vpop.eup %2227  ;;  %vm3879_vm1 = vcmp.lt.f32.partialorder %v1246_v31, 0.0004427343  ;;  %2233 = vlog2.f32 %v1249_v13  ;;  %v1255_v24 = vand.u32 2147483647, %v3829_v9  ;;  %v1258_v40 = vadd.f32 1.0, %v3833_v10 }
 0x190   :  { %v3888_v42 = vmul.f32 0.6931472, %v2228_v11  ;;  %v1253_v48 = vadd.f32 1.0, %v1252_v37  ;;  %v3892_v26 = vmul.f32 %v3822_v14, %v1244_v16  ;;  %v1261_v29 = vmul.f32 -0.5, %v3833_v10 }
 0x191   :  { %v2230_v33 = vpop.eup %2229  ;;  %v1264_v31 = vand.u32 2147483647, %v3833_v10  ;;  %v1267_v1 = vadd.f32 1.0, %v3840_v38  ;;  %vm3903_vm11 = vcmp.lt.f32.partialorder %v1255_v24, 0.0004427343  ;;  %2235 = vlog2.f32 %v1258_v40 }
 0x192   :  { %v3901_v11 = vmul.f32 0.6931472, %v2230_v33  ;;  %v1262_v25 = vadd.f32 1.0, %v1261_v29  ;;  %v1270_v18 = vmul.f32 -0.5, %v3840_v38  ;;  %v3915_v33 = vmul.f32 %v3829_v9, %v1253_v48 }
 0x193   :  { %v2232_v16 = vpop.eup %2231  ;;  %2237 = vlog2.f32 %v1267_v1  ;;  %v1273_v24 = vand.u32 2147483647, %v3840_v38  ;;  %v1276_v13 = vsub.f32 0.0, %v3806_v15  ;;  %vm3923_vm12 = vcmp.lt.f32.partialorder %v1264_v31, 0.0004427343 }
 0x194   :  { %v3912_v17 = vmul.f32 0.6931472, %v2232_v16  ;;  %v1271_v1 = vadd.f32 1.0, %v1270_v18  ;;  %v1277_v16 = vsub.f32 0.0, %v3812_v30  ;;  %v3935_v15 = vmul.f32 %v3833_v10, %v1262_v25 }
 0x195   :  { %v2234_v40 = vpop.eup %2233  ;;  %v1278_v43 = vsub.f32 0.0, %v3814_v19  ;;  %vm3941_vm6 = vcmp.lt.f32.partialorder %v1273_v24, 0.0004427343  ;;  %v1279_v18 = vsub.f32 0.0, %v3816_v47  ;;  %v1280_v30 = vsub.f32 0.0, %v3822_v14 }
 0x196   :  { %v3932_v22 = vmul.f32 0.6931472, %v2234_v40  ;;  %v3939_v31 = vmul.f32 %v3840_v38, %v1271_v1  ;;  %v3948_v40 = vsub.f32 0.0, %v3829_v9  ;;  %v3951_v25 = vsub.f32 0.0, %v3833_v10 }
 0x197   :  { %v2236_v60 = vpop.eup %2235  ;;  %v1284_v48 = vadd.f32 1.0, %v1276_v13  ;;  %v1287_v19 = vmul.f32 -0.5, %v1276_v13  ;;  %v1290_v24 = vand.u32 2147483647, %v1276_v13  ;;  %v1293_v46 = vadd.f32 1.0, %v1277_v16 }
 0x198   :  { %v3953_v1 = vmul.f32 0.6931472, %v2236_v60  ;;  %v1296_v34 = vmul.f32 -0.5, %v1277_v16  ;;  %v3966_v60 = vsub.f32 0.0, %v3840_v38  ;;  %v1299_v0 = vand.u32 2147483647, %v1277_v16 }
 0x199   :  { %v2238_v8 = vpop.eup %2237  ;;  %2239 = vlog2.f32 %v1284_v48  ;;  %v1288_v9 = vadd.f32 1.0, %v1287_v19  ;;  %vm3972_vm0 = vcmp.lt.f32.partialorder %v1290_v24, 0.0004427343  ;;  %v1302_v19 = vadd.f32 1.0, %v1278_v43 }
 0x19a   :  { %v3959_v14 = vmul.f32 0.6931472, %v2238_v8  ;;  %2241 = vlog2.f32 %v1293_v46  ;;  %v1297_v48 = vadd.f32 1.0, %v1296_v34  ;;  %v1305_v23 = vmul.f32 -0.5, %v1278_v43 }
 0x19b   :  { %v1289_v47 = vmul.f32 %v1288_v9, %v1276_v13  ;;  %v1308_v62 = vand.u32 2147483647, %v1278_v43  ;;  %v1311_v10 = vadd.f32 1.0, %v1279_v18  ;;  %2243 = vlog2.f32 %v1302_v19 }
 0x19c   :  { %4777 = vst [vmem:[#allocation20_spill] sm:$0xff] %v3959_v14  ;;  %v1314_v38 = vmul.f32 -0.5, %v1279_v18  ;;  %v1317_v54 = vand.u32 2147483647, %v1279_v18  ;;  %v1320_v46 = vadd.f32 1.0, %v1280_v30  ;;  %v1306_v63 = vadd.f32 1.0, %v1305_v23 }
 0x19d   :  { %vm3976_vm13 = vcmp.lt.f32.partialorder %v1299_v0, 0.0004427343  ;;  %2245 = vlog2.f32 %v1311_v10  ;;  %v1323_v24 = vmul.f32 -0.5, %v1280_v30  ;;  %v1298_v35 = vmul.f32 %v1297_v48, %v1277_v16 }
 0x19e   :  { %v1315_v3 = vadd.f32 1.0, %v1314_v38  ;;  %2247 = vlog2.f32 %v1320_v46  ;;  %v1326_v34 = vand.u32 2147483647, %v1280_v30  ;;  %vm3980_vm14 = vcmp.lt.f32.partialorder %v1308_v62, 0.0004427343 }
 0x19f   :  { %v2240_v6 = vpop.eup %2239  ;;  %v1324_v19 = vadd.f32 1.0, %v1323_v24  ;;  %v1329_v0 = vadd.f32 1.0, %v3948_v40  ;;  %v1307_v36 = vmul.f32 %v1306_v63, %v1278_v43  ;;  %vm3985_vm15 = vcmp.lt.f32.partialorder %v1317_v54, 0.0004427343 }
 0x1a0   :  { %v2242_v13 = vpop.eup %2241  ;;  %v1286_v9 = vmul.f32 0.6931472, %v2240_v6  ;;  %v1332_v16 = vmul.f32 -0.5, %v3948_v40  ;;  %v1316_v10 = vmul.f32 %v1315_v3, %v1279_v18  ;;  %vm3990_vm4 = vcmp.lt.f32.partialorder %v1326_v34, 0.0004427343 }
 0x1a1   :  { %v1295_v2 = vmul.f32 0.6931472, %v2242_v13  ;;  %2249 = vlog2.f32 %v1329_v0  ;;  %v1335_v6 = vand.u32 2147483647, %v3948_v40  ;;  %v2244_v62 = vpop.eup %2243  ;;  %v1338_v43 = vadd.f32 1.0, %v3951_v25 }
 0x1a2   :  { %v1292_v38 = vsel %vm3972_vm0, %v1289_v47, %v1286_v9  ;;  %v1333_v46 = vadd.f32 1.0, %v1332_v16  ;;  %v1341_v63 = vmul.f32 -0.5, %v3951_v25  ;;  %v1304_v18 = vmul.f32 0.6931472, %v2244_v62 }
 0x1a3   :  { %v2246_v54 = vpop.eup %2245  ;;  %v1301_v3 = vsel %vm3976_vm13, %v1298_v35, %v1295_v2  ;;  %v1325_v24 = vmul.f32 %v1324_v19, %v1280_v30  ;;  %vm4001_vm5 = vcmp.lt.f32.partialorder %v1335_v6, 0.0004427343  ;;  %2251 = vlog2.f32 %v1338_v43 }
 0x1a4   :  { %v2248_v13 = vpop.eup %2247  ;;  %v1313_v0 = vmul.f32 0.6931472, %v2246_v54  ;;  %v1342_v8 = vadd.f32 1.0, %v1341_v63  ;;  %v1344_v47 = vand.u32 2147483647, %v3951_v25  ;;  %v1310_v9 = vsel %vm3980_vm14, %v1307_v36, %v1304_v18 }
 0x1a5   :  { %v1322_v16 = vmul.f32 0.6931472, %v2248_v13  ;;  %v1347_v14 = vadd.f32 1.0, %v3966_v60  ;;  %v4790_v35 = vsel %vm3835_vm7, %v3845_v50, %v3863_v7  ;;  %v1334_v30 = vmul.f32 %v1333_v46, %v3948_v40 }
 0x1a6   :  { %v1356_v39 = vsub.f32 %v4790_v35, %v1292_v38  ;;  %v1319_v2 = vsel %vm3985_vm15, %v1316_v10, %v1313_v0  ;;  %v1350_v19 = vmul.f32 -0.5, %v3966_v60  ;;  %v1353_v6 = vand.u32 2147483647, %v3966_v60 }
 0x1a7   :  { %v2250_v21 = vpop.eup %2249  ;;  %v1328_v36 = vsel %vm3990_vm4, %v1325_v24, %v1322_v16  ;;  %2253 = vlog2.f32 %v1347_v14  ;;  %v4791_v56 = vsel %vm3849_vm8, %v3856_v51, %v3866_v45  ;;  %v4792_v7 = vsel %vm3858_vm9, %v3869_v4, %v3888_v42 }
 0x1a8   :  { %v1357_v50 = vsub.f32 %v4791_v56, %v1301_v3  ;;  %v1358_v40 = vsub.f32 %v4792_v7, %v1310_v9  ;;  %v1331_v23 = vmul.f32 0.6931472, %v2250_v21  ;;  %v1343_v10 = vmul.f32 %v1342_v8, %v3951_v25  ;;  %v4806_v21 = vld [vmem:[#allocation18_spill] sm:$0xff]  ;;  %v4807_v56 = vld [vmem:[#allocation12_spill] sm:$0xff] }
 0x1a9   :  { %v1351_v62 = vadd.f32 1.0, %v1350_v19  ;;  %v4793_v14 = vsel %vm3871_vm10, %v3877_v52, %v3901_v11  ;;  %v4794_v51 = vsel %vm3879_vm1, %v3892_v26, %v3912_v17  ;;  %v1364_v45 = vmul.f32 0.5, %v1356_v39  ;;  %v2252_v42 = vpop.eup %2251  ;;  %v4803_v39 = vld [vmem:[#allocation32_spill] sm:$0xff]  ;;  %v4805_v19 = vld [vmem:[#allocation3_spill] sm:$0xff]  ;;  %v4809_v7 = vld [vmem:[#allocation10_spill] sm:$0xff] }
 0x1aa   :  { %v1359_v28 = vsub.f32 %v4793_v14, %v1319_v2  ;;  %v1360_v44 = vsub.f32 %v4794_v51, %v1328_v36  ;;  %v1365_v48 = vmul.f32 0.5, %v1357_v50  ;;  %v1366_v4 = vmul.f32 0.5, %v1358_v40  ;;  %v4810_v40 = vld [vmem:[#allocation34_spill] sm:$0xff]  ;;  %v4812_v51 = vld [vmem:[#allocation19_spill] sm:$0xff] }
 0x1ab   :  { %v1337_v25 = vsel %vm4001_vm5, %v1334_v30, %v1331_v23  ;;  %vm4044_vm2 = vcmp.lt.f32.partialorder %v1344_v47, 0.0004427343  ;;  %vm4048_vm3 = vcmp.lt.f32.partialorder %v1353_v6, 0.0004427343  ;;  %v1340_v59 = vmul.f32 0.6931472, %v2252_v42 }
 0x1ac   :  { %v1367_v52 = vmul.f32 0.5, %v1359_v28  ;;  %v4799_v17 = vsel %vm3903_vm11, %v3915_v33, %v3932_v22  ;;  %v1368_v11 = vmul.f32 0.5, %v1360_v44  ;;  %v1372_v46 = vmul.f32 %v1364_v45, %v3717_v32  ;;  %v4804_v30 = vld [vmem:[#allocation31_spill] sm:$0xff] }
 0x1ad   :  { %v1361_v26 = vsub.f32 %v4799_v17, %v1337_v25  ;;  %v1352_v43 = vmul.f32 %v1351_v62, %v3966_v60  ;;  %v1373_v63 = vmul.f32 %v1365_v48, %v3717_v32  ;;  %v1374_v54 = vmul.f32 %v1366_v4, %v3717_v32  ;;  %v2254_v18 = vpop.eup %2253  ;;  %v4813_v45 = vld [vmem:[#allocation15_spill] sm:$0xff]  ;;  %v4815_v25 = vld [vmem:[#allocation6_spill] sm:$0xff]  ;;  %v4817_v17 = vld [vmem:[#allocation21_spill] sm:$0xff] }
 0x1ae   :  { %v1375_v3 = vmul.f32 %v1367_v52, %v3717_v32  ;;  %v1346_v24 = vsel %vm4044_vm2, %v1343_v10, %v1340_v59  ;;  %v1376_v34 = vmul.f32 %v1368_v11, %v3717_v32  ;;  %v1380_v22 = vmul.f32 %v1372_v46, %v3759_v5  ;;  %v4811_v10 = vld [vmem:[#allocation4_spill] sm:$0xff]  ;;  %v4814_v4 = vld [vmem:[#allocation11_spill] sm:$0xff]  ;;  %v4818_v11 = vld [vmem:[#allocation33_spill] sm:$0xff] }
 0x1af   :  { %v1369_v37 = vmul.f32 0.5, %v1361_v26  ;;  %v1349_v33 = vmul.f32 0.6931472, %v2254_v18  ;;  %v4800_v60 = vsel %vm3923_vm12, %v3935_v15, %v3953_v1  ;;  %v1381_v0 = vmul.f32 %v1373_v63, %v3764_v20  ;;  %v4801_v20 = vld [vmem:[#allocation20_spill] sm:$0xff] }
 0x1b0   :  { %v1362_v13 = vsub.f32 %v4800_v60, %v1346_v24  ;;  %v1382_v8 = vmul.f32 %v1374_v54, %v3769_v58  ;;  %v944_v47 = vmul.f32 %v3707_v49, %v3613_v55  ;;  %v1383_v16 = vmul.f32 %v1375_v3, %v3774_v41  ;;  %v4820_v54 = vld [vmem:[#allocation7_spill] sm:$0xff]  ;;  %v2300_v60 = vld [vmem:[%s4477_s1 + $0x10] sm:$0xff] }
 0x1b1   :  { %v1377_v9 = vmul.f32 %v1369_v37, %v3717_v32  ;;  %v1388_v5 = vmul.f32 %v1380_v22, %v3721_v12  ;;  %v1355_v29 = vsel %vm4048_vm3, %v1352_v43, %v1349_v33  ;;  %v1384_v15 = vmul.f32 %v1376_v34, %v3781_v27  ;;  %v4819_v43 = vld [vmem:[#allocation13_spill] sm:$0xff]  ;;  %v2298_v37 = vld [vmem:[%s4477_s1] sm:$0xff]  ;;  %v2299_v22 = vld [vmem:[%s4477_s1 + $0x8] sm:$0xff] }
 0x1b2   :  { %v1370_v35 = vmul.f32 0.5, %v1362_v13  ;;  %v1389_v1 = vmul.f32 %v1381_v0, %v3726_v61  ;;  %v4802_v58 = vsel %vm3941_vm6, %v3939_v31, %v4801_v20  ;;  %v1390_v41 = vmul.f32 %v1382_v8, %v4804_v30  ;;  %v4808_v61 = vld [vmem:[#allocation16_spill] sm:$0xff]  ;;  %v2301_v0 = vld [vmem:[%s4477_s1 + $0x18] sm:$0xff] }
 0x1b3   :  { %v1363_v55 = vsub.f32 %v4802_v58, %v1355_v29  ;;  %v1385_v2 = vmul.f32 %v1377_v9, %v4803_v39  ;;  %v1391_v12 = vmul.f32 %v1383_v16, %v4805_v19  ;;  %v1396_v36 = vmul.f32 %v4806_v21, %v1388_v5  ;;  %v2303_v16 = vld [vmem:[%s4477_s1 + $0x38] sm:$0xff]  ;;  %v2305_v20 = vld [vmem:[%s4477_s1 + $0x30] sm:$0xff] }
 0x1b4   :  { %v1378_v6 = vmul.f32 %v1370_v35, %v3717_v32  ;;  %v1397_v27 = vmul.f32 %v4807_v56, %v1389_v1  ;;  %v945_v57 = vmul.f32 %v3707_v49, %v4808_v61  ;;  %v946_v31 = vmul.f32 %v3707_v49, %v4809_v7  ;;  %v4823_v29 = vld [vmem:[#allocation29_spill] sm:$0xff]  ;;  %v2310_v56 = vld [vmem:[%s4477_s1 + $0x60] sm:$0xff] }
 0x1b5   :  { %v1371_v50 = vmul.f32 0.5, %v1363_v55  ;;  %v1392_v62 = vmul.f32 %v1384_v15, %v4811_v10  ;;  %v1393_v28 = vmul.f32 %v1385_v2, %v944_v47  ;;  %v1398_v44 = vmul.f32 %v4812_v51, %v1390_v41  ;;  %v2302_v47 = vld [vmem:[%s4477_s1 + $0x20] sm:$0xff]  ;;  %v2304_v15 = vld [vmem:[%s4477_s1 + $0x28] sm:$0xff]  ;;  %v2309_v21 = vld [vmem:[%s4477_s1 + $0x58] sm:$0xff] }
 0x1b6   :  { %v1386_v23 = vmul.f32 %v1378_v6, %v4810_v40  ;;  %v1399_v48 = vmul.f32 %v4813_v45, %v1391_v12  ;;  %v1404_v42 = vmul.f32 %v1396_v36, %v4814_v4  ;;  %v1405_v38 = vmul.f32 %v1397_v27, %v4815_v25  ;;  %v2306_v55 = vld [vmem:[%s4477_s1 + $0x40] sm:$0xff]  ;;  %v2307_v41 = vld [vmem:[%s4477_s1 + $0x48] sm:$0xff]  ;;  %v2308_v12 = vld [vmem:[%s4477_s1 + $0x50] sm:$0xff] }
 0x1b7   :  { %v1379_v14 = vmul.f32 %v1371_v50, %v3717_v32  ;;  %v4106_v49 = vmul.f32 %v4817_v17, %v1392_v62  ;;  %v4109_v46 = vmul.f32 %v4818_v11, %v1393_v28  ;;  %v4112_v63 = vmul.f32 %v1398_v44, %v4819_v43  ;;  %v4824_v2 = vld [vmem:[#allocation30_spill] sm:$0xff]  ;;  %v2311_v50 = vld [vmem:[%s4477_s1 + $0x68] sm:$0xff]  ;;  %v2317_v25 = vld [vmem:[%s4477_s1 + $0xb8] sm:$0xff] }
 0x1b8   :  { %v1394_v59 = vmul.f32 %v1386_v23, %v945_v57  ;;  %v4115_v3 = vmul.f32 %v1399_v48, %v4820_v54  ;;  %vm4821_vm7 = vcmask 64512   ;;  %v1431_v34 = vmul.f32 %v2298_v37, %v1396_v36  ;;  %v2312_v57 = vld [vmem:[%s4477_s1 + $0x70] sm:$0xff]  ;;  %v2314_v28 = vld [vmem:[%s4477_s1 + $0x80] sm:$0xff] }
 0x1b9   :  { %v1387_v52 = vmul.f32 %v1379_v14, %v4816_v53  ;;  %v1412_v18 = vsel %vm4821_vm7, %v1404_v42, 0.0  ;;  %vm4822_vm8 = vmmov %vm4821_vm7  ;;  %v1432_v33 = vmul.f32 %v2299_v22, %v1396_v36  ;;  %v4128_v13 = vmul.f32 %v2300_v60, %v1396_v36  ;;  %v2318_v53 = vld [vmem:[%s4477_s1 + $0xd8] sm:$0xff]  ;;  %v4834_v60 = vld [vmem:[#allocation14_spill] sm:$0xff] }
 0x1ba   :  { %v1413_v24 = vsel %vm4822_vm8, %v1405_v38, 0.0  ;;  %v1434_v8 = vmul.f32 %v2301_v0, %v1396_v36  ;;  %v1435_v9 = vmul.f32 %v2302_v47, %v1397_v27  ;;  %v1438_v5 = vmul.f32 %v2303_v16, %v1397_v27  ;;  %vm4825_vm9 = vmmov %vm4821_vm7 }
 0x1bb   :  { %v1395_v26 = vmul.f32 %v1387_v52, %v946_v31  ;;  %v4140_v35 = vmul.f32 %v4823_v29, %v1394_v59  ;;  %v1436_v1 = vmul.f32 %v2304_v15, %v1397_v27  ;;  %v1437_v58 = vmul.f32 %v2305_v20, %v1397_v27  ;;  %v2313_v31 = vld [vmem:[%s4477_s1 + $0x78] sm:$0xff]  ;;  %vm4826_vm10 = vmmov %vm4821_vm7 }
 0x1bc   :  { %v1439_v39 = vmul.f32 %v2306_v55, %v1398_v44  ;;  %v1440_v19 = vmul.f32 %v2307_v41, %v1398_v44  ;;  %v4160_v6 = vmul.f32 %v2308_v12, %v1398_v44  ;;  %v1442_v36 = vmul.f32 %v2309_v21, %v1398_v44  ;;  %vm4827_vm1 = vmmov %vm4821_vm7  ;;  %v2315_v44 = vld [vmem:[%s4477_s1 + $0x88] sm:$0xff]  ;;  %v2319_v59 = vld [vmem:[%s4477_s1 + $0xf8] sm:$0xff] }
 0x1bd   :  { %v4152_v30 = vmul.f32 %v4824_v2, %v1395_v26  ;;  %v1443_v27 = vmul.f32 %v2310_v56, %v1399_v48  ;;  %v4171_v61 = vmul.f32 %v2311_v50, %v1399_v48  ;;  %v4176_v7 = vmul.f32 %v2312_v57, %v1399_v48  ;;  %vm4828_vm11 = vmmov %vm4827_vm1  ;;  %v4840_v20 = vld [vmem:[#allocation9_spill] sm:$0xff] }
 0x1be   :  { %v1446_v40 = vmul.f32 %v2313_v31, %v1399_v48  ;;  %v1463_v23 = vsel %vm4825_vm9, %v1431_v34, 0.0  ;;  %v1464_v10 = vsel %vm4826_vm10, %v1435_v9, 0.0  ;;  %v1508_v62 = vsel %vm4827_vm1, %v1434_v8, 0.0  ;;  %v2316_v48 = vld [vmem:[%s4477_s1 + $0x98] sm:$0xff]  ;;  %vm4829_vm12 = vmmov %vm4827_vm1  ;;  %v4835_v9 = vld [vmem:[#allocation8_spill] sm:$0xff] }
 0x1bf   :  { %v1509_v14 = vsel %vm4828_vm11, %v1438_v5, 0.0  ;;  %v1447_v51 = vmul.f32 %v2314_v28, %v4106_v49  ;;  %v4193_v45 = vmul.f32 %v2315_v44, %v4106_v49  ;;  %v1450_v4 = vmul.f32 %v2316_v48, %v4106_v49  ;;  %vm4830_vm6 = vmmov %vm4827_vm1  ;;  %v4836_v5 = vld [vmem:[#allocation17_spill] sm:$0xff] }
 0x1c0   :  { %v1510_v42 = vadd.f32 %v1509_v14, %v1508_v62  ;;  %v1454_v38 = vmul.f32 %v2317_v25, %v4109_v46  ;;  %v1458_v52 = vmul.f32 %v2318_v53, %v4140_v35  ;;  %v4211_v17 = vmul.f32 %v2319_v59, %v4152_v30  ;;  %vm4831_vm0 = vmmov %vm4827_vm1  ;;  %v2322_v14 = vld [vmem:[%s4477_s1 + $0xa8] sm:$0xff]  ;;  %v2325_v53 = vld [vmem:[%s4477_s1 + $0xe0] sm:$0xff] }
 0x1c1   :  { %v1511_v26 = vsel %vm4829_vm12, %v1442_v36, 0.0  ;;  %v1465_v11 = vadd.f32 %v1464_v10, %v1463_v23  ;;  %v1466_v43 = vsel %vm4830_vm6, %v1439_v39, 0.0  ;;  %v1478_v54 = vsel %vm4831_vm0, %v1432_v33, 0.0  ;;  %vm4832_vm13 = vmmov %vm4831_vm0  ;;  %v2321_v10 = vld [vmem:[%s4477_s1 + $0x90] sm:$0xff] }
 0x1c2   :  { %v1512_v37 = vadd.f32 %v1511_v26, %v1510_v42  ;;  %v1479_v34 = vsel %vm4832_vm13, %v1436_v1, 0.0  ;;  %vm4833_vm14 = vmmov %vm4831_vm0  ;;  %v1408_v0 = vmul.f32 %v4106_v49, %v4834_v60  ;;  %v1414_v8 = vadd.f32 %v1413_v24, %v1412_v18 }
 0x1c3   :  { %v1513_v22 = vsel %vm4833_vm14, %v1446_v40, 0.0  ;;  %v1409_v16 = vmul.f32 %v4109_v46, %v4835_v9  ;;  %v1410_v29 = vmul.f32 %v4140_v35, %v4836_v5  ;;  %vm4837_vm15 = vmmov %vm4831_vm0  ;;  %v1411_v55 = vmul.f32 %v4152_v30, %v4840_v20 }
 0x1c4   :  { %v1514_v47 = vadd.f32 %v1513_v22, %v1512_v37  ;;  %v1415_v15 = vsel %vm4837_vm15, %v4112_v63, 0.0  ;;  %vm4838_vm4 = vmmov %vm4831_vm0  ;;  %v1480_v2 = vadd.f32 %v1479_v34, %v1478_v54  ;;  %v1467_v57 = vadd.f32 %v1466_v43, %v1465_v11 }
 0x1c5   :  { %v1481_v33 = vsel %vm4838_vm4, %v1440_v19, 0.0  ;;  %vm4839_vm5 = vmmov %vm4831_vm0  ;;  %v1416_v39 = vadd.f32 %v1415_v15, %v1414_v8  ;;  %v1449_v62 = vmul.f32 %v2321_v10, %v4106_v49  ;;  %v1452_v28 = vmul.f32 %v2322_v14, %v4109_v46  ;;  %v2324_v49 = vld [vmem:[%s4477_s1 + $0xc8] sm:$0xff] }
 0x1c6   :  { %v1515_v1 = vsel %vm4839_vm5, %v1450_v4, 0.0  ;;  %vm4841_vm2 = vmmov %vm4831_vm0  ;;  %v2323_v4 = vld [vmem:[%s4477_s1 + $0xc0] sm:$0xff]  ;;  %v1470_v42 = vsel %vm4831_vm0, %v1447_v51, 0.0  ;;  %v1482_v25 = vadd.f32 %v1481_v33, %v1480_v2 }
 0x1c7   :  { %v1493_v18 = vsel %vm4841_vm2, %v4128_v13, 0.0  ;;  %v1516_v24 = vadd.f32 %v1515_v1, %v1514_v47  ;;  %vm4842_vm3 = vmmov %vm4831_vm0  ;;  %v4292_v1 = vld [vmem:[%s4475_s0] sm:$0xff] }
 0x1c8   :  { %v1417_v41 = vsel %vm4842_vm3, %v4115_v3, 0.0  ;;  %vm4843_vm7 = vmmov %vm4831_vm0  ;;  %v2320_v3 = vld [vmem:[%s4477_s1 + $0xa0] sm:$0xff] }
 0x1c9   :  { %v1494_v12 = vsel %vm4843_vm7, %v1437_v58, 0.0  ;;  %vm4844_vm8 = vmmov %vm4831_vm0  ;;  %v1418_v21 = vadd.f32 %v1417_v41, %v1416_v39  ;;  %v1451_v58 = vmul.f32 %v2320_v3, %v4109_v46 }
 0x1ca   :  { %v1517_v63 = vsel %vm4844_vm8, %v1454_v38, 0.0  ;;  %vm4845_vm9 = vmmov %vm4831_vm0  ;;  %v1456_v38 = vmul.f32 %v2324_v49, %v4140_v35  ;;  %v1495_v54 = vadd.f32 %v1494_v12, %v1493_v18  ;;  %v2329_v18 = vld [vmem:[%s4477_s1 + $0xd0] sm:$0xff] }
 0x1cb   :  { %v1519_v19 = vsel %vm4845_vm9, %v1458_v52, 0.0  ;;  %vm4846_vm10 = vmmov %vm4831_vm0  ;;  %v1518_v23 = vadd.f32 %v1517_v63, %v1516_v24  ;;  %v1459_v52 = vmul.f32 %v2325_v53, %v4152_v30  ;;  %v1457_v24 = vmul.f32 %v2329_v18, %v4140_v35 }
 0x1cc   :  { %v1419_v36 = vsel %vm4846_vm10, %v1408_v0, 0.0  ;;  %vm4847_vm1 = vmmov %vm4831_vm0 }
 0x1cd   :  { %v1421_v56 = vsel %vm4847_vm1, %v1409_v16, 0.0  ;;  %vm4848_vm11 = vmmov %vm4831_vm0  ;;  %v1420_v31 = vadd.f32 %v1419_v36, %v1418_v21  ;;  %v1520_v37 = vadd.f32 %v1519_v19, %v1518_v23  ;;  %v2326_v16 = vld [vmem:[%s4477_s1 + $0xb0] sm:$0xff]  ;;  %v4862_v19 = vld [vmem:[#allocation5_spill] sm:$0xff] }
 0x1ce   :  { %v1423_v50 = vsel %vm4848_vm11, %v1410_v29, 0.0  ;;  %vm4849_vm12 = vmmov %vm4831_vm0  ;;  %v1453_v5 = vmul.f32 %v2326_v16, %v4109_v46  ;;  %v2330_v36 = vld [vmem:[%s4477_s1 + $0xf0] sm:$0xff] }
 0x1cf   :  { %v1425_v13 = vsel %vm4849_vm12, %v1411_v55, 0.0  ;;  %vm4850_vm6 = vmmov %vm4831_vm0  ;;  %v1422_v48 = vadd.f32 %v1421_v56, %v1420_v31  ;;  %v1461_v56 = vmul.f32 %v2330_v36, %v4152_v30 }
 0x1d0   :  { %v1468_v40 = vsel %vm4850_vm6, %v1443_v27, 0.0  ;;  %v1455_v27 = vmul.f32 %v2323_v4, %v4140_v35  ;;  %vm4851_vm13 = vmmov %vm4831_vm0  ;;  %v4311_v35 = vld [vmem:[%s4475_s0 + $0x8] sm:$0xff] }
 0x1d1   :  { %v1469_v44 = vadd.f32 %v1468_v40, %v1467_v57  ;;  %v1483_v26 = vsel %vm4851_vm13, %v4171_v61, 0.0  ;;  %v1424_v11 = vadd.f32 %v1423_v50, %v1422_v48  ;;  %vm4852_vm14 = vmmov %vm4831_vm0  ;;  %v4327_v48 = vld [vmem:[%s4475_s0 + $0x10] sm:$0xff] }
 0x1d2   :  { %v1472_v51 = vsel %vm4852_vm14, %v1451_v58, 0.0  ;;  %v1484_v43 = vadd.f32 %v1483_v26, %v1482_v25  ;;  %vm4853_vm15 = vmmov %vm4831_vm0 }
 0x1d3   :  { %v1471_v59 = vadd.f32 %v1470_v42, %v1469_v44  ;;  %v1485_v22 = vsel %vm4853_vm15, %v4193_v45, 0.0  ;;  %vm4854_vm4 = vmmov %vm4831_vm0  ;;  %v1426_v0 = vadd.f32 %v1425_v13, %v1424_v11  ;;  %v2327_v45 = vld [vmem:[%s4477_s1 + $0xe8] sm:$0xff] }
 0x1d4   :  { %v1496_v60 = vsel %vm4854_vm4, %v4160_v6, 0.0  ;;  %vm4855_vm5 = vmmov %vm4831_vm0  ;;  %v1486_v47 = vadd.f32 %v1485_v22, %v1484_v43  ;;  %v1460_v6 = vmul.f32 %v2327_v45, %v4152_v30  ;;  %v4319_v30 = vld [vmem:[%s4475_s0 + $0x18] sm:$0xff] }
 0x1d5   :  { %v1473_v34 = vadd.f32 %v1472_v51, %v1471_v59  ;;  %v1474_v8 = vsel %vm4855_vm5, %v1455_v27, 0.0  ;;  %v1497_v9 = vadd.f32 %v1496_v60, %v1495_v54  ;;  %vm4856_vm2 = vmmov %vm4831_vm0  ;;  %v1427_v46 = vmul.f32 %v4292_v1, %v1426_v0 }
 0x1d6   :  { %v1521_v61 = vsel %vm4856_vm2, %v4211_v17, 0.0  ;;  %vm4857_vm3 = vmmov %vm4831_vm0  ;;  %v1428_v31 = vmul.f32 %v4311_v35, %v1426_v0  ;;  %v1430_v10 = vmul.f32 %v4319_v30, %v1426_v0  ;;  %v1429_v4 = vmul.f32 %v4327_v48, %v1426_v0 }
 0x1d7   :  { %v1475_v29 = vadd.f32 %v1474_v8, %v1473_v34  ;;  %v1476_v15 = vsel %vm4857_vm3, %v1459_v52, 0.0  ;;  %vm4858_vm7 = vmmov %vm4831_vm0  ;;  %v1522_v2 = vadd.f32 %v1521_v61, %v1520_v37 }
 0x1d8   :  { %v1487_v33 = vsel %vm4858_vm7, %v1452_v28, 0.0  ;;  %vm4859_vm8 = vmmov %vm4831_vm0 }
 0x1d9   :  { %v1498_v17 = vsel %vm4859_vm8, %v4176_v7, 0.0  ;;  %v1477_v20 = vadd.f32 %v1476_v15, %v1475_v29  ;;  %v1488_v55 = vadd.f32 %v1487_v33, %v1486_v47  ;;  %vm4860_vm9 = vmmov %vm4831_vm0  ;;  %v1526_v23 = vmul.f32 %v1522_v2, %v4862_v19 }
 0x1da   :  { %v1499_v39 = vadd.f32 %v1498_v17, %v1497_v9  ;;  %v1489_v41 = vsel %vm4860_vm9, %v1456_v38, 0.0  ;;  %vm4861_vm10 = vmmov %vm4831_vm0 }
 0x1db   :  { %v1500_v7 = vsel %vm4861_vm10, %v1449_v62, 0.0  ;;  %v1490_v12 = vadd.f32 %v1489_v41, %v1488_v55  ;;  %v1523_v21 = vmul.f32 %v1477_v20, %v4862_v19  ;;  %vm4863_vm1 = vmmov %vm4831_vm0  ;;  %v1530_v49 = vadd.f32 %v1526_v23, %v1430_v10 }
 0x1dc   :  { %v1501_v63 = vadd.f32 %v1500_v7, %v1499_v39  ;;  %v1491_v50 = vsel %vm4863_vm1, %v1460_v6, 0.0  ;;  %vm4864_vm11 = vmmov %vm4831_vm0 }
 0x1dd   :  { %v1502_v57 = vsel %vm4864_vm11, %v1453_v5, 0.0  ;;  %v1492_v13 = vadd.f32 %v1491_v50, %v1490_v12  ;;  %v1527_v58 = vadd.f32 %v1523_v21, %v1427_v46  ;;  %vm4865_vm12 = vmmov %vm4831_vm0  ;;  %v1534_v51 = vmul.f32 %v1530_v49, %v1530_v49 }
 0x1de   :  { %v1503_v3 = vadd.f32 %v1502_v57, %v1501_v63  ;;  %v1504_v40 = vsel %vm4865_vm12, %v1457_v24, 0.0  ;;  %vm4866_vm6 = vmmov %vm4831_vm0 }
 0x1df   :  { %v1524_v14 = vmul.f32 %v1492_v13, %v4862_v19  ;;  %v1531_v28 = vmul.f32 %v1527_v58, %v1527_v58  ;;  %v1506_v44 = vsel %vm4866_vm6, %v1461_v56, 0.0  ;;  %vm4867_vm13 = vmmov %vm4831_vm0 }
 0x1e0   :  { %v1505_v62 = vadd.f32 %v1504_v40, %v1503_v3  ;;  %vm4868_vm14 = vmmov %vm4831_vm0 }
 0x1e1   :  { %v1528_v42 = vadd.f32 %v1524_v14, %v1428_v31  ;;  %v1535_v53 = vsel %vm4831_vm0, %v1531_v28, 0.0  ;;  %vm4869_vm15 = vmmov %vm4831_vm0 }
 0x1e2   :  { %v1507_v27 = vadd.f32 %v1506_v44, %v1505_v62  ;;  %v1540_v37 = vsel %vm4869_vm15, %v1534_v51, 0.0  ;;  %vm4870_vm3 = vmmov %vm4831_vm0 }
 0x1e3   :  { %v1532_v38 = vmul.f32 %v1528_v42, %v1528_v42  ;;  %vm4871_vm7 = vmmov %vm4831_vm0 }
 0x1e4   :  { %v1525_v25 = vmul.f32 %v1507_v27, %v4862_v19  ;;  %vm4872_vm8 = vmmov %vm4831_vm0 }
 0x1e5   :  { %v1536_v59 = vsel %vm4867_vm13, %v1532_v38, 0.0  ;;  %vm4873_vm9 = vmmov %vm4831_vm0 }
 0x1e6   :  { %v1529_v52 = vadd.f32 %v1525_v25, %v1429_v4  ;;  %v1537_v26 = vadd.f32 %v1536_v59, %v1535_v53  ;;  %vm4874_vm10 = vmmov %vm4831_vm0 }
 0x1e7   :  { %vm4875_vm1 = vmmov %vm4831_vm0 }
 0x1e8   :  { %v1533_v11 = vmul.f32 %v1529_v52, %v1529_v52  ;;  %vm4876_vm11 = vmmov %vm4831_vm0 }
 0x1e9   :  { %vm4877_vm12 = vmmov %vm4831_vm0 }
 0x1ea   :  { %v1538_v43 = vsel %vm4868_vm14, %v1533_v11, 0.0  ;;  %vm4879_vm6 = vmmov %vm4831_vm0 }
 0x1eb   :  { %v1539_v54 = vadd.f32 %v1538_v43, %v1537_v26  ;;  %vm4880_vm13 = vmmov %vm4831_vm0 }
 0x1ec   :  { %vm4881_vm14 = vmmov %vm4831_vm0 }
 0x1ed   :  { %v1541_v34 = vadd.f32 %v1540_v37, %v1539_v54  ;;  %vm4882_vm15 = vmmov %vm4831_vm0 }
 0x1ef   :  { %v1542_v22 = vrot.slane %v1541_v34, 4 }
 0x1f1   :  { %v1543_v60 = vadd.f32 %v1542_v22, %v1541_v34 }
 0x1f3   :  { %v1544_v0 = vrot.slane %v1543_v60, 2 }
 0x1f5   :  { %v1545_v8 = vadd.f32 %v1544_v0, %v1543_v60  ;;  %v4878_v0 = vld [vmem:[#allocation2_spill] sm:$0xff] }
 0x1f7   :  { %v1546_v47 = vrot.slane %v1545_v8, 1 }
 0x1f9   :  { %v1547_v9 = vadd.f32 %v1546_v47, %v1545_v8 }
 0x1fb   :  { %v1548_v61 = vmax.f32 %v1547_v9, 1e-30 }
 0x1fd   :  { %2255 = vrsqrt.f32 %v1548_v61  ;;  %vm1555_vm5 = vweird.f32 %v1548_v61 }
 0x1fe   :  { %2257 = vrcp.f32 %v3717_v32 }
 0x203   :  { %v2256_v16 = vpop.eup %2255 }
 0x204   :  { %v1550_v5 = vmul.f32 %v2256_v16, %v1548_v61  ;;  %v2258_v29 = vpop.eup %2257  ;;  %vm1556_vm4 = vweird.f32 %v2256_v16 }
 0x205   :  { %v101_v15 = vmul.f32 2.0, %v2258_v29  ;;  %vm1557_vm2 = vmor %vm1555_vm5, %vm1556_vm4 }
 0x206   :  { %v1551_v45 = vmul.f32 %v2256_v16, %v1550_v5  ;;  %vm4883_vm4 = vmmov %vm4831_vm0 }
 0x207   :  { %v1560_v46 = vmul.f32 0.5, %v101_v15  ;;  %vm4884_vm5 = vmmov %vm4831_vm0 }
 0x208   :  { %v1552_v6 = vmul.f32 0.5, %v1551_v45 }
 0x20a   :  { %v1553_v33 = vsub.f32 1.5, %v1552_v6 }
 0x20c   :  { %v1554_v17 = vmul.f32 %v2256_v16, %v1553_v33 }
 0x20e   :  { %v1558_v20 = vsel %vm1557_vm2, %v2256_v16, %v1554_v17  ;;  %vm4885_vm2 = vmmov %vm4831_vm0 }
 0x20f   :  { %v1559_v55 = vmul.f32 %v1558_v20, %v1548_v61 }
 0x211   :  { %v1561_v39 = vmul.f32 %v1560_v46, %v1559_v55 }
 0x213   :  { %2259 = vtanh.f32 %v1561_v39 }
 0x219   :  { %v2260_v2 = vpop.eup %2259 }
 0x21a   :  { %v1563_v18 = vmul.f32 %v2260_v2, %v1558_v20 }
 0x21c   :  { %v1564_v24 = vmul.f32 %v1563_v18, %v1527_v58  ;;  %v1565_v32 = vmul.f32 %v1563_v18, %v1528_v42  ;;  %v1566_v41 = vmul.f32 %v1563_v18, %v1529_v52  ;;  %v1567_v7 = vmul.f32 %v1563_v18, %v1530_v49 }
 0x21e   :  { %v1568_v12 = vmul.f32 %v1564_v24, %v1564_v24  ;;  %v1569_v63 = vmul.f32 %v1565_v32, %v1565_v32  ;;  %v1570_v21 = vmul.f32 %v1566_v41, %v1566_v41  ;;  %v1585_v36 = vmul.f32 %v4292_v1, %v1564_v24 }
 0x21f   :  { %v1586_v56 = vmul.f32 %v4311_v35, %v1565_v32  ;;  %v1587_v50 = vmul.f32 %v4327_v48, %v1566_v41  ;;  %v1571_v57 = vmul.f32 %v1567_v7, %v1567_v7  ;;  %v1588_v58 = vmul.f32 %v4319_v30, %v1567_v7 }
 0x220   :  { %v1572_v31 = vsel %vm4870_vm3, %v1568_v12, 0.0  ;;  %v1573_v13 = vsel %vm4871_vm7, %v1569_v63, 0.0  ;;  %v1589_v40 = vsel %vm4872_vm8, %v1585_v36, 0.0  ;;  %v1575_v10 = vsel %vm4874_vm10, %v1570_v21, 0.0  ;;  %vm4886_vm7 = vmmov %vm4831_vm0 }
 0x221   :  { %v1574_v3 = vadd.f32 %v1573_v13, %v1572_v31  ;;  %v1590_v23 = vsel %vm4873_vm9, %v1586_v56, 0.0  ;;  %v1592_v28 = vsel %vm4875_vm1, %v1587_v50, 0.0  ;;  %v1577_v44 = vsel %vm4876_vm11, %v1571_v57, 0.0  ;;  %vm4887_vm8 = vmmov %vm4831_vm0 }
 0x222   :  { %v1591_v62 = vadd.f32 %v1590_v23, %v1589_v40  ;;  %v1594_v42 = vsel %vm4877_vm12, %v1588_v58, 0.0  ;;  %v1609_v6 = vmul.f32 %v1564_v24, %v4862_v19  ;;  %v1610_v15 = vmul.f32 %v1565_v32, %v4862_v19  ;;  %vm4888_vm9 = vmmov %vm4831_vm0 }
 0x223   :  { %v1576_v14 = vadd.f32 %v1575_v10, %v1574_v3  ;;  %v1611_v33 = vmul.f32 %v1566_v41, %v4862_v19  ;;  %v1612_v17 = vmul.f32 %v1567_v7, %v4862_v19  ;;  %vm1855_vm3 = vcmask 7168   ;;  %vm4889_vm10 = vmmov %vm4831_vm0 }
 0x224   :  { %v1593_v4 = vadd.f32 %v1592_v28, %v1591_v62  ;;  %vm4890_vm1 = vcmask 261120  }
 0x225   :  { %v1578_v27 = vadd.f32 %v1577_v44, %v1576_v14  ;;  %vm4891_vm11 = vmmov %vm4890_vm1 }
 0x226   :  { %v1595_v25 = vadd.f32 %v1594_v42, %v1593_v4  ;;  %vm4892_vm12 = vmmov %vm4890_vm1 }
 0x227   :  { %v1579_v49 = vrot.slane %v1578_v27, 4 }
 0x228   :  { %v1596_v38 = vrot.slane %v1595_v25, 4 }
 0x229   :  { %v1580_v53 = vadd.f32 %v1579_v49, %v1578_v27 }
 0x22a   :  { %v1597_v52 = vadd.f32 %v1596_v38, %v1595_v25 }
 0x22b   :  { %v1581_v59 = vrot.slane %v1580_v53, 2 }
 0x22c   :  { %v1598_v26 = vrot.slane %v1597_v52, 2 }
 0x22d   :  { %v1582_v11 = vadd.f32 %v1581_v59, %v1580_v53 }
 0x22e   :  { %v1599_v51 = vadd.f32 %v1598_v26, %v1597_v52 }
 0x22f   :  { %v1583_v43 = vrot.slane %v1582_v11, 1 }
 0x230   :  { %v1600_v54 = vrot.slane %v1599_v51, 1 }
 0x231   :  { %v1584_v37 = vadd.f32 %v1583_v43, %v1582_v11 }
 0x232   :  { %v1601_v34 = vadd.f32 %v1600_v54, %v1599_v51 }
 0x233   :  { %v1617_v8 = vmul.f32 %v1584_v37, %v4878_v0 }
 0x234   :  { %v1602_v22 = vmul.f32 2.0, %v1601_v34 }
 0x236   :  { %v1603_v60 = vadd.f32 1.0, %v1602_v22 }
 0x238   :  { %v1618_v47 = vadd.f32 %v1617_v8, %v1603_v60  ;;  %v1604_v9 = vadd.f32 %v1603_v60, %v1584_v37 }
 0x23a   :  { %v1619_v61 = vmax.f32 %v1618_v47, 1e-15  ;;  %v1605_v16 = vmul.f32 %v4292_v1, %v1604_v9  ;;  %v1606_v5 = vmul.f32 %v4311_v35, %v1604_v9  ;;  %v1607_v29 = vmul.f32 %v4327_v48, %v1604_v9 }
 0x23b   :  { %v1608_v45 = vmul.f32 %v4319_v30, %v1604_v9 }
 0x23c   :  { %2261 = vrcp.f32 %v1619_v61  ;;  %v1613_v46 = vadd.f32 %v1609_v6, %v1605_v16  ;;  %v1614_v20 = vadd.f32 %v1610_v15, %v1606_v5  ;;  %v1615_v55 = vadd.f32 %v1611_v33, %v1607_v29  ;;  %v66_v15 = vld [vmem:[%s4478_s4 + $0x10] sm:$0xff] }
 0x23d   :  { %v1616_v39 = vadd.f32 %v1612_v17, %v1608_v45 }
 0x242   :  { %v2262_v2 = vpop.eup %2261 }
 0x243   :  { %v4357_v18 = vmul.f32 %v2262_v2, %v1613_v46  ;;  %v1622_v12 = vmul.f32 %v2262_v2, %v1614_v20  ;;  %v1623_v63 = vmul.f32 %v2262_v2, %v1615_v55  ;;  %v1624_v21 = vmul.f32 %v2262_v2, %v1616_v39 }
 0x245   :  { %v1625_v36 = vmul.f32 %v4357_v18, %v4357_v18  ;;  %v1626_v24 = vmul.f32 %v1622_v12, %v1622_v12  ;;  %v1627_v56 = vmul.f32 %v1623_v63, %v1623_v63  ;;  %v1642_v32 = vmul.f32 %v4292_v1, %v4357_v18 }
 0x246   :  { %v1643_v41 = vmul.f32 %v4311_v35, %v1622_v12  ;;  %v1644_v7 = vmul.f32 %v4327_v48, %v1623_v63  ;;  %v1628_v50 = vmul.f32 %v1624_v21, %v1624_v21  ;;  %v1645_v3 = vmul.f32 %v4319_v30, %v1624_v21 }
 0x247   :  { %v1629_v57 = vsel %vm4879_vm6, %v1625_v36, 0.0  ;;  %v1630_v31 = vsel %vm4831_vm0, %v1626_v24, 0.0  ;;  %v1646_v58 = vsel %vm4880_vm13, %v1642_v32, 0.0  ;;  %v1632_v23 = vsel %vm4882_vm15, %v1627_v56, 0.0  ;;  %vm4893_vm6 = vmmov %vm4890_vm1 }
 0x248   :  { %v1631_v13 = vadd.f32 %v1630_v31, %v1629_v57  ;;  %v1647_v40 = vsel %vm4881_vm14, %v1643_v41, 0.0  ;;  %v1649_v14 = vsel %vm4883_vm4, %v1644_v7, 0.0  ;;  %v1634_v28 = vsel %vm4884_vm5, %v1628_v50, 0.0  ;;  %vm4894_vm13 = vmmov %vm4885_vm2 }
 0x249   :  { %v1648_v10 = vadd.f32 %v1647_v40, %v1646_v58  ;;  %v1651_v27 = vsel %vm4885_vm2, %v1645_v3, 0.0  ;;  %v1669_v61 = vmul.f32 %v1624_v21, %v4862_v19  ;;  %v1668_v29 = vmul.f32 %v1623_v63, %v4862_v19  ;;  %vm4895_vm14 = vmmov %vm4885_vm2 }
 0x24a   :  { %v1633_v62 = vadd.f32 %v1632_v23, %v1631_v13  ;;  %v1667_v46 = vmul.f32 %v1622_v12, %v4862_v19  ;;  %v1666_v20 = vmul.f32 %v4357_v18, %v4862_v19  ;;  %vm4896_vm5 = vmmov %vm4885_vm2 }
 0x24b   :  { %v1650_v44 = vadd.f32 %v1649_v14, %v1648_v10  ;;  %v60_v14 = vld [vmem:[%s4479_s3] sm:$0xff] }
 0x24c   :  { %v1635_v4 = vadd.f32 %v1634_v28, %v1633_v62  ;;  %v62_v28 = vld [vmem:[%s4479_s3 + $0x10] sm:$0xff] }
 0x24d   :  { %v1652_v42 = vadd.f32 %v1651_v27, %v1650_v44 }
 0x24e   :  { %v1636_v25 = vrot.slane %v1635_v4, 4 }
 0x24f   :  { %v1653_v49 = vrot.slane %v1652_v42, 4 }
 0x250   :  { %v1637_v38 = vadd.f32 %v1636_v25, %v1635_v4  ;;  %v61_v25 = vld [vmem:[%s4479_s3 + $0x8] sm:$0xff] }
 0x251   :  { %v1654_v53 = vadd.f32 %v1653_v49, %v1652_v42  ;;  %v63_v49 = vld [vmem:[%s4479_s3 + $0x18] sm:$0xff] }
 0x252   :  { %v1638_v52 = vrot.slane %v1637_v38, 2 }
 0x253   :  { %v1655_v59 = vrot.slane %v1654_v53, 2 }
 0x254   :  { %v1639_v26 = vadd.f32 %v1638_v52, %v1637_v38 }
 0x255   :  { %v1656_v11 = vadd.f32 %v1655_v59, %v1654_v53 }
 0x256   :  { %v1640_v51 = vrot.slane %v1639_v26, 1 }
 0x257   :  { %v1657_v43 = vrot.slane %v1656_v11, 1 }
 0x258   :  { %v1641_v54 = vadd.f32 %v1640_v51, %v1639_v26 }
 0x259   :  { %v1658_v37 = vadd.f32 %v1657_v43, %v1656_v11 }
 0x25a   :  { %v1674_v60 = vmul.f32 %v1641_v54, %v4878_v0  ;;  %v64_v0 = vld [vmem:[%s4478_s4] sm:$0xff] }
 0x25b   :  { %v1659_v34 = vmul.f32 2.0, %v1658_v37  ;;  %v1851_v33 = vmul.f32 %v64_v0, %v64_v0 }
 0x25d   :  { %v1660_v22 = vadd.f32 1.0, %v1659_v34  ;;  %v1856_v63 = vsel %vm1855_vm3, %v1851_v33, 0.0 }
 0x25f   :  { %v1661_v8 = vadd.f32 %v1660_v22, %v1641_v54  ;;  %v1675_v47 = vadd.f32 %v1674_v60, %v1660_v22 }
 0x261   :  { %v1676_v9 = vmax.f32 %v1675_v47, 1e-15  ;;  %v1665_v16 = vmul.f32 %v4319_v30, %v1661_v8  ;;  %v1664_v5 = vmul.f32 %v4327_v48, %v1661_v8  ;;  %v1663_v45 = vmul.f32 %v4311_v35, %v1661_v8  ;;  %v65_v30 = vld [vmem:[%s4478_s4 + $0x8] sm:$0xff] }
 0x262   :  { %v1662_v6 = vmul.f32 %v4292_v1, %v1661_v8  ;;  %v2334_v48 = vmov 0   ;;  %v1853_v35 = vmul.f32 %v66_v15, %v66_v15  ;;  %v1852_v17 = vmul.f32 %v65_v30, %v65_v30  ;;  %v67_v1 = vld [vmem:[%s4478_s4 + $0x18] sm:$0xff] }
 0x263   :  { %2263 = vrcp.f32 %v1676_v9  ;;  %2116 = vset.pattern.permute.xlu0 %v2334_v48  ;;  %2117 = vset.pattern.permute.xlu1 %v2334_v48  ;;  %v1854_v55 = vmul.f32 %v67_v1, %v67_v1  ;;  %v1673_v39 = vadd.f32 %v1669_v61, %v1665_v16  ;;  %v1672_v2 = vadd.f32 %v1668_v29, %v1664_v5 }
 0x264   :  { %1871 = vperm.xlu0 %2116, %v64_v0   ;;  %1881 = vperm.xlu1 %2117, %v66_v15   ;;  %v1857_v21 = vsel %vm1855_vm3, %v1852_v17, 0.0  ;;  %v1671_v36 = vadd.f32 %v1667_v46, %v1663_v45  ;;  %v1670_v24 = vadd.f32 %v1666_v20, %v1662_v6  ;;  %v1859_v56 = vsel %vm1855_vm3, %v1853_v35, 0.0 }
 0x265   :  { %2118 = vset.pattern.permute.xlu2 %v2334_v48  ;;  %v1858_v32 = vadd.f32 %v1857_v21, %v1856_v63  ;;  %v1861_v12 = vsel %vm1855_vm3, %v1854_v55, 0.0 }
 0x267   :  { %v1860_v57 = vadd.f32 %v1859_v56, %v1858_v32 }
 0x269   :  { %v2264_v41 = vpop.eup %2263  ;;  %v1862_v58 = vadd.f32 %v1861_v12, %v1860_v57 }
 0x26a   :  { %v1681_v7 = vmul.f32 %v2264_v41, %v1673_v39  ;;  %v1680_v19 = vmul.f32 %v2264_v41, %v1672_v2  ;;  %v1679_v18 = vmul.f32 %v2264_v41, %v1671_v36  ;;  %v1678_v50 = vmul.f32 %v2264_v41, %v1670_v24 }
 0x26b   :  { %v1863_v11 = vrot.slane %v1862_v58, 4 }
 0x26c   :  { %1735 = vmatpush.msra.mxu1 %v1681_v7  ;;  %2111 = vmatpush.msra.mxu3 %v1681_v7  ;;  %v1683_v31 = vmul.f32 %v1679_v18, %v1679_v18  ;;  %v1684_v13 = vmul.f32 %v1680_v19, %v1680_v19  ;;  %v1682_v3 = vmul.f32 %v1678_v50, %v1678_v50 }
 0x26d   :  { %v1685_v23 = vmul.f32 %v1681_v7, %v1681_v7  ;;  %1876 = vperm.xlu0 %2116, %v65_v30   ;;  %1886 = vperm.xlu1 %2117, %v67_v1   ;;  %v1864_v51 = vadd.f32 %v1863_v11, %v1862_v58 }
 0x26e   :  { %1736 = vmatpush.msra.mxu1 %v1680_v19  ;;  %2112 = vmatpush.msra.mxu3 %v1680_v19  ;;  %v1687_v40 = vsel %vm4886_vm7, %v1683_v31, 0.0  ;;  %v1686_v10 = vsel %vm4887_vm8, %v1682_v3, 0.0  ;;  %v1689_v44 = vsel %vm4888_vm9, %v1684_v13, 0.0 }
 0x26f   :  { %v1688_v62 = vadd.f32 %v1687_v40, %v1686_v10  ;;  %v1691_v27 = vsel %vm4889_vm10, %v1685_v23, 0.0  ;;  %v1865_v54 = vrot.slane %v1864_v51, 2 }
 0x270   :  { %1737 = vmatpush.msra.mxu1 %v1679_v18  ;;  %2113 = vmatpush.msra.mxu3 %v1679_v18 }
 0x271   :  { %v1690_v4 = vadd.f32 %v1689_v44, %v1688_v62  ;;  %v1866_v37 = vadd.f32 %v1865_v54, %v1864_v51 }
 0x272   :  { %1738 = vmatpush.msra.mxu1 %v1678_v50  ;;  %2114 = vmatpush.msra.mxu3 %v1678_v50 }
 0x273   :  { %2101 = vmatmul.msk.f32.vlgmr.msra.gmra.mxu1 %vm4890_vm1, %v60_v14  ;;  %2103 = vmatmul.msk.f32.vlgmr.msra.gmra.mxu3 %vm4891_vm11, %v62_v28  ;;  %v1692_v42 = vadd.f32 %v1691_v27, %v1690_v4  ;;  %v1867_v22 = vrot.slane %v1866_v37, 1 }
 0x275   :  { %v1693_v38 = vrot.slane %v1692_v42, 4  ;;  %v1868_v60 = vadd.f32 %v1867_v22, %v1866_v37 }
 0x277   :  { %v1694_v53 = vadd.f32 %v1693_v38, %v1692_v42  ;;  %1910 = vperm.xlu2 %2118, %v1868_v60  }
 0x279   :  { %v1695_v52 = vrot.slane %v1694_v53, 2 }
 0x27b   :  { %2102 = vmatmul.msk.f32.gmra.mxu1 %vm4892_vm12, %v61_v25  ;;  %2104 = vmatmul.msk.f32.gmra.mxu3 %vm4893_vm6, %v63_v49  ;;  %v1696_v59 = vadd.f32 %v1695_v52, %v1694_v53  ;;  %vm4897_vm12 = vmmov %vm4885_vm2 }
 0x27c   :  { %vm4898_vm6 = vmmov %vm4885_vm2 }
 0x27d   :  { %v1697_v26 = vrot.slane %v1696_v59, 1 }
 0x27f   :  { %v1698_v43 = vadd.f32 %v1697_v26, %v1696_v59 }
 0x281   :  { %v1699_v34 = vmax.f32 %v1698_v43, 1e-30 }
 0x283   :  { %2265 = vrsqrt.f32 %v1699_v34  ;;  %vm1706_vm15 = vweird.f32 %v1699_v34 }
 0x289   :  { %v2266_v8 = vpop.eup %2265 }
 0x28a   :  { %v1701_v47 = vmul.f32 %v2266_v8, %v1699_v34  ;;  %vm1707_vm0 = vweird.f32 %v2266_v8 }
 0x28b   :  { %vm1708_vm4 = vmor %vm1706_vm15, %vm1707_vm0 }
 0x28c   :  { %v1702_v9 = vmul.f32 %v2266_v8, %v1701_v47  ;;  %vm4899_vm0 = vmmov %vm4885_vm2 }
 0x28d   :  { %vm4902_vm15 = vmmov %vm4899_vm0 }
 0x28e   :  { %v1703_v16 = vmul.f32 0.5, %v1702_v9 }
 0x290   :  { %v1704_v29 = vsub.f32 1.5, %v1703_v16 }
 0x292   :  { %v1705_v15 = vmul.f32 %v2266_v8, %v1704_v29 }
 0x294   :  { %v1709_v17 = vsel %vm1708_vm4, %v2266_v8, %v1705_v15  ;;  %vm4903_vm4 = vmmov %vm4899_vm0 }
 0x295   :  { %v1710_v39 = vmul.f32 %v1709_v17, %v1699_v34 }
 0x297   :  { %v2105_v36 = vclamps-f32 %v1710_v39, 0.99999 }
 0x299   :  { %v1793_v32 = vsub.f32 0.0, %v2105_v36  ;;  %v1784_v50 = vadd.f32 1.0, %v2105_v36  ;;  %v1787_v13 = vmul.f32 -0.5, %v2105_v36  ;;  %v1790_v44 = vand.u32 2147483647, %v2105_v36 }
 0x29b   :  { %v1794_v7 = vadd.f32 1.0, %v1793_v32  ;;  %v1797_v57 = vmul.f32 -0.5, %v1793_v32  ;;  %v1800_v10 = vand.u32 2147483647, %v1793_v32  ;;  %v1788_v14 = vadd.f32 1.0, %v1787_v13 }
 0x29c   :  { %vm1791_vm8 = vcmp.lt.f32.partialorder %v1790_v44, 0.0004427343 }
 0x29d   :  { %2267 = vlog2.f32 %v1794_v7  ;;  %v1798_v40 = vadd.f32 1.0, %v1797_v57  ;;  %vm1801_vm3 = vcmp.lt.f32.partialorder %v1800_v10, 0.0004427343  ;;  %v1789_v49 = vmul.f32 %v2105_v36, %v1788_v14 }
 0x29f   :  { %v1799_v42 = vmul.f32 %v1798_v40, %v1793_v32 }
 0x2a3   :  { %v2268_v31 = vpop.eup %2267 }
 0x2a4   :  { %v1796_v28 = vmul.f32 0.6931472, %v2268_v31 }
 0x2a6   :  { %v1802_v38 = vsel %vm1801_vm3, %v1799_v42, %v1796_v28  ;;  %vm4906_vm3 = vmmov %vm4899_vm0 }
 0x2d6   :  { %v1872_v16 = vpop.permute.xlu0 %1871 }
 0x2f0   :  { %v4420_v61 = vpop.f32.mrf.mxu1 }
 0x2f1   :  { %v1752_v45 = vmul.f32 %v4420_v61, %v4420_v61 }
 0x2f3   :  { %v1756_v30 = vsel %vm4894_vm13, %v1752_v45, 0.0  ;;  %v1882_v45 = vpop.permute.xlu1 %1881  ;;  %vm4900_vm13 = vmmov %vm4899_vm0 }
 0x2f6   :  { %v4422_v5 = vpop.f32.mrf.mxu3 }
 0x2f7   :  { %v1754_v48 = vmul.f32 %v4422_v5, %v4422_v5 }
 0x2f8   :  { %v4426_v6 = vpop.f32.mrf.mxu1 }
 0x2f9   :  { %v1753_v0 = vmul.f32 %v4426_v6, %v4426_v6  ;;  %v1759_v46 = vsel %vm4896_vm5, %v1754_v48, 0.0  ;;  %vm4904_vm5 = vmmov %vm4899_vm0 }
 0x2fb   :  { %v1757_v33 = vsel %vm4895_vm14, %v1753_v0, 0.0  ;;  %v1887_v7 = vpop.permute.xlu1 %1886  ;;  %vm4901_vm14 = vmmov %vm4899_vm0 }
 0x2fc   :  { %v1758_v35 = vadd.f32 %v1757_v33, %v1756_v30 }
 0x2fe   :  { %v1749_v1 = vpop.f32.mrf.mxu3  ;;  %v1760_v55 = vadd.f32 %v1759_v46, %v1758_v35 }
 0x2ff   :  { %v1755_v20 = vmul.f32 %v1749_v1, %v1749_v1 }
 0x301   :  { %v1761_v2 = vsel %vm4885_vm2, %v1755_v20, 0.0  ;;  %vm4905_vm2 = vmmov %vm4899_vm0 }
 0x302   :  { %v1762_v63 = vadd.f32 %v1761_v2, %v1760_v55 }
 0x304   :  { %v1763_v21 = vrot.slane %v1762_v63, 4 }
 0x306   :  { %v1764_v24 = vadd.f32 %v1763_v21, %v1762_v63  ;;  %v1877_v21 = vpop.permute.xlu0 %1876 }
 0x308   :  { %v1765_v56 = vrot.slane %v1764_v24, 2 }
 0x30a   :  { %v1766_v41 = vadd.f32 %v1765_v56, %v1764_v24 }
 0x30c   :  { %v1767_v12 = vrot.slane %v1766_v41, 1 }
 0x30e   :  { %v1768_v19 = vadd.f32 %v1767_v12, %v1766_v41 }
 0x310   :  { %v1769_v18 = vmax.f32 %v1768_v19, 1e-30 }
 0x312   :  { %2269 = vrsqrt.f32 %v1769_v18  ;;  %vm1776_vm9 = vweird.f32 %v1769_v18 }
 0x313   :  { %2271 = vlog2.f32 %v1784_v50 }
 0x318   :  { %v2270_v3 = vpop.eup %2269 }
 0x319   :  { %v1771_v58 = vmul.f32 %v2270_v3, %v1769_v18  ;;  %v2272_v23 = vpop.eup %2271  ;;  %vm1777_vm7 = vweird.f32 %v2270_v3 }
 0x31a   :  { %v1786_v27 = vmul.f32 0.6931472, %v2272_v23  ;;  %vm1778_vm10 = vmor %vm1776_vm9, %vm1777_vm7 }
 0x31b   :  { %v1772_v62 = vmul.f32 %v2270_v3, %v1771_v58  ;;  %vm4907_vm7 = vmmov %vm4899_vm0 }
 0x31c   :  { %v1792_v52 = vsel %vm1791_vm8, %v1789_v49, %v1786_v27  ;;  %vm4908_vm8 = vmmov %vm4899_vm0 }
 0x31d   :  { %v1773_v4 = vmul.f32 0.5, %v1772_v62  ;;  %v1803_v59 = vsub.f32 %v1792_v52, %v1802_v38 }
 0x31f   :  { %v1774_v25 = vsub.f32 1.5, %v1773_v4  ;;  %v1804_v43 = vmul.f32 0.5, %v1803_v59 }
 0x321   :  { %v1775_v53 = vmul.f32 %v2270_v3, %v1774_v25 }
 0x323   :  { %v1779_v26 = vsel %vm1778_vm10, %v2270_v3, %v1775_v53 }
 0x324   :  { %v1780_v11 = vmul.f32 %v1779_v26, %v1769_v18 }
 0x326   :  { %v1781_v51 = vmul.f32 %v1780_v11, %v1709_v17  ;;  %vm1808_vm1 = vcmp.le.f32.partialorder %v1780_v11, 1e-15 }
 0x328   :  { %v1805_v54 = vmul.f32 %v1804_v43, %v1781_v51 }
 0x32a   :  { %2273 = vtanh.f32 %v1805_v54 }
 0x330   :  { %v2274_v37 = vpop.eup %2273 }
 0x331   :  { %v1807_v34 = vmul.f32 %v2274_v37, %v1779_v26 }
 0x333   :  { %v1810_v22 = vmul.f32 %v1807_v34, %v4426_v6  ;;  %v1811_v60 = vmul.f32 %v1807_v34, %v4422_v5  ;;  %v1812_v8 = vmul.f32 %v1807_v34, %v1749_v1  ;;  %v1819_v47 = vmul.f32 %v1807_v34, %v1780_v11  ;;  %v1911_v11 = vpop.permute.xlu2 %1910 }
 0x334   :  { %v1809_v29 = vmul.f32 %v1807_v34, %v4420_v61 }
 0x335   :  { %v1820_v9 = vmax.f32 %v1819_v47, 1e-15  ;;  %v1816_v30 = vsel %vm1808_vm1, 0.0, %v1810_v22  ;;  %v1817_v48 = vsel %vm1808_vm1, 0.0, %v1811_v60  ;;  %v1818_v33 = vsel %vm1808_vm1, 0.0, %v1812_v8 }
 0x336   :  { %v1815_v35 = vsel %vm1808_vm1, 0.0, %v1809_v29 }
 0x337   :  { %2275 = vrcp.f32 %v1820_v9  ;;  %vm1821_vm11 = vcmp.gt.f32.partialorder %v1820_v9, 0.996 }
 0x33d   :  { %v2276_v0 = vpop.eup %2275 }
 0x33e   :  { %v1823_v15 = vmul.f32 0.996, %v2276_v0 }
 0x340   :  { %v1825_v17 = vmul.f32 %v1823_v15, %v1816_v30  ;;  %v1826_v46 = vmul.f32 %v1823_v15, %v1817_v48  ;;  %v1827_v6 = vmul.f32 %v1823_v15, %v1818_v33  ;;  %v1824_v20 = vmul.f32 %v1823_v15, %v1815_v35 }
 0x342   :  { %v1832_v5 = vsel %vm1821_vm11, %v1826_v46, %v1817_v48  ;;  %v1833_v1 = vsel %vm1821_vm11, %v1827_v6, %v1818_v33  ;;  %v1830_v55 = vsel %vm1821_vm11, %v1824_v20, %v1815_v35  ;;  %v1831_v39 = vsel %vm1821_vm11, %v1825_v17, %v1816_v30 }
 0x343   :  { %v1834_v2 = vmul.f32 %v1830_v55, %v1830_v55  ;;  %v1835_v63 = vmul.f32 %v1831_v39, %v1831_v39  ;;  %v1836_v61 = vmul.f32 %v1832_v5, %v1832_v5  ;;  %v1889_v36 = vmul.f32 %v1872_v16, %v1830_v55 }
 0x344   :  { %v1891_v24 = vmul.f32 %v1882_v45, %v1832_v5  ;;  %v1890_v56 = vmul.f32 %v1877_v21, %v1831_v39  ;;  %v1837_v32 = vmul.f32 %v1833_v1, %v1833_v1  ;;  %v1892_v57 = vmul.f32 %v1887_v7, %v1833_v1 }
 0x345   :  { %v1838_v41 = vsel %vm4897_vm12, %v1834_v2, 0.0  ;;  %v1839_v12 = vsel %vm4898_vm6, %v1835_v63, 0.0  ;;  %v1893_v18 = vsel %vm4899_vm0, %v1889_v36, 0.0  ;;  %v1841_v31 = vsel %vm4901_vm14, %v1836_v61, 0.0  ;;  %vm4909_vm12 = vmmov %vm4899_vm0 }
 0x346   :  { %v1840_v19 = vadd.f32 %v1839_v12, %v1838_v41  ;;  %v1894_v50 = vsel %vm4900_vm13, %v1890_v56, 0.0  ;;  %v1896_v58 = vsel %vm4902_vm15, %v1891_v24, 0.0  ;;  %v1843_v40 = vsel %vm4903_vm4, %v1837_v32, 0.0  ;;  %vm4910_vm6 = vmmov %vm4899_vm0 }
 0x347   :  { %v1895_v13 = vadd.f32 %v1894_v50, %v1893_v18  ;;  %v1898_v62 = vsel %vm4904_vm5, %v1892_v57, 0.0  ;;  %vm4911_vm13 = vmmov %vm4899_vm0 }
 0x348   :  { %v1842_v3 = vadd.f32 %v1841_v31, %v1840_v19 }
 0x349   :  { %v1897_v23 = vadd.f32 %v1896_v58, %v1895_v13 }
 0x34a   :  { %v1844_v10 = vadd.f32 %v1843_v40, %v1842_v3 }
 0x34b   :  { %v1899_v14 = vadd.f32 %v1898_v62, %v1897_v23 }
 0x34c   :  { %v1845_v28 = vrot.slane %v1844_v10, 4 }
 0x34d   :  { %v1900_v44 = vrot.slane %v1899_v14, 4 }
 0x34e   :  { %v1846_v4 = vadd.f32 %v1845_v28, %v1844_v10 }
 0x34f   :  { %v1901_v27 = vadd.f32 %v1900_v44, %v1899_v14 }
 0x350   :  { %v1847_v42 = vrot.slane %v1846_v4, 2 }
 0x351   :  { %v1902_v25 = vrot.slane %v1901_v27, 2 }
 0x352   :  { %v1848_v49 = vadd.f32 %v1847_v42, %v1846_v4 }
 0x353   :  { %v1903_v38 = vadd.f32 %v1902_v25, %v1901_v27 }
 0x354   :  { %v1849_v53 = vrot.slane %v1848_v49, 1 }
 0x355   :  { %v1904_v52 = vrot.slane %v1903_v38, 1 }
 0x356   :  { %v1850_v59 = vadd.f32 %v1849_v53, %v1848_v49 }
 0x357   :  { %v1905_v26 = vadd.f32 %v1904_v52, %v1903_v38 }
 0x358   :  { %v1918_v43 = vsub.f32 1.0, %v1850_v59  ;;  %v1927_v37 = vmul.f32 %v1911_v11, %v1850_v59 }
 0x359   :  { %v1906_v51 = vmul.f32 2.0, %v1905_v26 }
 0x35a   :  { %v1919_v60 = vmul.f32 %v1918_v43, %v1872_v16  ;;  %v1921_v8 = vmul.f32 %v1918_v43, %v1882_v45  ;;  %v1920_v47 = vmul.f32 %v1918_v43, %v1877_v21  ;;  %v1922_v9 = vmul.f32 %v1918_v43, %v1887_v7 }
 0x35b   :  { %v1907_v54 = vadd.f32 1.0, %v1906_v51 }
 0x35d   :  { %v1913_v34 = vadd.f32 %v1911_v11, %v1907_v54  ;;  %v1928_v22 = vadd.f32 %v1927_v37, %v1907_v54 }
 0x35f   :  { %v1914_v29 = vmul.f32 %v1913_v34, %v1830_v55  ;;  %v1915_v0 = vmul.f32 %v1913_v34, %v1831_v39  ;;  %v1916_v15 = vmul.f32 %v1913_v34, %v1832_v5  ;;  %v1917_v30 = vmul.f32 %v1913_v34, %v1833_v1 }
 0x360   :  { %v1929_v48 = vmax.f32 %v1928_v22, 1e-15 }
 0x361   :  { %v1923_v33 = vadd.f32 %v1919_v60, %v1914_v29  ;;  %v1924_v35 = vadd.f32 %v1920_v47, %v1915_v0  ;;  %v1925_v17 = vadd.f32 %v1921_v8, %v1916_v15  ;;  %v1926_v46 = vadd.f32 %v1922_v9, %v1917_v30 }
 0x362   :  { %2277 = vrcp.f32 %v1929_v48 }
 0x368   :  { %v2278_v6 = vpop.eup %2277 }
 0x369   :  { %v1931_v20 = vmul.f32 %v2278_v6, %v1923_v33  ;;  %v1932_v2 = vmul.f32 %v2278_v6, %v1924_v35  ;;  %v1933_v63 = vmul.f32 %v2278_v6, %v1925_v17  ;;  %v1934_v61 = vmul.f32 %v2278_v6, %v1926_v46 }
 0x36b   :  { %v1935_v36 = vmul.f32 %v1931_v20, %v1931_v20  ;;  %v1936_v16 = vmul.f32 %v1932_v2, %v1932_v2  ;;  %v1937_v45 = vmul.f32 %v1933_v63, %v1933_v63  ;;  %v1938_v21 = vmul.f32 %v1934_v61, %v1934_v61 }
 0x36d   :  { %v1939_v55 = vsel %vm4905_vm2, %v1935_v36, 0.0  ;;  %v1940_v5 = vsel %vm4906_vm3, %v1936_v16, 0.0  ;;  %v1942_v39 = vsel %vm4907_vm7, %v1937_v45, 0.0  ;;  %v1944_v56 = vsel %vm4908_vm8, %v1938_v21, 0.0  ;;  %vm4912_vm3 = vmmov %vm4899_vm0 }
 0x36e   :  { %v1941_v1 = vadd.f32 %v1940_v5, %v1939_v55  ;;  %vm4913_vm7 = vmmov %vm4899_vm0 }
 0x36f   :  { %vm4914_vm8 = vmmov %vm4899_vm0 }
 0x370   :  { %v1943_v24 = vadd.f32 %v1942_v39, %v1941_v1 }
 0x372   :  { %v1945_v32 = vadd.f32 %v1944_v56, %v1943_v24 }
 0x374   :  { %v1946_v41 = vrot.slane %v1945_v32, 4 }
 0x376   :  { %v1947_v12 = vadd.f32 %v1946_v41, %v1945_v32 }
 0x378   :  { %v1948_v7 = vrot.slane %v1947_v12, 2 }
 0x37a   :  { %v1949_v19 = vadd.f32 %v1948_v7, %v1947_v12 }
 0x37c   :  { %v1950_v18 = vrot.slane %v1949_v19, 1 }
 0x37e   :  { %v1951_v50 = vadd.f32 %v1950_v18, %v1949_v19 }
 0x380   :  { %v1952_v57 = vmax.f32 %v1951_v50, 1e-30 }
 0x382   :  { %2279 = vrsqrt.f32 %v1952_v57  ;;  %vm1959_vm10 = vweird.f32 %v1952_v57 }
 0x388   :  { %v2280_v31 = vpop.eup %2279 }
 0x389   :  { %v1954_v13 = vmul.f32 %v2280_v31, %v1952_v57  ;;  %vm1960_vm9 = vweird.f32 %v2280_v31 }
 0x38a   :  { %vm1961_vm1 = vmor %vm1959_vm10, %vm1960_vm9 }
 0x38b   :  { %v1955_v3 = vmul.f32 %v2280_v31, %v1954_v13  ;;  %vm4915_vm9 = vmmov %vm4899_vm0 }
 0x38d   :  { %v1956_v58 = vmul.f32 0.5, %v1955_v3 }
 0x38f   :  { %v1957_v40 = vsub.f32 1.5, %v1956_v58 }
 0x391   :  { %v1958_v23 = vmul.f32 %v2280_v31, %v1957_v40 }
 0x393   :  { %v1962_v10 = vsel %vm1961_vm1, %v2280_v31, %v1958_v23 }
 0x394   :  { %v1963_v62 = vmul.f32 %v1962_v10, %v1952_v57  ;;  %v1965_v14 = vmul.f32 0.996, %v1962_v10 }
 0x396   :  { %vm1964_vm11 = vcmp.gt.f32.partialorder %v1963_v62, 0.996  ;;  %v1966_v28 = vmul.f32 %v1965_v14, %v1931_v20  ;;  %v1967_v44 = vmul.f32 %v1965_v14, %v1932_v2  ;;  %v1968_v4 = vmul.f32 %v1965_v14, %v1933_v63 }
 0x397   :  { %v1969_v27 = vmul.f32 %v1965_v14, %v1934_v61 }
 0x398   :  { %v1972_v42 = vsel %vm1964_vm11, %v1966_v28, %v1931_v20  ;;  %v1973_v25 = vsel %vm1964_vm11, %v1967_v44, %v1932_v2  ;;  %v1974_v49 = vsel %vm1964_vm11, %v1968_v4, %v1933_v63 }
 0x399   :  { %v1975_v38 = vsel %vm1964_vm11, %v1969_v27, %v1934_v61  ;;  %v1976_v53 = vmul.f32 %v1972_v42, %v1972_v42  ;;  %v1977_v52 = vmul.f32 %v1973_v25, %v1973_v25  ;;  %v1978_v59 = vmul.f32 %v1974_v49, %v1974_v49 }
 0x39a   :  { %v1979_v26 = vmul.f32 %v1975_v38, %v1975_v38 }
 0x39b   :  { %v1980_v11 = vsel %vm4909_vm12, %v1976_v53, 0.0  ;;  %v1981_v51 = vsel %vm4910_vm6, %v1977_v52, 0.0  ;;  %v1983_v54 = vsel %vm4899_vm0, %v1978_v59, 0.0  ;;  %vm4916_vm12 = vmmov %vm4899_vm0 }
 0x39c   :  { %v1982_v43 = vadd.f32 %v1981_v51, %v1980_v11  ;;  %v1985_v34 = vsel %vm4911_vm13, %v1979_v26, 0.0  ;;  %vm4917_vm6 = vmmov %vm4899_vm0 }
 0x39d   :  { %vm4918_vm13 = vmmov %vm4899_vm0 }
 0x39e   :  { %v1984_v37 = vadd.f32 %v1983_v54, %v1982_v43 }
 0x3a0   :  { %v1986_v22 = vadd.f32 %v1985_v34, %v1984_v37 }
 0x3a2   :  { %v1987_v60 = vrot.slane %v1986_v22, 4 }
 0x3a4   :  { %v1988_v8 = vadd.f32 %v1987_v60, %v1986_v22 }
 0x3a6   :  { %v1989_v47 = vrot.slane %v1988_v8, 2 }
 0x3a8   :  { %v1990_v9 = vadd.f32 %v1989_v47, %v1988_v8 }
 0x3aa   :  { %v1991_v29 = vrot.slane %v1990_v9, 1 }
 0x3ac   :  { %v1992_v0 = vadd.f32 %v1991_v29, %v1990_v9 }
 0x3ae   :  { %v1993_v15 = vmax.f32 %v1992_v0, 1e-30 }
 0x3b0   :  { %2281 = vrsqrt.f32 %v1993_v15  ;;  %vm2000_vm15 = vweird.f32 %v1993_v15 }
 0x3b6   :  { %v2282_v30 = vpop.eup %2281 }
 0x3b7   :  { %v1995_v48 = vmul.f32 %v2282_v30, %v1993_v15  ;;  %vm2001_vm14 = vweird.f32 %v2282_v30 }
 0x3b8   :  { %vm2002_vm4 = vmor %vm2000_vm15, %vm2001_vm14 }
 0x3b9   :  { %v1996_v33 = vmul.f32 %v2282_v30, %v1995_v48 }
 0x3bb   :  { %v1997_v35 = vmul.f32 0.5, %v1996_v33 }
 0x3bd   :  { %v1998_v17 = vsub.f32 1.5, %v1997_v35 }
 0x3bf   :  { %v1999_v46 = vmul.f32 %v2282_v30, %v1998_v17 }
 0x3c1   :  { %v2003_v6 = vsel %vm2002_vm4, %v2282_v30, %v1999_v46 }
 0x3c2   :  { %v2004_v20 = vmul.f32 %v2003_v6, %v1993_v15 }
 0x3c4   :  { %v2106_v2 = vclamps-f32 %v2004_v20, 0.99999 }
 0x3c6   :  { %v2007_v63 = vadd.f32 1.0, %v2106_v2  ;;  %v2016_v61 = vsub.f32 0.0, %v2106_v2  ;;  %v2010_v16 = vmul.f32 -0.5, %v2106_v2  ;;  %v2013_v1 = vand.u32 2147483647, %v2106_v2 }
 0x3c8   :  { %2283 = vlog2.f32 %v2007_v63  ;;  %v2017_v36 = vadd.f32 1.0, %v2016_v61  ;;  %v2020_v45 = vmul.f32 -0.5, %v2016_v61  ;;  %v2011_v21 = vadd.f32 1.0, %v2010_v16 }
 0x3c9   :  { %v2023_v39 = vand.u32 2147483647, %v2016_v61  ;;  %vm2014_vm5 = vcmp.lt.f32.partialorder %v2013_v1, 0.0004427343 }
 0x3ca   :  { %2285 = vlog2.f32 %v2017_v36  ;;  %v2021_v55 = vadd.f32 1.0, %v2020_v45  ;;  %v2012_v32 = vmul.f32 %v2106_v2, %v2011_v21 }
 0x3cb   :  { %vm2024_vm2 = vcmp.lt.f32.partialorder %v2023_v39, 0.0004427343 }
 0x3cc   :  { %v2022_v12 = vmul.f32 %v2021_v55, %v2016_v61 }
 0x3ce   :  { %v2284_v5 = vpop.eup %2283 }
 0x3cf   :  { %v2009_v24 = vmul.f32 0.6931472, %v2284_v5 }
 0x3d0   :  { %v2286_v56 = vpop.eup %2285 }
 0x3d1   :  { %v2019_v41 = vmul.f32 0.6931472, %v2286_v56  ;;  %v2015_v7 = vsel %vm2014_vm5, %v2012_v32, %v2009_v24 }
 0x3d3   :  { %v2025_v19 = vsel %vm2024_vm2, %v2022_v12, %v2019_v41 }
 0x3d4   :  { %v2026_v18 = vsub.f32 %v2015_v7, %v2025_v19 }
 0x3d6   :  { %v2027_v50 = vmul.f32 0.5, %v2026_v18 }
 0x3d8   :  { %v2028_v57 = vmul.f32 %v2027_v50, %v2003_v6 }
 0x3da   :  { %v2029_v31 = vmul.f32 %v2028_v57, %v1972_v42  ;;  %v2030_v13 = vmul.f32 %v2028_v57, %v1973_v25  ;;  %v2031_v3 = vmul.f32 %v2028_v57, %v1974_v49  ;;  %v2032_v58 = vmul.f32 %v2028_v57, %v1975_v38 }
 0x3dc   :  { %v2033_v40 = vmax.f32 %v2029_v31, 0.0  ;;  %v2034_v23 = vmax.f32 %v2030_v13, 0.0  ;;  %v2035_v10 = vmax.f32 %v2031_v3, 0.0  ;;  %v2036_v62 = vmax.f32 %v2032_v58, 0.0 }
 0x3de   :  { %v2037_v14 = vmul.f32 %v2033_v40, %v2033_v40  ;;  %v2038_v28 = vmul.f32 %v2034_v23, %v2034_v23  ;;  %v2039_v44 = vmul.f32 %v2035_v10, %v2035_v10  ;;  %v2040_v4 = vmul.f32 %v2036_v62, %v2036_v62 }
 0x3e0   :  { %v2041_v27 = vsel %vm4912_vm3, %v2037_v14, 0.0  ;;  %v2042_v53 = vsel %vm4913_vm7, %v2038_v28, 0.0  ;;  %v2044_v59 = vsel %vm4914_vm8, %v2039_v44, 0.0  ;;  %v2046_v42 = vsel %vm4915_vm9, %v2040_v4, 0.0 }
 0x3e1   :  { %v2043_v52 = vadd.f32 %v2042_v53, %v2041_v27 }
 0x3e3   :  { %v2045_v26 = vadd.f32 %v2044_v59, %v2043_v52 }
 0x3e5   :  { %v2047_v25 = vadd.f32 %v2046_v42, %v2045_v26 }
 0x3e7   :  { %v2048_v49 = vrot.slane %v2047_v25, 4 }
 0x3e9   :  { %v2049_v38 = vadd.f32 %v2048_v49, %v2047_v25 }
 0x3eb   :  { %v2050_v11 = vrot.slane %v2049_v38, 2 }
 0x3ed   :  { %v2051_v51 = vadd.f32 %v2050_v11, %v2049_v38 }
 0x3ef   :  { %v2052_v43 = vrot.slane %v2051_v51, 1 }
 0x3f1   :  { %v2053_v54 = vadd.f32 %v2052_v43, %v2051_v51 }
 0x3f3   :  { %v2054_v37 = vmax.f32 %v2053_v54, 1e-30 }
 0x3f5   :  { %2287 = vrsqrt.f32 %v2054_v37  ;;  %vm2061_vm1 = vweird.f32 %v2054_v37 }
 0x3fb   :  { %v2288_v34 = vpop.eup %2287 }
 0x3fc   :  { %v2056_v22 = vmul.f32 %v2288_v34, %v2054_v37  ;;  %vm2062_vm10 = vweird.f32 %v2288_v34 }
 0x3fd   :  { %vm2063_vm11 = vmor %vm2061_vm1, %vm2062_vm10 }
 0x3fe   :  { %v2057_v60 = vmul.f32 %v2288_v34, %v2056_v22 }
 0x400   :  { %v2058_v8 = vmul.f32 0.5, %v2057_v60 }
 0x402   :  { %v2059_v47 = vsub.f32 1.5, %v2058_v8 }
 0x404   :  { %v2060_v9 = vmul.f32 %v2288_v34, %v2059_v47 }
 0x406   :  { %v2064_v29 = vsel %vm2063_vm11, %v2288_v34, %v2060_v9 }
 0x407   :  { %v2065_v0 = vmul.f32 %v2064_v29, %v2054_v37 }
 0x409   :  { %2289 = vtanh.f32 %v2065_v0 }
 0x40f   :  { %v2290_v15 = vpop.eup %2289 }
 0x410   :  { %v2067_v30 = vmul.f32 %v2290_v15, %v2064_v29 }
 0x412   :  { %v2068_v48 = vmul.f32 %v2067_v30, %v2033_v40  ;;  %v2069_v33 = vmul.f32 %v2067_v30, %v2034_v23  ;;  %v2070_v35 = vmul.f32 %v2067_v30, %v2035_v10  ;;  %v2071_v17 = vmul.f32 %v2067_v30, %v2036_v62 }
 0x414   :  { %2072 = vst.msk [vmem:[%s4480_s5] sm:$0xff] %vm4916_vm12, %v2068_v48 }
 0x415   :  { %2073 = vst.msk [vmem:[%s4480_s5 + $0x8] sm:$0xff] %vm4917_vm6, %v2069_v33 }
 0x416   :  { %2074 = vst.msk [vmem:[%s4480_s5 + $0x10] sm:$0xff] %vm4899_vm0, %v2070_v35 }
 0x417   :  { %2075 = vst.msk [vmem:[%s4480_s5 + $0x18] sm:$0xff] %vm4918_vm13, %v2071_v17 }

</bundles_post_ra>
